<compile_context>
chip_gen: v7x
topology: tpu7x:2x2x1
jax: 0.10.0
libtpu: 0.0.40
codegen_flags: <defaults>
</compile_context>

<pallas_src>
import functools

import jax
import jax.numpy as jnp
from jax.experimental import pallas as pl
from jax.experimental.pallas import tpu as pltpu


CONFIG = dict(
    d_hidn=32,
    n_head=4,
    d_head=8,
    data_seq=16,      # sequence length == Conv1d in_channels
    latent_dim=8,
    dropout=0.1,      # identity at inference
    layer_norm_epsilon=1e-6,
)

_HIGHEST = jax.lax.Precision.HIGHEST


def _gelu(x):
    # TODO(synk): PyTorch F.gelu default is the exact erf GELU; Mosaic has no
    # guaranteed erf lowering, so the tanh approximation is used here (and in
    # the in-script reference, so the check is apples-to-apples).
    return jax.nn.gelu(x, approximate=True)


def _round8(n):
    return ((n + 7) // 8) * 8


# --------------------------------------------------------------------------
# kernel
# --------------------------------------------------------------------------
def encoder_layer_kernel(xw_ref, xt_ref, xr_ref, bias_ref, c_ref,
                         enc_ref, attn_ref, *,
                         S, H, NHD, tb, n_head, S2, L, eps, off):
    """One grid step == one block of `tb` batch elements, batch on lanes."""
    TH = tb * H            # lanes indexed (batch, hidden)
    TN = tb * NHD          # lanes indexed (batch, head*d_head)
    TS = tb * n_head * S   # lanes indexed (batch, head, key)

    dot = functools.partial(jnp.dot, preferred_element_type=jnp.float32,
                            precision=_HIGHEST)

    x = xw_ref[0]          # (S, TH)   batch folded into lanes
    xt = xt_ref[0]         # (H, TS)   x^T tiled per (batch, head) column block
    xr = xr_ref[0]         # (TS, H)   x replicated per (batch, head, key) row
    bias = bias_ref[0]     # (S, TS)   additive attention-mask bias (0 / -1e9)

    # ---- packed constants: static slices of one VMEM-resident slab ----
    vec = c_ref[off["vec"]:off["vec"] + 8, :]
    b_q, b_o = vec[0:1, :TN], vec[1:2, :TH]
    gamma, beta = vec[2:3, :TH], vec[3:4, :TH]
    b_v = vec[4:5, :TN]
    w_q = c_ref[off["wq"]:off["wq"] + TH, :TN]        # block-diag, scale folded
    w_kt = c_ref[off["wkt"]:off["wkt"] + TN, :H]
    b_k = c_ref[off["wkt"]:off["wkt"] + TN, H:H + 1]
    m_k = c_ref[off["mk"]:off["mk"] + TN, :TS]        # (batch,head) diag select
    w_v = c_ref[off["wv"]:off["wv"] + H, :TN]
    m_v = c_ref[off["mv"]:off["mv"] + TS, :TN]
    w_o = c_ref[off["wo"]:off["wo"] + TN, :TH]        # block-diag over batch
    seg_sm = c_ref[off["ssm"]:off["ssm"] + TS, :TS]   # softmax segment-ones
    seg_ln = c_ref[off["sln"]:off["sln"] + TH, :TH]   # layernorm segment-avg
    fc1_w = c_ref[off["fc1"]:off["fc1"] + S2, :S]
    fc1_b = c_ref[off["fc1"]:off["fc1"] + S2, S:S + 1]
    fc2_w = c_ref[off["fc2"]:off["fc2"] + L, :S2]
    fc2_b = c_ref[off["fc2"]:off["fc2"] + L, S2:S2 + 1]

    # ---- fused multi-head attention: one MXU push per stage, all heads and
    #      all batch elements of the block at once ----
    q = dot(x, w_q) + b_q                       # (S, TN); 1/sqrt(d) pre-folded
    kt = m_k * (dot(w_kt, xt) + b_k)            # (TN, TS) block-diagonal K^T
    scores = dot(q, kt) + bias                  # (S, TS)

    # Segmented softmax over each S-wide key segment.  The global row max is a
    # valid stabilizer (constant within every segment); the denominator is a
    # segment-sum matmul, already broadcast to every lane of its segment.
    # (Like the reference, a fully-masked row would give 0/0; padding masks
    # always keep >=1 valid key so this does not occur.)
    m = jnp.max(scores, axis=-1, keepdims=True)
    e = jnp.exp(scores - m)
    attn = e / dot(e, seg_sm)                   # exact division (1e-5 check)
    attn_ref[0] = attn                          # single lane-dense store

    v_bd = m_v * (dot(xr, w_v) + b_v)           # (TS, TN) block-diagonal V
    ctx = dot(attn, v_bd)                       # (S, TN)  heads concatenated
    att_out = dot(ctx, w_o) + b_o               # (S, TH)

    # ---- residual + LayerNorm over each per-batch hidden segment ----
    y = x + att_out
    mu = dot(y, seg_ln)
    d = y - mu
    var = dot(d * d, seg_ln)
    ln = d * jax.lax.rsqrt(var + eps) * gamma + beta

    # ---- position-wise Conv1d(k=1) FFN, batch already on lanes ----
    h1 = _gelu(dot(fc1_w, ln) + fc1_b)          # (S//2, TH)
    enc_ref[0] = dot(fc2_w, h1) + fc2_b         # (latent, TH)


# --------------------------------------------------------------------------
# constant packing (wrapper side, pure layout plumbing)
# --------------------------------------------------------------------------
def _pack_constants(params, *, tb, S, H, n_head, d_head, latent_dim):
    """Pack every weight / mask constant into one (rows, lane) f32 slab."""
    NHD = n_head * d_head
    TH, TN, TS = tb * H, tb * NHD, tb * n_head * S
    S2, L = S // 2, latent_dim
    scale = 1.0 / (d_head ** 0.5)

    lane = max(128, TS, TH, TN, H + 1, S + 1, S2 + 1)
    lane = ((lane + 127) // 128) * 128

    def pad(a):
        a = jnp.asarray(a, jnp.float32)
        return jnp.pad(a, ((0, _round8(a.shape[0]) - a.shape[0]),
                           (0, lane - a.shape[1])))

    # (batch, head) block-diagonal selection mask: rows=(b, j), cols=(b, h, s)
    r = jnp.arange(TN)
    c = jnp.arange(TS)
    m_k = ((r[:, None] // NHD == c[None, :] // (n_head * S)) &
           ((r[:, None] % NHD) // d_head == (c[None, :] % (n_head * S)) // S)
           ).astype(jnp.float32)

    eye_tb = jnp.eye(tb, dtype=jnp.float32)
    vec = jnp.zeros((8, lane), jnp.float32)
    vec = vec.at[0, :TN].set(jnp.tile(params["bq"][0] * scale, tb))
    vec = vec.at[1, :TH].set(jnp.tile(params["bo"][0], tb))
    vec = vec.at[2, :TH].set(jnp.tile(params["gamma"][0], tb))
    vec = vec.at[3, :TH].set(jnp.tile(params["beta"][0], tb))
    vec = vec.at[4, :TN].set(jnp.tile(params["bv"][0], tb))

    blocks = [
        ("vec", vec),
        ("wq", pad(jnp.kron(eye_tb, params["wq"] * scale))),           # (TH,TN)
        ("wkt", pad(jnp.concatenate([jnp.tile(params["wk"].T, (tb, 1)),
                                     jnp.tile(params["bk"].T, (tb, 1))],
                                    axis=1))),                         # (TN,H+1)
        ("mk", pad(m_k)),                                              # (TN,TS)
        ("wv", pad(jnp.tile(params["wv"], (1, tb)))),                  # (H, TN)
        ("mv", pad(m_k.T)),                                            # (TS,TN)
        ("wo", pad(jnp.kron(eye_tb, params["wo"]))),                   # (TN,TH)
        ("ssm", pad(jnp.kron(jnp.eye(tb * n_head, dtype=jnp.float32),
                             jnp.ones((S, S), jnp.float32)))),         # (TS,TS)
        ("sln", pad(jnp.kron(eye_tb,
                             jnp.full((H, H), 1.0 / H, jnp.float32)))),  # (TH,TH)
        ("fc1", pad(jnp.concatenate([params["fc1_w"], params["fc1_b"]],
                                    axis=1))),                         # (S2,S+1)
        ("fc2", pad(jnp.concatenate([params["fc2_w"], params["fc2_b"]],
                                    axis=1))),                         # (L,S2+1)
    ]
    off, row = {}, 0
    for name, blk in blocks:
        off[name] = row
        row += blk.shape[0]
    return jnp.concatenate([b for _, b in blocks], axis=0), off, lane


# --------------------------------------------------------------------------
# wrapper
# --------------------------------------------------------------------------
@functools.partial(jax.jit,
                   static_argnames=("n_head", "d_head", "latent_dim", "eps",
                                    "batch_block"))
def encoder_layer(x, attn_mask, params, *, n_head, d_head, latent_dim, eps,
                  batch_block=None):
    """Forward pass of EncoderLayer.  Returns (enc_outputs, attn_prob)."""
    B, S, H = x.shape
    NHD = n_head * d_head
    S2, L = S // 2, latent_dim

    # Default: a single grid step (tb = B).  v5e/v6e have one TensorCore, so
    # extra grid steps are a serial loop with ~0.35us/step of pure overhead.
    # On v7x pass batch_block=B//2 to put one block on each TensorCore if a
    # benchmark shows the split wins.
    tb = B if batch_block is None else batch_block
    assert B % tb == 0, "batch must be divisible by batch_block"
    G = B // tb
    TH, TN, TS = tb * H, tb * NHD, tb * n_head * S
    del TN  # (only needed inside the kernel)

    consts, off, lane = _pack_constants(
        params, tb=tb, S=S, H=H, n_head=n_head, d_head=d_head,
        latent_dim=latent_dim)

    # ---- layout plumbing (all wrapper side; no in-kernel relayouts) ----
    xb = x.astype(jnp.float32).reshape(G, tb, S, H)
    x_wide = xb.transpose(0, 2, 1, 3).reshape(G, S, TH)            # batch->lanes
    xt = xb.transpose(0, 3, 1, 2)                                  # (G,H,tb,S)
    xt = jnp.broadcast_to(xt[:, :, :, None, :],
                          (G, H, tb, n_head, S)).reshape(G, H, TS)
    xr = jnp.broadcast_to(xb[:, :, None, :, :],
                          (G, tb, n_head, S, H)).reshape(G, TS, H)

    maskb = jnp.broadcast_to(attn_mask, (B, S, S)).astype(bool)
    bias = jnp.where(maskb, jnp.float32(-1e9), jnp.float32(0.0))
    bias = bias.reshape(G, tb, S, S).transpose(0, 2, 1, 3)         # (G,S,tb,S)
    bias = jnp.broadcast_to(bias[:, :, :, None, :],
                            (G, S, tb, n_head, S)).reshape(G, S, TS)

    kernel = functools.partial(
        encoder_layer_kernel, S=S, H=H, NHD=NHD, tb=tb, n_head=n_head,
        S2=S2, L=L, eps=eps, off=off)

    R = consts.shape[0]
    out_enc, out_attn = pl.pallas_call(
        kernel,
        grid=(G,),
        in_specs=[
            pl.BlockSpec((1, S, TH), lambda g: (g, 0, 0)),   # x, batch on lanes
            pl.BlockSpec((1, H, TS), lambda g: (g, 0, 0)),   # x^T, head-tiled
            pl.BlockSpec((1, TS, H), lambda g: (g, 0, 0)),   # x, row-replicated
            pl.BlockSpec((1, S, TS), lambda g: (g, 0, 0)),   # additive mask bias
            pl.BlockSpec((R, lane), lambda g: (0, 0)),       # packed constants
        ],
        out_specs=[
            pl.BlockSpec((1, L, TH), lambda g: (g, 0, 0)),
            pl.BlockSpec((1, S, TS), lambda g: (g, 0, 0)),
        ],
        out_shape=[
            jax.ShapeDtypeStruct((G, L, TH), jnp.float32),
            jax.ShapeDtypeStruct((G, S, TS), jnp.float32),
        ],
        compiler_params=pltpu.CompilerParams(
            dimension_semantics=("parallel",)),
    )(x_wide, xt, xr, bias, consts)

    # un-plumb the lane-dense slabs back to the module's natural layout
    enc = (out_enc.reshape(G, L, tb, H).transpose(0, 2, 1, 3)
           .reshape(B, L, H))
    attn = (out_attn.reshape(G, S, tb, n_head, S).transpose(0, 2, 3, 1, 4)
            .reshape(B, n_head, S, S))
    return enc, attn


# --------------------------------------------------------------------------
# pure-JAX reference (mirror of the PyTorch forward; dropout = identity)
# --------------------------------------------------------------------------
def reference(x, attn_mask, params, *, n_head, d_head, eps):
    P = _HIGHEST
    B, S, H = x.shape
    scale = 1.0 / (d_head ** 0.5)

    def lin(a, w, b):
        return jnp.matmul(a, w, precision=P) + b

    q = lin(x, params["wq"], params["bq"]).reshape(B, S, n_head, d_head)
    k = lin(x, params["wk"], params["bk"]).reshape(B, S, n_head, d_head)
    v = lin(x, params["wv"], params["bv"]).reshape(B, S, n_head, d_head)
    q, k, v = (t.transpose(0, 2, 1, 3) for t in (q, k, v))        # (B,nh,S,dh)

    scores = jnp.einsum("bhqd,bhkd->bhqk", q, k, precision=P) * scale
    scores = jnp.where(attn_mask[:, None, :, :], -1e9, scores)    # masked_fill
    attn = jax.nn.softmax(scores, axis=-1)
    ctx = jnp.einsum("bhqk,bhkd->bhqd", attn, v, precision=P)
    ctx = ctx.transpose(0, 2, 1, 3).reshape(B, S, n_head * d_head)
    att_out = jnp.matmul(ctx, params["wo"], precision=P) + params["bo"]

    y = x + att_out
    mu = y.mean(-1, keepdims=True)
    var = ((y - mu) ** 2).mean(-1, keepdims=True)
    ln = (y - mu) * jax.lax.rsqrt(var + eps) * params["gamma"] + params["beta"]

    h1 = _gelu(jnp.einsum("os,bsh->boh", params["fc1_w"], ln, precision=P)
               + params["fc1_b"][None])
    h2 = (jnp.einsum("lo,boh->blh", params["fc2_w"], h1, precision=P)
          + params["fc2_b"][None])
    return h2, attn


def init_params(key, cfg):
    H = cfg["d_hidn"]
    NHD = cfg["n_head"] * cfg["d_head"]
    S = cfg["data_seq"]
    S2 = S // 2
    L = cfg["latent_dim"]
    ks = jax.random.split(key, 12)
    f = lambda k, shape: (0.1 * jax.random.normal(k, shape)).astype(jnp.float32)
    return dict(
        wq=f(ks[0], (H, NHD)), bq=f(ks[1], (1, NHD)),
        wk=f(ks[2], (H, NHD)), bk=f(ks[3], (1, NHD)),
        wv=f(ks[4], (H, NHD)), bv=f(ks[5], (1, NHD)),
        wo=f(ks[6], (NHD, H)), bo=f(ks[7], (1, H)),
        gamma=jnp.ones((1, H), jnp.float32), beta=jnp.zeros((1, H), jnp.float32),
        fc1_w=f(ks[8], (S2, S)), fc1_b=f(ks[9], (S2, 1)),
        fc2_w=f(ks[10], (L, S2)), fc2_b=f(ks[11], (L, 1)),
    )


if __name__ == "__main__":
    cfg = CONFIG
    B, S, H = 2, cfg["data_seq"], cfg["d_hidn"]

    key = jax.random.PRNGKey(0)
    kx, kp = jax.random.split(key)
    x = jax.random.normal(kx, (B, S, H), dtype=jnp.float32)

    # padding-style boolean mask, materialized to full (B, S, S)
    lengths = jnp.array([S, S - 4], dtype=jnp.int32)
    key_pos = jnp.arange(S)[None, None, :]
    attn_mask = jnp.broadcast_to(key_pos >= lengths[:, None, None],
                                 (B, S, S))                      # (B,S,S) bool

    params = init_params(kp, cfg)

    enc_out, attn_prob = encoder_layer(
        x, attn_mask, params,
        n_head=cfg["n_head"], d_head=cfg["d_head"],
        latent_dim=cfg["latent_dim"], eps=cfg["layer_norm_epsilon"])
    jax.block_until_ready(enc_out)
    jax.block_until_ready(attn_prob)

    enc_ref, attn_ref_vals = reference(
        x, attn_mask, params,
        n_head=cfg["n_head"], d_head=cfg["d_head"],
        eps=cfg["layer_norm_epsilon"])

    assert enc_out.shape == (B, cfg["latent_dim"], H)
    assert attn_prob.shape == (B, cfg["n_head"], S, S)
    assert jnp.allclose(enc_out, enc_ref, atol=1e-4, rtol=1e-4)
    assert jnp.allclose(attn_prob, attn_ref_vals, atol=1e-5, rtol=1e-4)
    print("KERNEL_OK")
</pallas_src>

<mosaic_0001>
module attributes {stable_mosaic.version = 11 : i64} {
  func.func @encoder_layer_kernel(%arg0: i32, %arg1: memref<1x16x64xf32, #tpu.memory_space<vmem>>, %arg2: memref<1x32x128xf32, #tpu.memory_space<vmem>>, %arg3: memref<1x128x32xf32, #tpu.memory_space<vmem>>, %arg4: memref<1x16x128xf32, #tpu.memory_space<vmem>>, %arg5: memref<632x128xf32, #tpu.memory_space<vmem>>, %arg6: memref<1x8x64xf32, #tpu.memory_space<vmem>>, %arg7: memref<1x16x128xf32, #tpu.memory_space<vmem>>) attributes {dimension_semantics = [#tpu.dimension_semantics<parallel>], iteration_bounds = array<i64: 1>, scalar_prefetch = 0 : i64, scratch_operands = 0 : i64, tpu.core_type = #tpu.core_type<tc>, window_params = [{transform_indices = @transform_0, window_bounds = array<i64: 1, 16, 64>}, {transform_indices = @transform_1, window_bounds = array<i64: 1, 32, 128>}, {transform_indices = @transform_2, window_bounds = array<i64: 1, 128, 32>}, {transform_indices = @transform_3, window_bounds = array<i64: 1, 16, 128>}, {pipeline_mode = #tpu.pipeline_mode<synchronous>, transform_indices = @transform_4, window_bounds = array<i64: 632, 128>}, {transform_indices = @transform_5, window_bounds = array<i64: 1, 8, 64>}, {transform_indices = @transform_6, window_bounds = array<i64: 1, 16, 128>}]} {
    %c0 = arith.constant 0 : index
    %c0_0 = arith.constant 0 : index
    %c0_1 = arith.constant 0 : index
    %0 = vector.load %arg1[%c0, %c0_0, %c0_1] : memref<1x16x64xf32, #tpu.memory_space<vmem>>, vector<1x16x64xf32>
    %1 = vector.shape_cast %0 : vector<1x16x64xf32> to vector<16x64xf32>
    %c0_2 = arith.constant 0 : index
    %c0_3 = arith.constant 0 : index
    %c0_4 = arith.constant 0 : index
    %2 = vector.load %arg2[%c0_2, %c0_3, %c0_4] : memref<1x32x128xf32, #tpu.memory_space<vmem>>, vector<1x32x128xf32>
    %3 = vector.shape_cast %2 : vector<1x32x128xf32> to vector<32x128xf32>
    %c0_5 = arith.constant 0 : index
    %c0_6 = arith.constant 0 : index
    %c0_7 = arith.constant 0 : index
    %4 = vector.load %arg3[%c0_5, %c0_6, %c0_7] : memref<1x128x32xf32, #tpu.memory_space<vmem>>, vector<1x128x32xf32>
    %5 = vector.shape_cast %4 : vector<1x128x32xf32> to vector<128x32xf32>
    %c0_8 = arith.constant 0 : index
    %c0_9 = arith.constant 0 : index
    %c0_10 = arith.constant 0 : index
    %6 = vector.load %arg4[%c0_8, %c0_9, %c0_10] : memref<1x16x128xf32, #tpu.memory_space<vmem>>, vector<1x16x128xf32>
    %7 = vector.shape_cast %6 : vector<1x16x128xf32> to vector<16x128xf32>
    %c0_11 = arith.constant 0 : index
    %c0_12 = arith.constant 0 : index
    %8 = vector.load %arg5[%c0_11, %c0_12] : memref<632x128xf32, #tpu.memory_space<vmem>>, vector<8x128xf32>
    %9 = vector.extract_strided_slice %8 {offsets = [0, 0], sizes = [1, 64], strides = [1, 1]} : vector<8x128xf32> to vector<1x64xf32>
    %10 = vector.extract_strided_slice %8 {offsets = [1, 0], sizes = [1, 64], strides = [1, 1]} : vector<8x128xf32> to vector<1x64xf32>
    %11 = vector.extract_strided_slice %8 {offsets = [2, 0], sizes = [1, 64], strides = [1, 1]} : vector<8x128xf32> to vector<1x64xf32>
    %12 = vector.extract_strided_slice %8 {offsets = [3, 0], sizes = [1, 64], strides = [1, 1]} : vector<8x128xf32> to vector<1x64xf32>
    %13 = vector.extract_strided_slice %8 {offsets = [4, 0], sizes = [1, 64], strides = [1, 1]} : vector<8x128xf32> to vector<1x64xf32>
    %c8 = arith.constant 8 : index
    %c0_13 = arith.constant 0 : index
    %14 = vector.load %arg5[%c8, %c0_13] : memref<632x128xf32, #tpu.memory_space<vmem>>, vector<64x64xf32>
    %c72 = arith.constant 72 : index
    %c0_14 = arith.constant 0 : index
    %15 = vector.load %arg5[%c72, %c0_14] : memref<632x128xf32, #tpu.memory_space<vmem>>, vector<64x32xf32>
    %c72_15 = arith.constant 72 : index
    %c32 = arith.constant 32 : index
    %16 = vector.load %arg5[%c72_15, %c32] : memref<632x128xf32, #tpu.memory_space<vmem>>, vector<64x1xf32>
    %c136 = arith.constant 136 : index
    %c0_16 = arith.constant 0 : index
    %17 = vector.load %arg5[%c136, %c0_16] : memref<632x128xf32, #tpu.memory_space<vmem>>, vector<64x128xf32>
    %c200 = arith.constant 200 : index
    %c0_17 = arith.constant 0 : index
    %18 = vector.load %arg5[%c200, %c0_17] : memref<632x128xf32, #tpu.memory_space<vmem>>, vector<32x64xf32>
    %c232 = arith.constant 232 : index
    %c0_18 = arith.constant 0 : index
    %19 = vector.load %arg5[%c232, %c0_18] : memref<632x128xf32, #tpu.memory_space<vmem>>, vector<128x64xf32>
    %c360 = arith.constant 360 : index
    %c0_19 = arith.constant 0 : index
    %20 = vector.load %arg5[%c360, %c0_19] : memref<632x128xf32, #tpu.memory_space<vmem>>, vector<64x64xf32>
    %c424 = arith.constant 424 : index
    %c0_20 = arith.constant 0 : index
    %21 = vector.load %arg5[%c424, %c0_20] : memref<632x128xf32, #tpu.memory_space<vmem>>, vector<128x128xf32>
    %c552 = arith.constant 552 : index
    %c0_21 = arith.constant 0 : index
    %22 = vector.load %arg5[%c552, %c0_21] : memref<632x128xf32, #tpu.memory_space<vmem>>, vector<64x64xf32>
    %c616 = arith.constant 616 : index
    %c0_22 = arith.constant 0 : index
    %23 = vector.load %arg5[%c616, %c0_22] : memref<632x128xf32, #tpu.memory_space<vmem>>, vector<8x16xf32>
    %c616_23 = arith.constant 616 : index
    %c16 = arith.constant 16 : index
    %24 = vector.load %arg5[%c616_23, %c16] : memref<632x128xf32, #tpu.memory_space<vmem>>, vector<8x1xf32>
    %c624 = arith.constant 624 : index
    %c0_24 = arith.constant 0 : index
    %25 = vector.load %arg5[%c624, %c0_24] : memref<632x128xf32, #tpu.memory_space<vmem>>, vector<8x8xf32>
    %c624_25 = arith.constant 624 : index
    %c8_26 = arith.constant 8 : index
    %26 = vector.load %arg5[%c624_25, %c8_26] : memref<632x128xf32, #tpu.memory_space<vmem>>, vector<8x1xf32>
    %cst = arith.constant dense<0.000000e+00> : vector<16x64xf32>
    %27 = tpu.matmul %1, %14, %cst {dimension_numbers = #tpu.dot_dimension_numbers<[1], [0], [0], [1], [0, 0, 1, 1], [], []>, precision = #tpu.contract_precision<fp32>} : vector<16x64xf32>, vector<64x64xf32>, vector<16x64xf32> -> vector<16x64xf32>
    %28 = vector.broadcast %9 : vector<1x64xf32> to vector<16x64xf32>
    %29 = arith.addf %27, %28 : vector<16x64xf32>
    %cst_27 = arith.constant dense<0.000000e+00> : vector<64x128xf32>
    %30 = tpu.matmul %15, %3, %cst_27 {dimension_numbers = #tpu.dot_dimension_numbers<[1], [0], [0], [1], [0, 0, 1, 1], [], []>, precision = #tpu.contract_precision<fp32>} : vector<64x32xf32>, vector<32x128xf32>, vector<64x128xf32> -> vector<64x128xf32>
    %31 = vector.broadcast %16 : vector<64x1xf32> to vector<64x128xf32>
    %32 = arith.addf %30, %31 : vector<64x128xf32>
    %33 = arith.mulf %17, %32 : vector<64x128xf32>
    %cst_28 = arith.constant dense<0.000000e+00> : vector<16x128xf32>
    %34 = tpu.matmul %29, %33, %cst_28 {dimension_numbers = #tpu.dot_dimension_numbers<[1], [0], [0], [1], [0, 0, 1, 1], [], []>, precision = #tpu.contract_precision<fp32>} : vector<16x64xf32>, vector<64x128xf32>, vector<16x128xf32> -> vector<16x128xf32>
    %35 = arith.addf %34, %7 : vector<16x128xf32>
    %cst_29 = arith.constant dense<0xFF800000> : vector<16xf32>
    %36 = vector.multi_reduction <maximumf>, %35, %cst_29 [1] : vector<16x128xf32> to vector<16xf32>
    %37 = vector.shape_cast %36 : vector<16xf32> to vector<16x1xf32>
    %38 = vector.broadcast %37 : vector<16x1xf32> to vector<16x128xf32>
    %39 = arith.subf %35, %38 : vector<16x128xf32>
    %40 = math.exp %39 : vector<16x128xf32>
    %cst_30 = arith.constant dense<0.000000e+00> : vector<16x128xf32>
    %41 = tpu.matmul %40, %21, %cst_30 {dimension_numbers = #tpu.dot_dimension_numbers<[1], [0], [0], [1], [0, 0, 1, 1], [], []>, precision = #tpu.contract_precision<fp32>} : vector<16x128xf32>, vector<128x128xf32>, vector<16x128xf32> -> vector<16x128xf32>
    %42 = arith.divf %40, %41 : vector<16x128xf32>
    %c0_31 = arith.constant 0 : index
    %c0_32 = arith.constant 0 : index
    %c0_33 = arith.constant 0 : index
    %43 = vector.load %arg7[%c0_31, %c0_32, %c0_33] : memref<1x16x128xf32, #tpu.memory_space<vmem>>, vector<1x16x128xf32>
    %44 = vector.shape_cast %43 : vector<1x16x128xf32> to vector<16x128xf32>
    %45 = vector.shape_cast %42 : vector<16x128xf32> to vector<1x16x128xf32>
    tpu.vector_store %arg7[%c0_31, %c0_32, %c0_33], %45 {strides = array<i32>} : memref<1x16x128xf32, #tpu.memory_space<vmem>>, vector<1x16x128xf32>,
    %cst_34 = arith.constant dense<0.000000e+00> : vector<128x64xf32>
    %46 = tpu.matmul %5, %18, %cst_34 {dimension_numbers = #tpu.dot_dimension_numbers<[1], [0], [0], [1], [0, 0, 1, 1], [], []>, precision = #tpu.contract_precision<fp32>} : vector<128x32xf32>, vector<32x64xf32>, vector<128x64xf32> -> vector<128x64xf32>
    %47 = vector.broadcast %13 : vector<1x64xf32> to vector<128x64xf32>
    %48 = arith.addf %46, %47 : vector<128x64xf32>
    %49 = arith.mulf %19, %48 : vector<128x64xf32>
    %cst_35 = arith.constant dense<0.000000e+00> : vector<16x64xf32>
    %50 = tpu.matmul %42, %49, %cst_35 {dimension_numbers = #tpu.dot_dimension_numbers<[1], [0], [0], [1], [0, 0, 1, 1], [], []>, precision = #tpu.contract_precision<fp32>} : vector<16x128xf32>, vector<128x64xf32>, vector<16x64xf32> -> vector<16x64xf32>
    %cst_36 = arith.constant dense<0.000000e+00> : vector<16x64xf32>
    %51 = tpu.matmul %50, %20, %cst_36 {dimension_numbers = #tpu.dot_dimension_numbers<[1], [0], [0], [1], [0, 0, 1, 1], [], []>, precision = #tpu.contract_precision<fp32>} : vector<16x64xf32>, vector<64x64xf32>, vector<16x64xf32> -> vector<16x64xf32>
    %52 = vector.broadcast %10 : vector<1x64xf32> to vector<16x64xf32>
    %53 = arith.addf %51, %52 : vector<16x64xf32>
    %54 = arith.addf %1, %53 : vector<16x64xf32>
    %cst_37 = arith.constant dense<0.000000e+00> : vector<16x64xf32>
    %55 = tpu.matmul %54, %22, %cst_37 {dimension_numbers = #tpu.dot_dimension_numbers<[1], [0], [0], [1], [0, 0, 1, 1], [], []>, precision = #tpu.contract_precision<fp32>} : vector<16x64xf32>, vector<64x64xf32>, vector<16x64xf32> -> vector<16x64xf32>
    %56 = arith.subf %54, %55 : vector<16x64xf32>
    %57 = arith.mulf %56, %56 : vector<16x64xf32>
    %cst_38 = arith.constant dense<0.000000e+00> : vector<16x64xf32>
    %58 = tpu.matmul %57, %22, %cst_38 {dimension_numbers = #tpu.dot_dimension_numbers<[1], [0], [0], [1], [0, 0, 1, 1], [], []>, precision = #tpu.contract_precision<fp32>} : vector<16x64xf32>, vector<64x64xf32>, vector<16x64xf32> -> vector<16x64xf32>
    %cst_39 = arith.constant 9.99999997E-7 : f32
    %59 = vector.broadcast %cst_39 : f32 to vector<16x64xf32>
    %60 = arith.addf %58, %59 : vector<16x64xf32>
    %61 = math.rsqrt %60 : vector<16x64xf32>
    %62 = arith.mulf %56, %61 : vector<16x64xf32>
    %63 = vector.broadcast %11 : vector<1x64xf32> to vector<16x64xf32>
    %64 = arith.mulf %62, %63 : vector<16x64xf32>
    %65 = vector.broadcast %12 : vector<1x64xf32> to vector<16x64xf32>
    %66 = arith.addf %64, %65 : vector<16x64xf32>
    %cst_40 = arith.constant dense<0.000000e+00> : vector<8x64xf32>
    %67 = tpu.matmul %23, %66, %cst_40 {dimension_numbers = #tpu.dot_dimension_numbers<[1], [0], [0], [1], [0, 0, 1, 1], [], []>, precision = #tpu.contract_precision<fp32>} : vector<8x16xf32>, vector<16x64xf32>, vector<8x64xf32> -> vector<8x64xf32>
    %68 = vector.broadcast %24 : vector<8x1xf32> to vector<8x64xf32>
    %69 = arith.addf %67, %68 : vector<8x64xf32>
    %70 = arith.mulf %69, %69 : vector<8x64xf32>
    %71 = arith.mulf %69, %70 : vector<8x64xf32>
    %cst_41 = arith.constant 4.471500e-02 : f32
    %72 = vector.broadcast %cst_41 : f32 to vector<8x64xf32>
    %73 = arith.mulf %72, %71 : vector<8x64xf32>
    %74 = arith.addf %69, %73 : vector<8x64xf32>
    %cst_42 = arith.constant 0.797884583 : f32
    %75 = vector.broadcast %cst_42 : f32 to vector<8x64xf32>
    %76 = arith.mulf %75, %74 : vector<8x64xf32>
    %77 = math.tanh %76 : vector<8x64xf32>
    %cst_43 = arith.constant 1.000000e+00 : f32
    %78 = vector.broadcast %cst_43 : f32 to vector<8x64xf32>
    %79 = arith.addf %78, %77 : vector<8x64xf32>
    %cst_44 = arith.constant 5.000000e-01 : f32
    %80 = vector.broadcast %cst_44 : f32 to vector<8x64xf32>
    %81 = arith.mulf %80, %79 : vector<8x64xf32>
    %82 = arith.mulf %69, %81 : vector<8x64xf32>
    %cst_45 = arith.constant dense<0.000000e+00> : vector<8x64xf32>
    %83 = tpu.matmul %25, %82, %cst_45 {dimension_numbers = #tpu.dot_dimension_numbers<[1], [0], [0], [1], [0, 0, 1, 1], [], []>, precision = #tpu.contract_precision<fp32>} : vector<8x8xf32>, vector<8x64xf32>, vector<8x64xf32> -> vector<8x64xf32>
    %84 = vector.broadcast %26 : vector<8x1xf32> to vector<8x64xf32>
    %85 = arith.addf %83, %84 : vector<8x64xf32>
    %c0_46 = arith.constant 0 : index
    %c0_47 = arith.constant 0 : index
    %c0_48 = arith.constant 0 : index
    %86 = vector.load %arg6[%c0_46, %c0_47, %c0_48] : memref<1x8x64xf32, #tpu.memory_space<vmem>>, vector<1x8x64xf32>
    %87 = vector.shape_cast %86 : vector<1x8x64xf32> to vector<8x64xf32>
    %88 = vector.shape_cast %85 : vector<8x64xf32> to vector<1x8x64xf32>
    tpu.vector_store %arg6[%c0_46, %c0_47, %c0_48], %88 {strides = array<i32>} : memref<1x8x64xf32, #tpu.memory_space<vmem>>, vector<1x8x64xf32>,
    return
  }
  func.func @transform_0(%arg0: i32) -> (i32, i32, i32) {
    %c0_i32 = arith.constant 0 : i32
    %c0_i32_0 = arith.constant 0 : i32
    %c0_i32_1 = arith.constant 0 : i32
    return %arg0, %c0_i32, %c0_i32_0 : i32, i32, i32
  }
  func.func @transform_1(%arg0: i32) -> (i32, i32, i32) {
    %c0_i32 = arith.constant 0 : i32
    %c0_i32_0 = arith.constant 0 : i32
    %c0_i32_1 = arith.constant 0 : i32
    return %arg0, %c0_i32, %c0_i32_0 : i32, i32, i32
  }
  func.func @transform_2(%arg0: i32) -> (i32, i32, i32) {
    %c0_i32 = arith.constant 0 : i32
    %c0_i32_0 = arith.constant 0 : i32
    %c0_i32_1 = arith.constant 0 : i32
    return %arg0, %c0_i32, %c0_i32_0 : i32, i32, i32
  }
  func.func @transform_3(%arg0: i32) -> (i32, i32, i32) {
    %c0_i32 = arith.constant 0 : i32
    %c0_i32_0 = arith.constant 0 : i32
    %c0_i32_1 = arith.constant 0 : i32
    return %arg0, %c0_i32, %c0_i32_0 : i32, i32, i32
  }
  func.func @transform_4(%arg0: i32) -> (i32, i32) {
    %c0_i32 = arith.constant 0 : i32
    %c0_i32_0 = arith.constant 0 : i32
    %c0_i32_1 = arith.constant 0 : i32
    return %c0_i32, %c0_i32_0 : i32, i32
  }
  func.func @transform_5(%arg0: i32) -> (i32, i32, i32) {
    %c0_i32 = arith.constant 0 : i32
    %c0_i32_0 = arith.constant 0 : i32
    %c0_i32_1 = arith.constant 0 : i32
    return %arg0, %c0_i32, %c0_i32_0 : i32, i32, i32
  }
  func.func @transform_6(%arg0: i32) -> (i32, i32, i32) {
    %c0_i32 = arith.constant 0 : i32
    %c0_i32_0 = arith.constant 0 : i32
    %c0_i32_1 = arith.constant 0 : i32
    return %arg0, %c0_i32, %c0_i32_0 : i32, i32, i32
  }
}

</mosaic_0001>

<bundles_post_ra>
// kernel: tile.38
= control target key start
LH: loop header
LB: loop body
LE: loop exit
PB: predicated region body
PF: predicated region fallthrough
CT: control target
= control target key end

     0   :  { %s22_s0 = inlined_call_operand.vmem [shape: f32[32], index: 0, kind: input, shape index: {}]   ;;  %s23_s1 = inlined_call_operand.vmem [shape: f32[2,32], index: 1, kind: output, shape index: {}]  }
   0x1   :  { %v4_v0 = vld [vmem:[%s22_s0] ss:$0 sm:$0xff] }
   0x2   :  { %5 = vst [vmem:[%s23_s1] sm:$0x3] %v4_v0 }

// kernel: tile.69
= control target key start
LH: loop header
LB: loop body
LE: loop exit
PB: predicated region body
PF: predicated region fallthrough
CT: control target
= control target key end

     0   :  { %vm162_vm0 = vcmask 1047556   ;;  %s304_s10 = smov 32   ;;  %vm164_vm1 = vcmask 261120   ;;  %vm201_vm2 = vcmask 523520   ;;  %s451_s0 = inlined_call_operand.vmem [shape: f32[32,2,32], index: 0, kind: input, shape index: {}]   ;;  %s452_s1 = inlined_call_operand.vmem [shape: f32[32,64], index: 1, kind: output, shape index: {}]  }
   0x1   :  { %v290_v0 = vld [vmem:[%s451_s0 + $0xe] sm:$0x3]  ;;  %v291_v1 = vld [vmem:[%s451_s0 + $0xc] sm:$0x3]  ;;  %v292_v2 = vld [vmem:[%s451_s0 + $0xa] sm:$0x3] }
   0x2   :  { %128 = vst [vmem:[#allocation0 + $0x38] sm:$0x3] %v290_v0  ;;  %133 = vst [vmem:[#allocation0 + $0x30] sm:$0x3] %v291_v1  ;;  %v293_v3 = vld [vmem:[%s451_s0 + $0x8] sm:$0x3] }
   0x3   :  { %138 = vst [vmem:[#allocation0 + $0x28] sm:$0x3] %v292_v2  ;;  %v294_v4 = vld [vmem:[%s451_s0 + $0x6] sm:$0x3]  ;;  %v295_v5 = vld [vmem:[%s451_s0 + $0x4] sm:$0x3] }
   0x4   :  { %143 = vst [vmem:[#allocation0 + $0x20] sm:$0x3] %v293_v3  ;;  %148 = vst [vmem:[#allocation0 + $0x18] sm:$0x3] %v294_v4  ;;  %v296_v6 = vld [vmem:[%s451_s0 + $0x2] sm:$0x3] }
   0x5   :  { %153 = vst [vmem:[#allocation0 + $0x10] sm:$0x3] %v295_v5  ;;  %v158_v7 = vld [vmem:[%s451_s0] sm:$0x3]  ;;  %157 = vst [vmem:[#allocation0 + $0x8] sm:$0x3] %v296_v6 }
   0x6   :  { %159 = vst [vmem:[#allocation0] sm:$0x3] %v158_v7  ;;  %v274_v8 = vld [vmem:[%s451_s0 + $0x2e] sm:$0x3]  ;;  %v275_v9 = vld [vmem:[%s451_s0 + $0x2c] sm:$0x3] }
   0x7   :  { %v276_v10 = vld [vmem:[%s451_s0 + $0x2a] sm:$0x3]  ;;  %48 = vst [vmem:[#allocation0 + $0xb8] sm:$0x3] %v274_v8  ;;  %53 = vst [vmem:[#allocation0 + $0xb0] sm:$0x3] %v275_v9 }
   0x8   :  { %58 = vst [vmem:[#allocation0 + $0xa8] sm:$0x3] %v276_v10  ;;  %v277_v11 = vld [vmem:[%s451_s0 + $0x28] sm:$0x3]  ;;  %v278_v12 = vld [vmem:[%s451_s0 + $0x26] sm:$0x3] }
   0x9   :  { %v279_v13 = vld [vmem:[%s451_s0 + $0x24] sm:$0x3]  ;;  %63 = vst [vmem:[#allocation0 + $0xa0] sm:$0x3] %v277_v11  ;;  %68 = vst [vmem:[#allocation0 + $0x98] sm:$0x3] %v278_v12 }
   0xa   :  { %73 = vst [vmem:[#allocation0 + $0x90] sm:$0x3] %v279_v13  ;;  %v280_v14 = vld [vmem:[%s451_s0 + $0x22] sm:$0x3]  ;;  %v281_v15 = vld [vmem:[%s451_s0 + $0x20] sm:$0x3] }
   0xb   :  { %v282_v16 = vld [vmem:[%s451_s0 + $0x1e] sm:$0x3]  ;;  %78 = vst [vmem:[#allocation0 + $0x88] sm:$0x3] %v280_v14  ;;  %83 = vst [vmem:[#allocation0 + $0x80] sm:$0x3] %v281_v15 }
   0xc   :  { %88 = vst [vmem:[#allocation0 + $0x78] sm:$0x3] %v282_v16  ;;  %v283_v17 = vld [vmem:[%s451_s0 + $0x1c] sm:$0x3]  ;;  %v284_v18 = vld [vmem:[%s451_s0 + $0x1a] sm:$0x3] }
   0xd   :  { %v285_v19 = vld [vmem:[%s451_s0 + $0x18] sm:$0x3]  ;;  %93 = vst [vmem:[#allocation0 + $0x70] sm:$0x3] %v283_v17  ;;  %98 = vst [vmem:[#allocation0 + $0x68] sm:$0x3] %v284_v18 }
   0xe   :  { %103 = vst [vmem:[#allocation0 + $0x60] sm:$0x3] %v285_v19  ;;  %v286_v20 = vld [vmem:[%s451_s0 + $0x16] sm:$0x3]  ;;  %v287_v21 = vld [vmem:[%s451_s0 + $0x14] sm:$0x3] }
   0xf   :  { %v288_v22 = vld [vmem:[%s451_s0 + $0x12] sm:$0x3]  ;;  %108 = vst [vmem:[#allocation0 + $0x58] sm:$0x3] %v286_v20  ;;  %113 = vst [vmem:[#allocation0 + $0x50] sm:$0x3] %v287_v21 }
  0x10   :  { %118 = vst [vmem:[#allocation0 + $0x48] sm:$0x3] %v288_v22  ;;  %v289_v23 = vld [vmem:[%s451_s0 + $0x10] sm:$0x3]  ;;  %v266_v24 = vld [vmem:[%s451_s0 + $0x3e] sm:$0x3] }
  0x11   :  { %v267_v25 = vld [vmem:[%s451_s0 + $0x3c] sm:$0x3]  ;;  %v196_v26 = vld [vmem:[#allocation0 + $0x1] ss:$8 sm:$0xf0]  }
  0x12   :  { %123 = vst [vmem:[#allocation0 + $0x40] sm:$0x3] %v289_v23  ;;  %8 = vst [vmem:[#allocation0 + $0xf8] sm:$0x3] %v266_v24  ;;  %v268_v27 = vld [vmem:[%s451_s0 + $0x3a] sm:$0x3] }
  0x13   :  { %13 = vst [vmem:[#allocation0 + $0xf0] sm:$0x3] %v267_v25  ;;  %v194_v28 = vld [vmem:[#allocation0 + $0x1] ss:$8 sm:$0xf]  }
  0x14   :  { %18 = vst [vmem:[#allocation0 + $0xe8] sm:$0x3] %v268_v27  ;;  %v269_v29 = vld [vmem:[%s451_s0 + $0x38] sm:$0x3]  ;;  %v198_v30 = vsel %vm162_vm0, %v196_v26, %v194_v28  ;;  %v270_v31 = vld [vmem:[%s451_s0 + $0x36] sm:$0x3] }
  0x15   :  { %23 = vst [vmem:[#allocation0 + $0xe0] sm:$0x3] %v269_v29  ;;  %v271_v32 = vld [vmem:[%s451_s0 + $0x34] sm:$0x3]  ;;  %v272_v33 = vld [vmem:[%s451_s0 + $0x32] sm:$0x3]  ;;  %199 = vrot.lane.b32.xlu0 %v198_v30, %s304_s10 }
  0x16   :  { %v217_v34 = vld [vmem:[#allocation0 + $0x81] ss:$8 sm:$0xf0]   ;;  %28 = vst [vmem:[#allocation0 + $0xd8] sm:$0x3] %v270_v31 }
  0x17   :  { %33 = vst [vmem:[#allocation0 + $0xd0] sm:$0x3] %v271_v32  ;;  %38 = vst [vmem:[#allocation0 + $0xc8] sm:$0x3] %v272_v33  ;;  %v273_v35 = vld [vmem:[%s451_s0 + $0x30] sm:$0x3] }
  0x18   :  { %v215_v36 = vld [vmem:[#allocation0 + $0x81] ss:$8 sm:$0xf]   ;;  %43 = vst [vmem:[#allocation0 + $0xc0] sm:$0x3] %v273_v35 }
  0x19   :  { %v160_v37 = vld [vmem:[#allocation0] ss:$8 sm:$0xf]   ;;  %v219_v38 = vsel %vm162_vm0, %v217_v34, %v215_v36  ;;  %v206_v39 = vld [vmem:[#allocation0 + $0x41] ss:$8 sm:$0xf0]  }
  0x1a   :  { %v161_v40 = vld [vmem:[#allocation0] ss:$8 sm:$0xf0]   ;;  %220 = vrot.lane.b32.xlu1 %v219_v38, %s304_s10  ;;  %v204_v44 = vld [vmem:[#allocation0 + $0x41] ss:$8 sm:$0xf]  }
  0x1b   :  { %v163_v41 = vsel %vm162_vm0, %v161_v40, %v160_v37  ;;  %v176_v42 = vld [vmem:[#allocation0 + $0x80] ss:$8 sm:$0xf]   ;;  %v208_v47 = vsel %vm162_vm0, %v206_v39, %v204_v44 }
  0x1c   :  { %v178_v43 = vld [vmem:[#allocation0 + $0x80] ss:$8 sm:$0xf0]   ;;  %165 = vst.msk [vmem:[%s452_s1] sm:$0xff] %vm164_vm1, %v163_v41   ;;  %209 = vrot.lane.b32.xlu0 %v208_v47, %s304_s10 }
  0x1d   :  { %v180_v45 = vsel %vm162_vm0, %v178_v43, %v176_v42  ;;  %v167_v46 = vld [vmem:[#allocation0 + $0x40] ss:$8 sm:$0xf]   ;;  %v228_v49 = vld [vmem:[#allocation0 + $0xc1] ss:$8 sm:$0xf0]  }
  0x1e   :  { %298 = vst.msk [vmem:[%s452_s1 + $0x10] sm:$0xff] %vm164_vm1, %v180_v45   ;;  %v169_v48 = vld [vmem:[#allocation0 + $0x40] ss:$8 sm:$0xf0]  }
  0x1f   :  { %v171_v50 = vsel %vm162_vm0, %v169_v48, %v167_v46  ;;  %v187_v51 = vld [vmem:[#allocation0 + $0xc0] ss:$8 sm:$0xf0]   ;;  %v226_v52 = vld [vmem:[#allocation0 + $0xc1] ss:$8 sm:$0xf]  }
  0x20   :  { %297 = vst.msk [vmem:[%s452_s1 + $0x8] sm:$0xff] %vm164_vm1, %v171_v50   ;;  %v185_v53 = vld [vmem:[#allocation0 + $0xc0] ss:$8 sm:$0xf]   ;;  %v230_v54 = vsel %vm162_vm0, %v228_v49, %v226_v52 }
  0x21   :  { %v189_v55 = vsel %vm162_vm0, %v187_v51, %v185_v53  ;;  %231 = vrot.lane.b32.xlu1 %v230_v54, %s304_s10 }
  0x22   :  { %299 = vst.msk [vmem:[%s452_s1 + $0x18] sm:$0xff] %vm164_vm1, %v189_v55  }
  0x87   :  { %v200_v56 = vpop.permute.xlu0 %199  }
  0x88   :  { %202 = vst.msk [vmem:[%s452_s1] sm:$0xff] %vm201_vm2, %v200_v56  }
  0x8c   :  { %v221_v57 = vpop.permute.xlu1 %220  }
  0x8d   :  { %301 = vst.msk [vmem:[%s452_s1 + $0x10] sm:$0xff] %vm201_vm2, %v221_v57  }
  0x8e   :  { %v210_v58 = vpop.permute.xlu0 %209  }
  0x8f   :  { %300 = vst.msk [vmem:[%s452_s1 + $0x8] sm:$0xff] %vm201_vm2, %v210_v58  }
  0x93   :  { %v232_v59 = vpop.permute.xlu1 %231  }
  0x94   :  { %302 = vst.msk [vmem:[%s452_s1 + $0x18] sm:$0xff] %vm201_vm2, %v232_v59  }

// kernel: encoder_layer.1
= control target key start
LH: loop header
LB: loop body
LE: loop exit
PB: predicated region body
PF: predicated region fallthrough
CT: control target
= control target key end

     0   :  { %vm756_vm0 = vcmask 261120   ;;  %vm129_vm1 = vcmask 523264   ;;  %v10820_v3 = vmov 32   ;;  %vm10822_vm2 = vmmov 0   ;;  %s12887_s4 = inlined_call_operand.vmem [shape: f32[632,128], index: 4, kind: input, shape index: {}]   ;;  %s12888_s1 = inlined_call_operand.vmem [shape: f32[1,32,128], index: 1, kind: input, shape index: {}]   ;;  %s12889_s0 = inlined_call_operand.vmem [shape: f32[1,16,64], index: 0, kind: input, shape index: {}]   ;;  %s12890_s2 = inlined_call_operand.vmem [shape: f32[1,128,32], index: 2, kind: input, shape index: {}]   ;;  %s12891_s3 = inlined_call_operand.vmem [shape: f32[1,16,128], index: 3, kind: input, shape index: {}]   ;;  %s12892_s6 = inlined_call_operand.vmem [shape: f32[1,16,128], index: 6, kind: output, shape index: {1}]   ;;  %s12893_s5 = inlined_call_operand.vmem [shape: f32[1,8,64], index: 5, kind: output, shape index: {0}]  }
   0x1   :  { %v10864_v0 = vld [vmem:[%s12887_s4 + $0x8] sm:$0xff]  ;;  %v10869_v1 = vld [vmem:[%s12887_s4 + $0x10] sm:$0xff]  ;;  %v24_v2 = vld [vmem:[%s12888_s1] sm:$0xff]  ;;  %10797 = vset.pattern.permute.xlu0 %v10820_v3  ;;  %10798 = vset.pattern.permute.xlu1 %v10820_v3  ;;  %vm6524_vm3 = vcmask 130048   ;;  %vm7000_vm4 = vcmask 64512  }
   0x2   :  { %v137_v4 = vand.u32 4294901760, %v10864_v0  ;;  %v140_v5 = vand.u32 4294901760, %v10869_v1  ;;  %v25_v6 = vld [vmem:[%s12888_s1 + $0x8] sm:$0xff]  ;;  %v774_v7 = vand.u32 4294901760, %v24_v2  ;;  %v10882_v8 = vld [vmem:[%s12887_s4 + $0x18] sm:$0xff]  ;;  %v10887_v9 = vld [vmem:[%s12887_s4 + $0x20] sm:$0xff] }
   0x3   :  { %v777_v10 = vand.u32 4294901760, %v25_v6  ;;  %v143_v11 = vand.u32 4294901760, %v10882_v8  ;;  %v146_v12 = vand.u32 4294901760, %v10887_v9  ;;  %v10894_v13 = vld [vmem:[%s12888_s1 + $0x10] sm:$0xff]  ;;  %v10899_v14 = vld [vmem:[%s12888_s1 + $0x18] sm:$0xff]  ;;  %v55_v15 = vld [vmem:[%s12887_s4 + $0x48] sm:$0xff] }
   0x4   :  { %v10908_v16 = vpack.c.bf16 %v140_v5, %v137_v4  ;;  %v780_v17 = vand.u32 4294901760, %v10894_v13  ;;  %v783_v18 = vand.u32 4294901760, %v10899_v14  ;;  %v757_v19 = vsel %vm756_vm0, %v55_v15, 0  ;;  %v10916_v20 = vld [vmem:[%s12887_s4 + $0x28] sm:$0xff]  ;;  %v10921_v21 = vld [vmem:[%s12887_s4 + $0x30] sm:$0xff]  ;;  %718 = vperm.xlu0 %10797, %v55_v15   ;;  %v57_v27 = vld [vmem:[%s12887_s4 + $0x58] sm:$0xff] }
   0x5   :  { %v56_v22 = vld [vmem:[%s12887_s4 + $0x50] sm:$0xff]  ;;  %v10926_v23 = vpack.c.bf16 %v777_v10, %v774_v7  ;;  %v10932_v24 = vpack.c.bf16 %v146_v12, %v143_v11  ;;  %v10934_v25 = vand.u32 4294901760, %v757_v19  ;;  %v149_v26 = vand.u32 4294901760, %v10916_v20  ;;  %v10943_v28 = vld [vmem:[%s12887_s4 + $0x38] sm:$0xff]  ;;  %v10948_v29 = vld [vmem:[%s12887_s4 + $0x40] sm:$0xff]  ;;  %728 = vperm.xlu1 %10798, %v57_v27  }
   0x6   :  { %9571 = vmatprep.subr.bf16.mxu0 %v10908_v16  ;;  %v10955_v30 = vpack.c.bf16 %v783_v18, %v780_v17  ;;  %v152_v31 = vand.u32 4294901760, %v10921_v21  ;;  %v759_v32 = vsel %vm756_vm0, %v56_v22, 0  ;;  %v761_v33 = vsel %vm756_vm0, %v57_v27, 0  ;;  %v58_v34 = vld [vmem:[%s12887_s4 + $0x60] sm:$0xff]  ;;  %v59_v39 = vld [vmem:[%s12887_s4 + $0x68] sm:$0xff]  ;;  %v60_v3 = vld [vmem:[%s12887_s4 + $0x70] sm:$0xff] }
   0x7   :  { %9667 = vmatprep.subr.bf16.mxu1 %v10926_v23  ;;  %9573 = vmatpush3.bf16.msra.mxu0 %v10908_v16  ;;  %v10966_v35 = vsub.f32 %v757_v19, %v10934_v25  ;;  %v10968_v36 = vand.u32 4294901760, %v759_v32  ;;  %v10970_v37 = vand.u32 4294901760, %v761_v33  ;;  %v155_v38 = vand.u32 4294901760, %v10943_v28  ;;  %v22_v48 = vld [vmem:[%s12889_s0] sm:$0xff]  ;;  %v23_v15 = vld [vmem:[%s12889_s0 + $0x8] sm:$0xff] }
   0x8   :  { %9669 = vmatpush3.bf16.msra.mxu1 %v10926_v23  ;;  %9575 = vmatprep.subr.bf16.mxu0 %v10932_v24  ;;  %v10982_v40 = vpack.c.bf16 %v152_v31, %v149_v26  ;;  %v158_v41 = vand.u32 4294901760, %v10948_v29  ;;  %v763_v42 = vsel %vm756_vm0, %v58_v34, 0  ;;  %v10986_v43 = vsub.f32 %v24_v2, %v774_v7 }
   0x9   :  { %9671 = vmatprep.subr.bf16.mxu1 %v10955_v30  ;;  %v844_v44 = vand.u32 4294901760, %v10966_v35  ;;  %v10991_v45 = vsub.f32 %v759_v32, %v10968_v36  ;;  %v10994_v46 = vsub.f32 %v761_v33, %v10970_v37  ;;  %v10996_v47 = vand.u32 4294901760, %v763_v42  ;;  %723 = vperm.xlu0 %10797, %v56_v22  }
   0xa   :  { %v11005_v49 = vpack.c.bf16 %v158_v41, %v155_v38  ;;  %v925_v50 = vand.u32 4294901760, %v10986_v43  ;;  %v11008_v51 = vsub.f32 %v25_v6, %v777_v10  ;;  %v765_v52 = vsel %vm756_vm0, %v59_v39, 0  ;;  %733 = vperm.xlu1 %10798, %v58_v34  }
   0xb   :  { %9577 = vmatpush3.bf16.msra.mxu0 %v10932_v24  ;;  %v845_v53 = vsub.f32 %v10966_v35, %v844_v44  ;;  %v12903_v54 = vand.u32 4294901760, %v10991_v45  ;;  %v12901_v55 = vand.u32 4294901760, %v10994_v46  ;;  %v11018_v56 = vsub.f32 %v763_v42, %v10996_v47 }
   0xc   :  { %9673 = vmatpush3.bf16.msra.mxu1 %v10955_v30  ;;  %9579 = vmatprep.subr.bf16.mxu0 %v10982_v40  ;;  %v926_v57 = vsub.f32 %v10986_v43, %v925_v50  ;;  %v932_v58 = vand.u32 4294901760, %v11008_v51  ;;  %v11026_v59 = vand.u32 4294901760, %v765_v52  ;;  %v131_v60 = vsel %vm129_vm1, %v22_v48, 0 }
   0xd   :  { %v846_v61 = vand.u32 4294901760, %v845_v53  ;;  %v855_v62 = vsub.f32 %v10991_v45, %v12903_v54  ;;  %v865_v63 = vsub.f32 %v10994_v46, %v12901_v55  ;;  %v12895_v2 = vand.u32 4294901760, %v11018_v56  ;;  %738 = vperm.xlu0 %10797, %v59_v39  }
   0xe   :  { %v927_v6 = vand.u32 4294901760, %v926_v57  ;;  %v933_v7 = vsub.f32 %v11008_v51, %v932_v58  ;;  %v11043_v10 = vsub.f32 %v765_v52, %v11026_v59  ;;  %v11048_v19 = vand.u32 4294901760, %v131_v60  ;;  %743 = vperm.xlu1 %10798, %v60_v3   ;;  %v61_v52 = vld [vmem:[%s12887_s4 + $0x78] sm:$0xff] }
   0xf   :  { %8318 = vmatprep.mubr.f32.mxu1 %v846_v61  ;;  %v856_v22 = vand.u32 4294901760, %v855_v62  ;;  %9581 = vmatpush3.bf16.msra.mxu0 %v10982_v40  ;;  %v866_v27 = vand.u32 4294901760, %v865_v63  ;;  %v875_v32 = vsub.f32 %v11018_v56, %v12895_v2  ;;  %v11057_v33 = vsub.f32 %v10864_v0, %v137_v4 }
  0x10   :  { %9583 = vmatprep.subr.bf16.mxu0 %v11005_v49  ;;  %v934_v34 = vand.u32 4294901760, %v933_v7  ;;  %v12894_v39 = vand.u32 4294901760, %v11043_v10  ;;  %v11062_v42 = vsub.f32 %v131_v60, %v11048_v19  ;;  %v11067_v48 = vsub.f32 %v10869_v1, %v140_v5  ;;  %v62_v60 = vld [vmem:[%s12887_s4 + $0x80] sm:$0xff] }
  0x11   :  { %8319 = vmatmul.mubr.f32.vlgmr.msra.gmra.mrb[0].mxu1 %v856_v22  ;;  %v876_v0 = vand.u32 4294901760, %v875_v32  ;;  %v12896_v4 = vand.u32 4294901760, %v11057_v33  ;;  %v767_v53 = vsel %vm756_vm0, %v60_v3, 0  ;;  %v134_v57 = vsel %vm129_vm1, %v23_v15, 0  ;;  %748 = vperm.xlu0 %10797, %v61_v52  }
  0x12   :  { %8321 = vmatprep.mubr.f32.mxu1 %v866_v27  ;;  %v9674_v1 = vpack.c.bf16 %v934_v34, %v927_v6  ;;  %v885_v5 = vsub.f32 %v11043_v10, %v12894_v39  ;;  %v211_v61 = vand.u32 4294901760, %v11062_v42  ;;  %v12897_v62 = vand.u32 4294901760, %v11067_v48  ;;  %753 = vperm.xlu1 %10798, %v62_v60  }
  0x13   :  { %9585 = vmatpush3.bf16.msra.mxu0 %v11005_v49  ;;  %v233_v63 = vsub.f32 %v11057_v33, %v12896_v4  ;;  %v11087_v3 = vand.u32 4294901760, %v767_v53  ;;  %v11089_v7 = vand.u32 4294901760, %v134_v57  ;;  %v769_v6 = vsel %vm756_vm0, %v61_v52, 0 }
  0x14   :  { %9675 = vmatprep.subr.bf16.mxu1 %v9674_v1  ;;  %v886_v15 = vand.u32 4294901760, %v885_v5  ;;  %v212_v22 = vsub.f32 %v11062_v42, %v211_v61  ;;  %v240_v27 = vsub.f32 %v11067_v48, %v12897_v62  ;;  %v11098_v32 = vand.u32 4294901760, %v769_v6 }
  0x15   :  { %8322 = vmatmul.mubr.f32.gmra.mrb[2].mxu1 %v876_v0  ;;  %v234_v34 = vand.u32 4294901760, %v233_v63  ;;  %v11101_v39 = vsub.f32 %v767_v53, %v11087_v3  ;;  %v11104_v2 = vsub.f32 %v134_v57, %v11089_v7  ;;  %v11109_v52 = vsub.f32 %v10882_v8, %v143_v11 }
  0x16   :  { %9677 = vmatpush3.bf16.msra.mxu1 %v9674_v1  ;;  %8324 = vmatprep.mubr.f32.mxu1 %v886_v15  ;;  %v213_v5 = vand.u32 4294901760, %v212_v22  ;;  %v241_v4 = vand.u32 4294901760, %v240_v27  ;;  %v11112_v62 = vsub.f32 %v769_v6, %v11098_v32  ;;  %v11117_v0 = vsub.f32 %v10887_v9, %v146_v12 }
  0x17   :  { %v12898_v53 = vand.u32 4294901760, %v11101_v39  ;;  %v12899_v57 = vand.u32 4294901760, %v11104_v2  ;;  %v12900_v63 = vand.u32 4294901760, %v11109_v52  ;;  %v771_v8 = vsel %vm756_vm0, %v62_v60, 0 }
  0x18   :  { %8212 = vmatprep.mubr.f32.mxu0 %v213_v5  ;;  %v9586_v11 = vpack.c.bf16 %v241_v4, %v234_v34  ;;  %v12902_v1 = vand.u32 4294901760, %v11112_v62  ;;  %v253_v6 = vand.u32 4294901760, %v11117_v0  ;;  %v11125_v15 = vand.u32 4294901760, %v771_v8 }
  0x19   :  { %v895_v9 = vsub.f32 %v11101_v39, %v12898_v53  ;;  %v222_v12 = vsub.f32 %v11104_v2, %v12899_v57  ;;  %v247_v60 = vsub.f32 %v11109_v52, %v12900_v63  ;;  %v11139_v4 = vsub.f32 %v10894_v13, %v780_v17 }
  0x1a   :  { %9587 = vmatprep.subr.bf16.mxu0 %v9586_v11  ;;  %v905_v22 = vsub.f32 %v11112_v62, %v12902_v1  ;;  %v254_v27 = vsub.f32 %v11117_v0, %v253_v6  ;;  %v11148_v34 = vsub.f32 %v771_v8, %v11125_v15  ;;  %v11153_v5 = vsub.f32 %v10899_v14, %v783_v18 }
  0x1b   :  { %v896_v53 = vand.u32 4294901760, %v895_v9  ;;  %v223_v13 = vand.u32 4294901760, %v222_v12  ;;  %v248_v17 = vand.u32 4294901760, %v247_v60  ;;  %v939_v57 = vand.u32 4294901760, %v11139_v4 }
  0x1c   :  { %v906_v63 = vand.u32 4294901760, %v905_v22  ;;  %v255_v55 = vand.u32 4294901760, %v254_v27  ;;  %v914_v1 = vand.u32 4294901760, %v11148_v34  ;;  %v946_v54 = vand.u32 4294901760, %v11153_v5 }
  0x1d   :  { %8325 = vmatmul.mubr.f32.gmra.mrb[4].mxu1 %v896_v53  ;;  %8213 = vmatmul.mubr.f32.vlgmr.msra.gmra.mrb[0].mxu0 %v223_v13  ;;  %v940_v8 = vsub.f32 %v11139_v4, %v939_v57  ;;  %v11164_v14 = vsub.f32 %v10916_v20, %v149_v26  ;;  %v11169_v18 = vsub.f32 %v10921_v21, %v152_v31 }
  0x1e   :  { %9589 = vmatpush3.bf16.msra.mxu0 %v9586_v11  ;;  %8327 = vmatprep.mubr.f32.mxu1 %v906_v63  ;;  %v9590_v9 = vpack.c.bf16 %v255_v55, %v248_v17  ;;  %v915_v53 = vsub.f32 %v11148_v34, %v914_v1  ;;  %v947_v12 = vsub.f32 %v11153_v5, %v946_v54 }
  0x1f   :  { %v941_v60 = vand.u32 4294901760, %v940_v8  ;;  %v260_v20 = vand.u32 4294901760, %v11164_v14  ;;  %v267_v26 = vand.u32 4294901760, %v11169_v18  ;;  %v11182_v21 = vsub.f32 %v10943_v28, %v155_v38  ;;  %8231 = vmatprep.mubr.f32.mxu0 %v11048_v19 }
  0x20   :  { %9591 = vmatprep.subr.bf16.mxu0 %v9590_v9  ;;  %v916_v31 = vand.u32 4294901760, %v915_v53  ;;  %v948_v55 = vand.u32 4294901760, %v947_v12  ;;  %v11188_v63 = vsub.f32 %v10948_v29, %v158_v41  ;;  %v9682_v13 = vpack.c.bf16 %v11008_v51, %v10986_v43 }
  0x21   :  { %v261_v11 = vsub.f32 %v11164_v14, %v260_v20  ;;  %v268_v22 = vsub.f32 %v11169_v18, %v267_v26  ;;  %v274_v28 = vand.u32 4294901760, %v11182_v21  ;;  %v9702_v43 = vpack.c.bf16 %v946_v54, %v939_v57 }
  0x22   :  { %8328 = vmatmul.mubr.f32.gmra.mrb[6].mxu1 %v916_v31  ;;  %v9678_v38 = vpack.c.bf16 %v948_v55, %v941_v60  ;;  %9593 = vmatpush3.bf16.msra.mxu0 %v9590_v9  ;;  %v281_v27 = vand.u32 4294901760, %v11188_v63  ;;  %v9686_v60 = vpack.c.bf16 %v11153_v5, %v11139_v4  ;;  %v9602_v55 = vpack.c.bf16 %v11067_v48, %v11057_v33 }
  0x23   :  { %8338 = vmatprep.mubr.f32.mxu1 %v10934_v25  ;;  %v262_v29 = vand.u32 4294901760, %v261_v11  ;;  %v269_v41 = vand.u32 4294901760, %v268_v22  ;;  %v275_v17 = vsub.f32 %v11182_v21, %v274_v28  ;;  %v9606_v11 = vpack.c.bf16 %v11117_v0, %v11109_v52 }
  0x24   :  { %9679 = vmatprep.subr.bf16.mxu1 %v9678_v38  ;;  %v282_v8 = vsub.f32 %v11188_v63, %v281_v27  ;;  %v9610_v22 = vpack.c.bf16 %v11169_v18, %v11164_v14  ;;  %v12941_v51 = vand.u32 4294901760, %v10994_v46 }
  0x25   :  { %9681 = vmatpush3.bf16.msra.mxu1 %v9678_v38  ;;  %v9594_v9 = vpack.c.bf16 %v269_v41, %v262_v29  ;;  %v276_v53 = vand.u32 4294901760, %v275_v17  ;;  %v9614_v38 = vpack.c.bf16 %v11188_v63, %v11182_v21 }
  0x26   :  { %v283_v12 = vand.u32 4294901760, %v282_v8  ;;  %9683 = vmatprep.subr.bf16.mxu1 %v9682_v13 }
  0x27   :  { %9595 = vmatprep.subr.bf16.mxu0 %v9594_v9 }
  0x28   :  { %8339 = vmatmul.mubr.f32.vlgmr.msra.gmra.mrb[0].mxu1 %v10968_v36  ;;  %9597 = vmatpush3.bf16.msra.mxu0 %v9594_v9  ;;  %v9598_v31 = vpack.c.bf16 %v283_v12, %v276_v53  ;;  %v67_v53 = vld [vmem:[%s12887_s4 + $0xa8] sm:$0xff] }
  0x29   :  { %8341 = vmatprep.mubr.f32.mxu1 %v10970_v37  ;;  %9685 = vmatpush3.bf16.msra.mxu1 %v9682_v13  ;;  %v9698_v13 = vpack.c.bf16 %v932_v58, %v925_v50  ;;  %v12940_v50 = vand.u32 4294901760, %v10991_v45 }
  0x2a   :  { %9599 = vmatprep.subr.bf16.mxu0 %v9598_v31  ;;  %9687 = vmatprep.subr.bf16.mxu1 %v9686_v60 }
  0x2c   :  { %8342 = vmatmul.mubr.f32.gmra.mrb[2].mxu1 %v10996_v47  ;;  %9601 = vmatpush3.bf16.msra.mxu0 %v9598_v31 }
  0x2d   :  { %8344 = vmatprep.mubr.f32.mxu1 %v11026_v59  ;;  %9603 = vmatprep.subr.bf16.mxu0 %v9602_v55 }
  0x2e   :  { %9689 = vmatpush3.bf16.msra.mxu1 %v9686_v60 }
  0x2f   :  { %8232 = vmatmul.mubr.f32.vlgmr.msra.gmra.mrb[0].mxu0 %v11089_v7  ;;  %9691 = vmatprep.subr.bf16.mxu1 %v10926_v23 }
  0x30   :  { %8345 = vmatmul.mubr.f32.gmra.mrb[4].mxu1 %v11087_v3  ;;  %9605 = vmatpush3.bf16.msra.mxu0 %v9602_v55 }
  0x31   :  { %8347 = vmatprep.mubr.f32.mxu1 %v11098_v32  ;;  %9607 = vmatprep.subr.bf16.mxu0 %v9606_v11 }
  0x32   :  { %8250 = vmatprep.mubr.f32.mxu0 %v11062_v42  ;;  %v12944_v42 = vand.u32 4294901760, %v11018_v56 }
  0x34   :  { %8348 = vmatmul.mubr.f32.gmra.mrb[6].mxu1 %v11125_v15  ;;  %9609 = vmatpush3.bf16.msra.mxu0 %v9606_v11 }
  0x35   :  { %8358 = vmatprep.mubr.f32.mxu1 %v10966_v35  ;;  %9611 = vmatprep.subr.bf16.mxu0 %v9610_v22  ;;  %v12942_v35 = vand.u32 4294901760, %v11057_v33  ;;  %v12947_v33 = vand.u32 4294901760, %v11104_v2 }
  0x38   :  { %8359 = vmatmul.mubr.f32.vlgmr.msra.gmra.mrb[0].mxu1 %v10991_v45  ;;  %9613 = vmatpush3.bf16.msra.mxu0 %v9610_v22  ;;  %v12945_v45 = vand.u32 4294901760, %v11043_v10 }
  0x39   :  { %8361 = vmatprep.mubr.f32.mxu1 %v10994_v46  ;;  %9615 = vmatprep.subr.bf16.mxu0 %v9614_v38  ;;  %v12946_v46 = vand.u32 4294901760, %v11109_v52 }
  0x3a   :  { %9693 = vmatpush3.bf16.msra.mxu1 %v10926_v23 }
  0x3b   :  { %9695 = vmatprep.subr.bf16.mxu1 %v10955_v30  ;;  %v9638_v54 = vpack.c.bf16 %v253_v6, %v12946_v46 }
  0x3c   :  { %8362 = vmatmul.mubr.f32.gmra.mrb[2].mxu1 %v11018_v56  ;;  %9617 = vmatpush3.bf16.msra.mxu0 %v9614_v38  ;;  %v12948_v56 = vand.u32 4294901760, %v11101_v39 }
  0x3d   :  { %8364 = vmatprep.mubr.f32.mxu1 %v11043_v10  ;;  %9619 = vmatprep.subr.bf16.mxu0 %v10908_v16  ;;  %v9642_v10 = vpack.c.bf16 %v267_v26, %v260_v20 }
  0x3e   :  { %9697 = vmatpush3.bf16.msra.mxu1 %v10955_v30 }
  0x3f   :  { %8251 = vmatmul.mubr.f32.vlgmr.msra.gmra.mrb[0].mxu0 %v11104_v2  ;;  %9699 = vmatprep.subr.bf16.mxu1 %v9698_v13  ;;  %v9646_v2 = vpack.c.bf16 %v281_v27, %v274_v28  ;;  %v68_v27 = vld [vmem:[%s12887_s4 + $0xb0] sm:$0xff] }
  0x40   :  { %8365 = vmatmul.mubr.f32.gmra.mrb[4].mxu1 %v11101_v39  ;;  %9621 = vmatpush3.bf16.msra.mxu0 %v10908_v16  ;;  %v46_v39 = vld [vmem:[%s12887_s4] sm:$0xff] }
  0x41   :  { %8367 = vmatprep.mubr.f32.mxu1 %v11112_v62  ;;  %9623 = vmatprep.subr.bf16.mxu0 %v10932_v24 }
  0x42   :  { %8269 = vmatprep.mubr.f32.mxu0 %v211_v61 }
  0x44   :  { %8368 = vmatmul.mubr.f32.gmra.mrb[6].mxu1 %v11148_v34  ;;  %9625 = vmatpush3.bf16.msra.mxu0 %v10932_v24 }
  0x45   :  { %8378 = vmatprep.mubr.f32.mxu1 %v844_v44  ;;  %9627 = vmatprep.subr.bf16.mxu0 %v10982_v40  ;;  %v12943_v44 = vand.u32 4294901760, %v11067_v48  ;;  %v12949_v48 = vand.u32 4294901760, %v11112_v62 }
  0x47   :  { %v9634_v58 = vpack.c.bf16 %v12943_v44, %v12942_v35 }
  0x48   :  { %8379 = vmatmul.mubr.f32.vlgmr.msra.gmra.mrb[0].mxu1 %v12940_v50  ;;  %9629 = vmatpush3.bf16.msra.mxu0 %v10982_v40 }
  0x49   :  { %8381 = vmatprep.mubr.f32.mxu1 %v12941_v51  ;;  %9631 = vmatprep.subr.bf16.mxu0 %v11005_v49 }
  0x4a   :  { %9701 = vmatpush3.bf16.msra.mxu1 %v9698_v13 }
  0x4b   :  { %9703 = vmatprep.subr.bf16.mxu1 %v9702_v43 }
  0x4c   :  { %8382 = vmatmul.mubr.f32.gmra.mrb[2].mxu1 %v12944_v42  ;;  %9633 = vmatpush3.bf16.msra.mxu0 %v11005_v49 }
  0x4d   :  { %8384 = vmatprep.mubr.f32.mxu1 %v12945_v45  ;;  %9635 = vmatprep.subr.bf16.mxu0 %v9634_v58  ;;  %v70_v45 = vld [vmem:[%s12887_s4 + $0xc0] sm:$0xff] }
  0x4e   :  { %9705 = vmatpush3.bf16.msra.mxu1 %v9702_v43 }
  0x4f   :  { %8270 = vmatmul.mubr.f32.vlgmr.msra.gmra.mrb[0].mxu0 %v12947_v33  ;;  %9707 = vmatprep.subr.bf16.mxu1 %v10926_v23 }
  0x50   :  { %8385 = vmatmul.mubr.f32.gmra.mrb[4].mxu1 %v12948_v56  ;;  %9637 = vmatpush3.bf16.msra.mxu0 %v9634_v58 }
  0x51   :  { %8387 = vmatprep.mubr.f32.mxu1 %v12949_v48  ;;  %9639 = vmatprep.subr.bf16.mxu0 %v9638_v54 }
  0x52   :  { %8288 = vmatprep.mubr.f32.mxu0 %v11048_v19 }
  0x54   :  { %8388 = vmatmul.mubr.f32.gmra.mrb[6].mxu1 %v914_v1  ;;  %9641 = vmatpush3.bf16.msra.mxu0 %v9638_v54  ;;  %v65_v1 = vld [vmem:[%s12887_s4 + $0x98] sm:$0xff] }
  0x55   :  { %8398 = vmatprep.mubr.f32.mxu1 %v10934_v25  ;;  %9643 = vmatprep.subr.bf16.mxu0 %v9642_v10 }
  0x58   :  { %8399 = vmatmul.mubr.f32.vlgmr.msra.gmra.mrb[0].mxu1 %v10968_v36  ;;  %9645 = vmatpush3.bf16.msra.mxu0 %v9642_v10  ;;  %v69_v10 = vld [vmem:[%s12887_s4 + $0xb8] sm:$0xff] }
  0x59   :  { %8401 = vmatprep.mubr.f32.mxu1 %v10970_v37  ;;  %9647 = vmatprep.subr.bf16.mxu0 %v9646_v2 }
  0x5a   :  { %9709 = vmatpush3.bf16.msra.mxu1 %v10926_v23 }
  0x5b   :  { %9711 = vmatprep.subr.bf16.mxu1 %v10955_v30 }
  0x5c   :  { %8402 = vmatmul.mubr.f32.gmra.mrb[2].mxu1 %v10996_v47  ;;  %9649 = vmatpush3.bf16.msra.mxu0 %v9646_v2 }
  0x5d   :  { %8404 = vmatprep.mubr.f32.mxu1 %v11026_v59  ;;  %9651 = vmatprep.subr.bf16.mxu0 %v10908_v16 }
  0x5e   :  { %9713 = vmatpush3.bf16.msra.mxu1 %v10955_v30 }
  0x5f   :  { %8289 = vmatmul.mubr.f32.vlgmr.msra.gmra.mrb[0].mxu0 %v11089_v7 }
  0x60   :  { %8405 = vmatmul.mubr.f32.gmra.mrb[4].mxu1 %v11087_v3  ;;  %9653 = vmatpush3.bf16.msra.mxu0 %v10908_v16  ;;  %v125_v16 = vlaneseq }
  0x61   :  { %8407 = vmatprep.mubr.f32.mxu1 %v11098_v32  ;;  %9655 = vmatprep.subr.bf16.mxu0 %v10932_v24 }
  0x62   :  { %8307 = vmatprep.mubr.f32.mxu0 %v11048_v19 }
  0x64   :  { %8408 = vmatmul.mubr.f32.gmra.mrb[6].mxu1 %v11125_v15  ;;  %9657 = vmatpush3.bf16.msra.mxu0 %v10932_v24 }
  0x65   :  { %8418 = vmatprep.mubr.f32.mxu1 %v10934_v25  ;;  %9659 = vmatprep.subr.bf16.mxu0 %v10982_v40  ;;  %v11323_v25 = vshrl.u32 %v125_v16, 7 }
  0x67   :  { %12950 = vst [vmem:[#allocation2_spill] sm:$0xff] %v11323_v25 }
  0x68   :  { %8419 = vmatmul.mubr.f32.vlgmr.msra.gmra.mrb[0].mxu1 %v10968_v36  ;;  %9661 = vmatpush3.bf16.msra.mxu0 %v10982_v40 }
  0x69   :  { %8421 = vmatprep.mubr.f32.mxu1 %v10970_v37  ;;  %9663 = vmatprep.subr.bf16.mxu0 %v11005_v49  ;;  %v64_v37 = vld [vmem:[%s12887_s4 + $0x90] sm:$0xff] }
  0x6c   :  { %8422 = vmatmul.mubr.f32.gmra.mrb[2].mxu1 %v10996_v47  ;;  %9665 = vmatpush3.bf16.msra.mxu0 %v11005_v49  ;;  %v127_v47 = vsub.s32 0, %v11323_v25 }
  0x6d   :  { %8424 = vmatprep.mubr.f32.mxu1 %v11026_v59  ;;  %v63_v59 = vld [vmem:[%s12887_s4 + $0x88] sm:$0xff] }
  0x6e   :  { %v128_v52 = vrot.slane %v46_v39, %v127_v47 }
  0x6f   :  { %8308 = vmatmul.mubr.f32.vlgmr.msra.gmra.mrb[0].mxu0 %v11089_v7  ;;  %v66_v7 = vld [vmem:[%s12887_s4 + $0xa0] sm:$0xff] }
  0x70   :  { %8425 = vmatmul.mubr.f32.gmra.mrb[4].mxu1 %v11087_v3 }
  0x71   :  { %8427 = vmatprep.mubr.f32.mxu1 %v11098_v32 }
  0x74   :  { %8428 = vmatmul.mubr.f32.gmra.mrb[6].mxu1 %v11125_v15 }
  0x83   :  { %v719_v23 = vpop.permute.xlu0 %718 }
  0x84   :  { %v729_v24 = vpop.permute.xlu1 %728 }
  0x88   :  { %v724_v30 = vpop.permute.xlu0 %723 }
  0x89   :  { %v734_v36 = vpop.permute.xlu1 %733 }
  0x8c   :  { %v739_v5 = vpop.permute.xlu0 %738 }
  0x8d   :  { %v744_v15 = vpop.permute.xlu1 %743 }
  0x90   :  { %v749_v54 = vpop.permute.xlu0 %748 }
  0x91   :  { %v754_v51 = vpop.permute.xlu1 %753 }
 0x13b   :  { %v8420_v40 = vpop.f32.mrb[0].mxu1 }
 0x13c   :  { %v10550_v49 = vadd.f32 %v8420_v40, %v724_v30  ;;  %v1513_v19 = vpop.f32.mrb[1].mxu1 }
 0x13d   :  { %v10551_v61 = vadd.f32 %v1513_v19, %v719_v23 }
 0x13e   :  { %v1560_v62 = vmul.f32 %v10550_v49, %v64_v37 }
 0x13f   :  { %v1559_v3 = vmul.f32 %v10551_v61, %v63_v59  ;;  %v8423_v32 = vpop.f32.mrb[2].mxu1 }
 0x140   :  { %v1577_v0 = vand.u32 4294901760, %v1560_v62  ;;  %v10552_v57 = vadd.f32 %v8423_v32, %v734_v36  ;;  %v1525_v6 = vpop.f32.mrb[3].mxu1 }
 0x141   :  { %v1574_v4 = vand.u32 4294901760, %v1559_v3  ;;  %v10553_v34 = vadd.f32 %v1525_v6, %v729_v24 }
 0x142   :  { %v11341_v14 = vsub.f32 %v1560_v62, %v1577_v0  ;;  %v1562_v18 = vmul.f32 %v10552_v57, %v66_v7  ;;  %v8309_v20 = vpop.f32.mrb[0].mxu0 }
 0x143   :  { %v11343_v26 = vpack.c.bf16 %v1577_v0, %v1574_v4  ;;  %v11345_v21 = vsub.f32 %v1559_v3, %v1574_v4  ;;  %v1561_v63 = vmul.f32 %v10553_v34, %v65_v1  ;;  %v10548_v28 = vadd.f32 %v8309_v20, %v128_v52  ;;  %v8426_v29 = vpop.f32.mrb[4].mxu1  ;;  %v706_v41 = vpop.f32.mrb[1].mxu0 }
 0x144   :  { %v1583_v17 = vand.u32 4294901760, %v1562_v18  ;;  %v10554_v8 = vadd.f32 %v8426_v29, %v744_v15  ;;  %v10549_v9 = vadd.f32 %v706_v41, %v128_v52  ;;  %v1537_v12 = vpop.f32.mrb[5].mxu1  ;;  %v1676_v60 = vand.u32 4294901760, %v11341_v14 }
 0x145   :  { %v1580_v31 = vand.u32 4294901760, %v1561_v63  ;;  %v1571_v55 = vsel %vm129_vm1, %v10548_v28, 0  ;;  %v10555_v11 = vadd.f32 %v1537_v12, %v739_v5  ;;  %9715 = vmatprep.subr.bf16.mxu1 %v11343_v26  ;;  %v1669_v22 = vand.u32 4294901760, %v11345_v21 }
 0x146   :  { %v11357_v38 = vsub.f32 %v1562_v18, %v1583_v17  ;;  %v11359_v13 = vand.u32 4294901760, %v1571_v55  ;;  %v1564_v43 = vmul.f32 %v10554_v8, %v68_v27  ;;  %v1568_v50 = vsel %vm129_vm1, %v10549_v9, 0  ;;  %9717 = vmatpush3.bf16.msra.mxu1 %v11343_v26 }
 0x147   :  { %v11363_v35 = vpack.c.bf16 %v1583_v17, %v1580_v31  ;;  %v11365_v44 = vsub.f32 %v1561_v63, %v1580_v31  ;;  %v11367_v58 = vand.u32 4294901760, %v1568_v50  ;;  %v1563_v42 = vmul.f32 %v10555_v11, %v67_v53  ;;  %v8429_v46 = vpop.f32.mrb[6].mxu1 }
 0x148   :  { %v11373_v33 = vsub.f32 %v1571_v55, %v11359_v13  ;;  %v1589_v56 = vand.u32 4294901760, %v1564_v43  ;;  %v10556_v48 = vadd.f32 %v8429_v46, %v754_v51  ;;  %v1549_v2 = vpop.f32.mrb[7].mxu1  ;;  %v1670_v16 = vsub.f32 %v11345_v21, %v1669_v22 }
 0x149   :  { %v11382_v23 = vsub.f32 %v1568_v50, %v11367_v58  ;;  %v1586_v24 = vand.u32 4294901760, %v1563_v42  ;;  %v10557_v30 = vadd.f32 %v1549_v2, %v749_v54  ;;  %9719 = vmatprep.subr.bf16.mxu1 %v11363_v35  ;;  %v1677_v36 = vsub.f32 %v11341_v14, %v1676_v60  ;;  %v29_v2 = vld [vmem:[%s12890_s2 + $0x8] sm:$0xff] }
 0x14a   :  { %v1658_v37 = vand.u32 4294901760, %v11373_v33  ;;  %v1703_v40 = vsub.f32 %v1564_v43, %v1589_v56  ;;  %v1566_v47 = vmul.f32 %v10556_v48, %v70_v45  ;;  %9721 = vmatpush3.bf16.msra.mxu1 %v11363_v35  ;;  %v1671_v49 = vand.u32 4294901760, %v1670_v16  ;;  %v30_v16 = vld [vmem:[%s12890_s2 + $0x10] sm:$0xff] }
 0x14b   :  { %v11390_v59 = vpack.c.bf16 %v1589_v56, %v1586_v24  ;;  %v1696_v19 = vsub.f32 %v1563_v42, %v1586_v24  ;;  %v1565_v39 = vmul.f32 %v10557_v30, %v69_v10  ;;  %v1648_v61 = vand.u32 4294901760, %v11382_v23  ;;  %v73_v30 = vld [vmem:[%s12887_s4 + $0xd8] sm:$0xff] }
 0x14c   :  { %v1659_v62 = vsub.f32 %v11373_v33, %v1658_v37  ;;  %v1595_v3 = vand.u32 4294901760, %v1566_v47  ;;  %v1678_v7 = vand.u32 4294901760, %v1677_v36  ;;  %v1683_v32 = vand.u32 4294901760, %v11365_v44  ;;  %v74_v36 = vld [vmem:[%s12887_s4 + $0xe0] sm:$0xff] }
 0x14d   :  { %v1592_v52 = vand.u32 4294901760, %v1565_v39  ;;  %9723 = vmatprep.subr.bf16.mxu1 %v11390_v59  ;;  %v1649_v0 = vsub.f32 %v11382_v23, %v1648_v61  ;;  %v1690_v57 = vand.u32 4294901760, %v11357_v38  ;;  %v1697_v1 = vand.u32 4294901760, %v1696_v19 }
 0x14e   :  { %v1660_v6 = vand.u32 4294901760, %v1659_v62  ;;  %v1717_v15 = vsub.f32 %v1566_v47, %v1595_v3  ;;  %9725 = vmatpush3.bf16.msra.mxu1 %v11390_v59  ;;  %v9730_v4 = vpack.c.bf16 %v1678_v7, %v1671_v49  ;;  %v1684_v34 = vsub.f32 %v11365_v44, %v1683_v32 }
 0x14f   :  { %v11404_v5 = vpack.c.bf16 %v1595_v3, %v1592_v52  ;;  %v1710_v18 = vsub.f32 %v1565_v39, %v1592_v52  ;;  %v1650_v20 = vand.u32 4294901760, %v1649_v0  ;;  %v1691_v63 = vsub.f32 %v11357_v38, %v1690_v57  ;;  %v33_v0 = vld [vmem:[%s12890_s2 + $0x28] sm:$0xff] }
 0x150   :  { %v1685_v28 = vand.u32 4294901760, %v1684_v34  ;;  %v1698_v27 = vsub.f32 %v1696_v19, %v1697_v1  ;;  %v1704_v29 = vand.u32 4294901760, %v1703_v40  ;;  %v1718_v41 = vand.u32 4294901760, %v1717_v15 }
 0x151   :  { %9727 = vmatprep.subr.bf16.mxu1 %v11404_v5  ;;  %8446 = vmatprep.mubr.f32.mxu1 %v1650_v20  ;;  %v1692_v17 = vand.u32 4294901760, %v1691_v63  ;;  %v1711_v8 = vand.u32 4294901760, %v1710_v18  ;;  %v9746_v9 = vpack.c.bf16 %v11341_v14, %v11345_v21  ;;  %v9750_v53 = vpack.c.bf16 %v11357_v38, %v11365_v44  ;;  %v28_v14 = vld [vmem:[%s12890_s2] sm:$0xff] }
 0x152   :  { %9729 = vmatpush3.bf16.msra.mxu1 %v11404_v5  ;;  %v1699_v12 = vand.u32 4294901760, %v1698_v27  ;;  %v1705_v31 = vsub.f32 %v1703_v40, %v1704_v29  ;;  %v1719_v55 = vsub.f32 %v1717_v15, %v1718_v41  ;;  %v9754_v11 = vpack.c.bf16 %v1703_v40, %v1696_v19 }
 0x153   :  { %9731 = vmatprep.subr.bf16.mxu1 %v9730_v4  ;;  %v9734_v43 = vpack.c.bf16 %v1692_v17, %v1685_v28  ;;  %v1712_v50 = vsub.f32 %v1710_v18, %v1711_v8  ;;  %v9758_v51 = vpack.c.bf16 %v1717_v15, %v1710_v18  ;;  %v9778_v42 = vpack.c.bf16 %v1676_v60, %v1669_v22  ;;  %v71_v60 = vld [vmem:[%s12887_s4 + $0xc8] sm:$0xff]  ;;  %v72_v22 = vld [vmem:[%s12887_s4 + $0xd0] sm:$0xff] }
 0x154   :  { %v1706_v45 = vand.u32 4294901760, %v1705_v31  ;;  %v1720_v46 = vand.u32 4294901760, %v1719_v55  ;;  %v9782_v54 = vpack.c.bf16 %v1690_v57, %v1683_v32  ;;  %v9786_v56 = vpack.c.bf16 %v1704_v29, %v1697_v1  ;;  %v34_v57 = vld [vmem:[%s12890_s2 + $0x30] sm:$0xff] }
 0x155   :  { %8447 = vmatmul.mubr.f32.vlgmr.msra.gmra.mrb[8].mxu1 %v1660_v6  ;;  %v1713_v38 = vand.u32 4294901760, %v1712_v50  ;;  %v9790_v44 = vpack.c.bf16 %v1718_v41, %v1711_v8  ;;  %v2858_v21 = vsel %vm756_vm0, %v28_v14, 0  ;;  %v2909_v24 = vand.u32 4294901760, %v72_v22  ;;  %v35_v41 = vld [vmem:[%s12890_s2 + $0x38] sm:$0xff] }
 0x156   :  { %9733 = vmatpush3.bf16.msra.mxu1 %v9730_v4  ;;  %8465 = vmatprep.mubr.f32.mxu1 %v11367_v58  ;;  %v9738_v48 = vpack.c.bf16 %v1706_v45, %v1699_v12  ;;  %v2861_v40 = vsel %vm756_vm0, %v29_v2, 0  ;;  %v2864_v47 = vsel %vm756_vm0, %v30_v16, 0  ;;  %v2912_v39 = vand.u32 4294901760, %v73_v30 }
 0x157   :  { %9735 = vmatprep.subr.bf16.mxu1 %v9734_v43  ;;  %v9742_v10 = vpack.c.bf16 %v1720_v46, %v1713_v38  ;;  %v11476_v19 = vsub.f32 %v72_v22, %v2909_v24  ;;  %v11478_v62 = vand.u32 4294901760, %v2861_v40  ;;  %v11482_v7 = vand.u32 4294901760, %v2864_v47 }
 0x158   :  { %v11495_v6 = vsub.f32 %v73_v30, %v2912_v39  ;;  %v2873_v18 = vsel %vm756_vm0, %v33_v0, 0  ;;  %v2876_v20 = vsel %vm756_vm0, %v34_v57, 0  ;;  %v2879_v50 = vsel %vm756_vm0, %v35_v41, 0  ;;  %v39_v30 = vld [vmem:[%s12890_s2 + $0x58] sm:$0xff] }
 0x159   :  { %v3144_v1 = vand.u32 4294901760, %v11476_v19  ;;  %v11500_v4 = vsub.f32 %v2861_v40, %v11478_v62  ;;  %v11513_v27 = vsub.f32 %v2864_v47, %v11482_v7  ;;  %v11532_v12 = vand.u32 4294901760, %v2873_v18 }
 0x15a   :  { %9737 = vmatpush3.bf16.msra.mxu1 %v9734_v43  ;;  %v11534_v31 = vand.u32 4294901760, %v2876_v20  ;;  %v11565_v14 = vand.u32 4294901760, %v2879_v50  ;;  %v2891_v41 = vsel %vm756_vm0, %v39_v30, 0 }
 0x15b   :  { %9739 = vmatprep.subr.bf16.mxu1 %v9738_v48  ;;  %v3145_v8 = vsub.f32 %v11476_v19, %v3144_v1 }
 0x15d   :  { %v3146_v38 = vand.u32 4294901760, %v3145_v8 }
 0x15e   :  { %9741 = vmatpush3.bf16.msra.mxu1 %v9738_v48  ;;  %v11560_v48 = vsub.f32 %v2873_v18, %v11532_v12 }
 0x15f   :  { %9743 = vmatprep.subr.bf16.mxu1 %v9742_v10 }
 0x162   :  { %9745 = vmatpush3.bf16.msra.mxu1 %v9742_v10  ;;  %v11563_v10 = vsub.f32 %v2876_v20, %v11534_v31 }
 0x163   :  { %9747 = vmatprep.subr.bf16.mxu1 %v9746_v9 }
 0x165   :  { %8466 = vmatmul.mubr.f32.vlgmr.msra.gmra.mrb[8].mxu1 %v11359_v13 }
 0x166   :  { %9749 = vmatpush3.bf16.msra.mxu1 %v9746_v9  ;;  %8484 = vmatprep.mubr.f32.mxu1 %v11382_v23  ;;  %v2906_v23 = vand.u32 4294901760, %v71_v60  ;;  %v3151_v9 = vand.u32 4294901760, %v11495_v6 }
 0x167   :  { %9751 = vmatprep.subr.bf16.mxu1 %v9750_v53 }
 0x168   :  { %v11474_v49 = vsub.f32 %v71_v60, %v2906_v23  ;;  %v11507_v63 = vpack.c.bf16 %v2909_v24, %v2906_v23 }
 0x16a   :  { %9753 = vmatpush3.bf16.msra.mxu1 %v9750_v53 }
 0x16b   :  { %9755 = vmatprep.subr.bf16.mxu1 %v9754_v11 }
 0x16e   :  { %9757 = vmatpush3.bf16.msra.mxu1 %v9754_v11  ;;  %v2986_v11 = vand.u32 4294901760, %v11500_v4 }
 0x16f   :  { %9759 = vmatprep.subr.bf16.mxu1 %v9758_v51 }
 0x170   :  { %v2987_v60 = vsub.f32 %v11500_v4, %v2986_v11 }
 0x172   :  { %9761 = vmatpush3.bf16.msra.mxu1 %v9758_v51 }
 0x173   :  { %9763 = vmatprep.subr.bf16.mxu1 %v11343_v26 }
 0x175   :  { %8485 = vmatmul.mubr.f32.vlgmr.msra.gmra.mrb[8].mxu1 %v11373_v33  ;;  %v11444_v33 = vand.u32 4294901760, %v2858_v21 }
 0x176   :  { %9765 = vmatpush3.bf16.msra.mxu1 %v11343_v26  ;;  %8503 = vmatprep.mubr.f32.mxu1 %v1648_v61  ;;  %v2915_v61 = vand.u32 4294901760, %v74_v36 }
 0x177   :  { %9767 = vmatprep.subr.bf16.mxu1 %v11363_v35 }
 0x178   :  { %v11497_v15 = vsub.f32 %v74_v36, %v2915_v61  ;;  %v11536_v55 = vpack.c.bf16 %v2915_v61, %v2912_v39  ;;  %v11591_v39 = vsub.f32 %v2879_v50, %v11565_v14  ;;  %v40_v61 = vld [vmem:[%s12890_s2 + $0x60] sm:$0xff] }
 0x17a   :  { %9769 = vmatpush3.bf16.msra.mxu1 %v11363_v35  ;;  %v3158_v53 = vand.u32 4294901760, %v11497_v15 }
 0x17b   :  { %9771 = vmatprep.subr.bf16.mxu1 %v11390_v59 }
 0x17e   :  { %9773 = vmatpush3.bf16.msra.mxu1 %v11390_v59 }
 0x17f   :  { %9775 = vmatprep.subr.bf16.mxu1 %v11404_v5 }
 0x182   :  { %9777 = vmatpush3.bf16.msra.mxu1 %v11404_v5 }
 0x183   :  { %9779 = vmatprep.subr.bf16.mxu1 %v9778_v42 }
 0x185   :  { %8504 = vmatmul.mubr.f32.vlgmr.msra.gmra.mrb[8].mxu1 %v1658_v37  ;;  %v11463_v37 = vsub.f32 %v2858_v21, %v11444_v33  ;;  %v38_v21 = vld [vmem:[%s12890_s2 + $0x50] sm:$0xff] }
 0x186   :  { %9781 = vmatpush3.bf16.msra.mxu1 %v9778_v42  ;;  %8522 = vmatprep.mubr.f32.mxu1 %v11367_v58  ;;  %v2996_v42 = vand.u32 4294901760, %v11513_v27 }
 0x187   :  { %9783 = vmatprep.subr.bf16.mxu1 %v9782_v54  ;;  %v2976_v3 = vand.u32 4294901760, %v11463_v37 }
 0x188   :  { %v2997_v16 = vsub.f32 %v11513_v27, %v2996_v42 }
 0x189   :  { %v2977_v28 = vsub.f32 %v11463_v37, %v2976_v3 }
 0x18a   :  { %9785 = vmatpush3.bf16.msra.mxu1 %v9782_v54  ;;  %v37_v54 = vld [vmem:[%s12890_s2 + $0x48] sm:$0xff]  ;;  %v2998_v18 = vand.u32 4294901760, %v2997_v16 }
 0x18b   :  { %9787 = vmatprep.subr.bf16.mxu1 %v9786_v56  ;;  %v2978_v51 = vand.u32 4294901760, %v2977_v28  ;;  %v2885_v24 = vsel %vm756_vm0, %v37_v54, 0  ;;  %v42_v54 = vld [vmem:[%s12890_s2 + $0x70] sm:$0xff] }
 0x18c   :  { %v11602_v57 = vand.u32 4294901760, %v2885_v24 }
 0x18e   :  { %9789 = vmatpush3.bf16.msra.mxu1 %v9786_v56 }
 0x18f   :  { %9791 = vmatprep.subr.bf16.mxu1 %v9790_v44 }
 0x192   :  { %9793 = vmatpush3.bf16.msra.mxu1 %v9790_v44  ;;  %v3159_v44 = vsub.f32 %v11497_v15, %v3158_v53 }
 0x193   :  { %9795 = vmatprep.subr.bf16.mxu1 %v11343_v26 }
 0x194   :  { %v3160_v47 = vand.u32 4294901760, %v3159_v44  ;;  %v11629_v44 = vand.u32 4294901760, %v2891_v41 }
 0x195   :  { %8523 = vmatmul.mubr.f32.vlgmr.msra.gmra.mrb[8].mxu1 %v11359_v13 }
 0x196   :  { %9797 = vmatpush3.bf16.msra.mxu1 %v11343_v26  ;;  %8541 = vmatprep.mubr.f32.mxu1 %v11367_v58  ;;  %v31_v26 = vld [vmem:[%s12890_s2 + $0x18] sm:$0xff]  ;;  %v32_v58 = vld [vmem:[%s12890_s2 + $0x20] sm:$0xff] }
 0x197   :  { %9799 = vmatprep.subr.bf16.mxu1 %v11363_v35  ;;  %v2867_v32 = vsel %vm756_vm0, %v31_v26, 0  ;;  %v2870_v52 = vsel %vm756_vm0, %v32_v58, 0  ;;  %v3026_v26 = vand.u32 4294901760, %v11560_v48  ;;  %v3036_v58 = vand.u32 4294901760, %v11563_v10 }
 0x198   :  { %v11502_v34 = vand.u32 4294901760, %v2867_v32  ;;  %v11515_v29 = vand.u32 4294901760, %v2870_v52 }
 0x199   :  { %v3027_v50 = vsub.f32 %v11560_v48, %v3026_v26 }
 0x19a   :  { %9801 = vmatpush3.bf16.msra.mxu1 %v11363_v35  ;;  %v3137_v35 = vand.u32 4294901760, %v11474_v49  ;;  %v11540_v43 = vsub.f32 %v2867_v32, %v11502_v34  ;;  %v11546_v45 = vsub.f32 %v2870_v52, %v11515_v29  ;;  %v2988_v32 = vand.u32 4294901760, %v2987_v60 }
 0x19b   :  { %9803 = vmatprep.subr.bf16.mxu1 %v11390_v59 }
 0x19c   :  { %v3138_v17 = vsub.f32 %v11474_v49, %v3137_v35  ;;  %v3006_v22 = vand.u32 4294901760, %v11540_v43  ;;  %v3016_v23 = vand.u32 4294901760, %v11546_v45 }
 0x19e   :  { %9805 = vmatpush3.bf16.msra.mxu1 %v11390_v59  ;;  %v36_v59 = vld [vmem:[%s12890_s2 + $0x40] sm:$0xff]  ;;  %v3139_v56 = vand.u32 4294901760, %v3138_v17  ;;  %v3007_v52 = vsub.f32 %v11540_v43, %v3006_v22  ;;  %v3017_v20 = vsub.f32 %v11546_v45, %v3016_v23  ;;  %v41_v17 = vld [vmem:[%s12890_s2 + $0x68] sm:$0xff] }
 0x19f   :  { %9807 = vmatprep.subr.bf16.mxu1 %v11404_v5  ;;  %v2882_v46 = vsel %vm756_vm0, %v36_v59, 0  ;;  %v2894_v59 = vsel %vm756_vm0, %v40_v61, 0  ;;  %v2897_v30 = vsel %vm756_vm0, %v41_v17, 0 }
 0x1a0   :  { %v11575_v2 = vand.u32 4294901760, %v2882_v46  ;;  %v10010_v36 = vpack.c.bf16 %v3146_v38, %v3139_v56  ;;  %v3008_v56 = vand.u32 4294901760, %v3007_v52  ;;  %v11634_v16 = vand.u32 4294901760, %v2894_v59 }
 0x1a1   :  { %v11649_v52 = vsub.f32 %v2891_v41, %v11629_v44 }
 0x1a2   :  { %9809 = vmatpush3.bf16.msra.mxu1 %v11404_v5  ;;  %v3152_v5 = vsub.f32 %v11495_v6, %v3151_v9  ;;  %v11600_v0 = vsub.f32 %v2882_v46, %v11575_v2  ;;  %v12908_v46 = vand.u32 4294901760, %v11591_v39  ;;  %v11655_v17 = vsub.f32 %v2894_v59, %v11634_v16 }
 0x1a3   :  { %10003 = vmatprep.subr.bf16.mxu1 %v11507_v63 }
 0x1a4   :  { %v3153_v40 = vand.u32 4294901760, %v3152_v5  ;;  %v12904_v38 = vand.u32 4294901760, %v11600_v0  ;;  %v11627_v5 = vsub.f32 %v2885_v24, %v11602_v57  ;;  %v3028_v24 = vand.u32 4294901760, %v3027_v50 }
 0x1a5   :  { %8542 = vmatmul.mubr.f32.vlgmr.msra.gmra.mrb[8].mxu1 %v11359_v13  ;;  %v2888_v13 = vsel %vm756_vm0, %v38_v21, 0  ;;  %v3018_v21 = vand.u32 4294901760, %v3017_v20 }
 0x1a6   :  { %10005 = vmatpush3.bf16.msra.mxu1 %v11507_v63  ;;  %8762 = vmatprep.mubr.f32.mxu1 %v2978_v51  ;;  %v11608_v28 = vand.u32 4294901760, %v2888_v13  ;;  %v10014_v8 = vpack.c.bf16 %v3160_v47, %v3153_v40  ;;  %v3037_v51 = vsub.f32 %v11563_v10, %v3036_v58  ;;  %v2900_v40 = vsel %vm756_vm0, %v42_v54, 0  ;;  %v43_v47 = vld [vmem:[%s12890_s2 + $0x78] sm:$0xff] }
 0x1a7   :  { %10007 = vmatprep.subr.bf16.mxu1 %v11536_v55  ;;  %v11657_v50 = vand.u32 4294901760, %v2900_v40 }
 0x1a8   :  { %v11632_v60 = vsub.f32 %v2888_v13, %v11608_v28  ;;  %v3038_v61 = vand.u32 4294901760, %v3037_v51  ;;  %v3057_v13 = vsub.f32 %v11600_v0, %v12904_v38  ;;  %v2903_v51 = vsel %vm756_vm0, %v43_v47, 0 }
 0x1a9   :  { %v11667_v38 = vand.u32 4294901760, %v2903_v51 }
 0x1aa   :  { %10009 = vmatpush3.bf16.msra.mxu1 %v11536_v55  ;;  %v12906_v20 = vand.u32 4294901760, %v11632_v60  ;;  %v3058_v59 = vand.u32 4294901760, %v3057_v13 }
 0x1ab   :  { %10011 = vmatprep.subr.bf16.mxu1 %v10010_v36 }
 0x1ac   :  { %v3077_v47 = vsub.f32 %v11632_v60, %v12906_v20 }
 0x1ad   :  { %8763 = vmatmul.mubr.f32.vlgmr.msra.gmra.mrb[10].mxu1 %v2988_v32  ;;  %v3047_v32 = vsub.f32 %v11591_v39, %v12908_v46 }
 0x1ae   :  { %8765 = vmatprep.mubr.f32.mxu1 %v2998_v18  ;;  %10013 = vmatpush3.bf16.msra.mxu1 %v10010_v36  ;;  %v12905_v36 = vand.u32 4294901760, %v11627_v5  ;;  %v11651_v18 = vand.u32 4294901760, %v2897_v30  ;;  %v3078_v13 = vand.u32 4294901760, %v3077_v47 }
 0x1af   :  { %10015 = vmatprep.subr.bf16.mxu1 %v10014_v8  ;;  %v3048_v54 = vand.u32 4294901760, %v3047_v32 }
 0x1b0   :  { %v3067_v41 = vsub.f32 %v11627_v5, %v12905_v36 }
 0x1b1   :  { %8766 = vmatmul.mubr.f32.gmra.mrb[12].mxu1 %v3008_v56  ;;  %v12907_v56 = vand.u32 4294901760, %v11649_v52 }
 0x1b2   :  { %8768 = vmatprep.mubr.f32.mxu1 %v3018_v21  ;;  %10017 = vmatpush3.bf16.msra.mxu1 %v10014_v8  ;;  %v11665_v21 = vsub.f32 %v2897_v30, %v11651_v18  ;;  %v3096_v8 = vand.u32 4294901760, %v11655_v17  ;;  %v3068_v32 = vand.u32 4294901760, %v3067_v41 }
 0x1b3   :  { %v3087_v30 = vsub.f32 %v11649_v52, %v12907_v56 }
 0x1b4   :  { %v3106_v36 = vand.u32 4294901760, %v11665_v21  ;;  %v3097_v20 = vsub.f32 %v11655_v17, %v3096_v8 }
 0x1b5   :  { %8769 = vmatmul.mubr.f32.gmra.mrb[14].mxu1 %v3028_v24  ;;  %v11674_v24 = vsub.f32 %v2900_v40, %v11657_v50 }
 0x1b6   :  { %8771 = vmatprep.mubr.f32.mxu1 %v3038_v61  ;;  %v11681_v61 = vsub.f32 %v2903_v51, %v11667_v38  ;;  %v3107_v41 = vsub.f32 %v11665_v21, %v3106_v36  ;;  %v3098_v46 = vand.u32 4294901760, %v3097_v20  ;;  %v10022_v20 = vpack.c.bf16 %v11497_v15, %v11495_v6 }
 0x1b7   :  { %v12910_v40 = vand.u32 4294901760, %v11674_v24  ;;  %v12956_v6 = vand.u32 4294901760, %v11674_v24 }
 0x1b8   :  { %v12909_v56 = vand.u32 4294901760, %v11681_v61  ;;  %v12957_v15 = vand.u32 4294901760, %v11681_v61 }
 0x1b9   :  { %8772 = vmatmul.mubr.f32.gmra.mrb[16].mxu1 %v3048_v54  ;;  %v3088_v54 = vand.u32 4294901760, %v3087_v30  ;;  %v3117_v51 = vsub.f32 %v11674_v24, %v12910_v40 }
 0x1ba   :  { %8774 = vmatprep.mubr.f32.mxu1 %v3058_v59  ;;  %v3108_v59 = vand.u32 4294901760, %v3107_v41  ;;  %v3127_v47 = vsub.f32 %v11681_v61, %v12909_v56  ;;  %v11731_v41 = vld [vmem:[%s12887_s4 + $0x1b8] sm:$0xff] }
 0x1bc   :  { %v3128_v30 = vand.u32 4294901760, %v3127_v47  ;;  %v11738_v47 = vld [vmem:[%s12887_s4 + $0x1c0] sm:$0xff] }
 0x1bd   :  { %8775 = vmatmul.mubr.f32.gmra.mrb[18].mxu1 %v3068_v32  ;;  %v3118_v32 = vand.u32 4294901760, %v3117_v51 }
 0x1be   :  { %8777 = vmatprep.mubr.f32.mxu1 %v3078_v13  ;;  %v11721_v13 = vld [vmem:[%s12887_s4 + $0x1a8] sm:$0xff] }
 0x1bf   :  { %v2164_v51 = vand.u32 4294901760, %v11721_v13 }
 0x1c1   :  { %8778 = vmatmul.mubr.f32.gmra.mrb[20].mxu1 %v3088_v54  ;;  %v11726_v54 = vld [vmem:[%s12887_s4 + $0x1b0] sm:$0xff] }
 0x1c2   :  { %8780 = vmatprep.mubr.f32.mxu1 %v3098_v46  ;;  %v10018_v46 = vpack.c.bf16 %v11476_v19, %v11474_v49  ;;  %v10038_v49 = vpack.c.bf16 %v3158_v53, %v3151_v9  ;;  %v12952_v19 = vand.u32 4294901760, %v11600_v0  ;;  %v105_v9 = vld [vmem:[%s12887_s4 + $0x1d8] sm:$0xff] }
 0x1c4   :  { %10019 = vmatprep.subr.bf16.mxu1 %v10018_v46 }
 0x1c5   :  { %8781 = vmatmul.mubr.f32.gmra.mrb[22].mxu1 %v3108_v59  ;;  %v2167_v59 = vand.u32 4294901760, %v11726_v54 }
 0x1c6   :  { %8783 = vmatprep.mubr.f32.mxu1 %v3118_v32  ;;  %v2170_v32 = vand.u32 4294901760, %v11731_v41 }
 0x1c7   :  { %v11746_v56 = vpack.c.bf16 %v2167_v59, %v2164_v51 }
 0x1c9   :  { %8784 = vmatmul.mubr.f32.gmra.mrb[24].mxu1 %v3128_v30  ;;  %v2173_v30 = vand.u32 4294901760, %v11738_v47  ;;  %9811 = vmatprep.subr.bf16.mxu0 %v11746_v56 }
 0x1ca   :  { %8794 = vmatprep.mubr.f32.mxu1 %v11444_v33  ;;  %9813 = vmatpush3.bf16.msra.mxu0 %v11746_v56 }
 0x1cb   :  { %v11752_v40 = vpack.c.bf16 %v2173_v30, %v2170_v32 }
 0x1cd   :  { %8795 = vmatmul.mubr.f32.vlgmr.msra.gmra.mrb[10].mxu1 %v11478_v62  ;;  %9815 = vmatprep.subr.bf16.mxu0 %v11752_v40 }
 0x1ce   :  { %8797 = vmatprep.mubr.f32.mxu1 %v11482_v7  ;;  %10021 = vmatpush3.bf16.msra.mxu1 %v10018_v46  ;;  %v10034_v46 = vpack.c.bf16 %v3144_v1, %v3137_v35  ;;  %v12954_v35 = vand.u32 4294901760, %v11632_v60  ;;  %v12955_v1 = vand.u32 4294901760, %v11649_v52 }
 0x1cf   :  { %10023 = vmatprep.subr.bf16.mxu1 %v10022_v20  ;;  %9817 = vmatpush3.bf16.msra.mxu0 %v11752_v40 }
 0x1d1   :  { %8798 = vmatmul.mubr.f32.gmra.mrb[12].mxu1 %v11502_v34 }
 0x1d2   :  { %8800 = vmatprep.mubr.f32.mxu1 %v11515_v29  ;;  %10025 = vmatpush3.bf16.msra.mxu1 %v10022_v20 }
 0x1d3   :  { %10027 = vmatprep.subr.bf16.mxu1 %v11507_v63 }
 0x1d5   :  { %8801 = vmatmul.mubr.f32.gmra.mrb[14].mxu1 %v11532_v12 }
 0x1d6   :  { %8803 = vmatprep.mubr.f32.mxu1 %v11534_v31 }
 0x1d9   :  { %8804 = vmatmul.mubr.f32.gmra.mrb[16].mxu1 %v11565_v14 }
 0x1da   :  { %8806 = vmatprep.mubr.f32.mxu1 %v11575_v2 }
 0x1dd   :  { %8807 = vmatmul.mubr.f32.gmra.mrb[18].mxu1 %v11602_v57 }
 0x1de   :  { %8809 = vmatprep.mubr.f32.mxu1 %v11608_v28 }
 0x1e1   :  { %8810 = vmatmul.mubr.f32.gmra.mrb[20].mxu1 %v11629_v44 }
 0x1e2   :  { %8812 = vmatprep.mubr.f32.mxu1 %v11634_v16 }
 0x1e5   :  { %8813 = vmatmul.mubr.f32.gmra.mrb[22].mxu1 %v11651_v18 }
 0x1e6   :  { %8815 = vmatprep.mubr.f32.mxu1 %v11657_v50 }
 0x1e9   :  { %8816 = vmatmul.mubr.f32.gmra.mrb[24].mxu1 %v11667_v38 }
 0x1ea   :  { %8826 = vmatprep.mubr.f32.mxu1 %v11463_v37  ;;  %v12951_v37 = vand.u32 4294901760, %v11591_v39 }
 0x1ed   :  { %8827 = vmatmul.mubr.f32.vlgmr.msra.gmra.mrb[10].mxu1 %v11500_v4 }
 0x1ee   :  { %8829 = vmatprep.mubr.f32.mxu1 %v11513_v27  ;;  %10029 = vmatpush3.bf16.msra.mxu1 %v11507_v63  ;;  %v103_v27 = vld [vmem:[%s12887_s4 + $0x1c8] sm:$0xff] }
 0x1ef   :  { %10031 = vmatprep.subr.bf16.mxu1 %v11536_v55  ;;  %v2176_v53 = vand.u32 4294901760, %v103_v27 }
 0x1f1   :  { %8830 = vmatmul.mubr.f32.gmra.mrb[12].mxu1 %v11540_v43  ;;  %v108_v43 = vld [vmem:[%s12887_s4 + $0x1f0] sm:$0xff] }
 0x1f2   :  { %8832 = vmatprep.mubr.f32.mxu1 %v11546_v45  ;;  %10033 = vmatpush3.bf16.msra.mxu1 %v11536_v55 }
 0x1f3   :  { %10035 = vmatprep.subr.bf16.mxu1 %v10034_v46 }
 0x1f5   :  { %8833 = vmatmul.mubr.f32.gmra.mrb[14].mxu1 %v11560_v48 }
 0x1f6   :  { %8835 = vmatprep.mubr.f32.mxu1 %v11563_v10  ;;  %v2191_v10 = vand.u32 4294901760, %v108_v43 }
 0x1f9   :  { %8836 = vmatmul.mubr.f32.gmra.mrb[16].mxu1 %v11591_v39  ;;  %v111_v39 = vld [vmem:[%s12887_s4 + $0x208] sm:$0xff] }
 0x1fa   :  { %8838 = vmatprep.mubr.f32.mxu1 %v11600_v0  ;;  %v112_v0 = vld [vmem:[%s12887_s4 + $0x210] sm:$0xff] }
 0x1fd   :  { %8839 = vmatmul.mubr.f32.gmra.mrb[18].mxu1 %v11627_v5 }
 0x1fe   :  { %8841 = vmatprep.mubr.f32.mxu1 %v11632_v60 }
 0x201   :  { %8842 = vmatmul.mubr.f32.gmra.mrb[20].mxu1 %v11649_v52 }
 0x202   :  { %8844 = vmatprep.mubr.f32.mxu1 %v11655_v17  ;;  %v11936_v17 = vsub.f32 %v11726_v54, %v2167_v59 }
 0x205   :  { %8845 = vmatmul.mubr.f32.gmra.mrb[22].mxu1 %v11665_v21  ;;  %v12926_v21 = vand.u32 4294901760, %v11936_v17 }
 0x206   :  { %8847 = vmatprep.mubr.f32.mxu1 %v11674_v24 }
 0x207   :  { %v2275_v24 = vsub.f32 %v11936_v17, %v12926_v21 }
 0x209   :  { %8848 = vmatmul.mubr.f32.gmra.mrb[24].mxu1 %v11681_v61  ;;  %v2276_v20 = vand.u32 4294901760, %v2275_v24 }
 0x20a   :  { %8858 = vmatprep.mubr.f32.mxu1 %v2976_v3  ;;  %v12953_v3 = vand.u32 4294901760, %v11627_v5  ;;  %v11911_v5 = vld [vmem:[%s12887_s4 + $0x218] sm:$0xff] }
 0x20d   :  { %8859 = vmatmul.mubr.f32.vlgmr.msra.gmra.mrb[10].mxu1 %v2986_v11  ;;  %v107_v11 = vld [vmem:[%s12887_s4 + $0x1e8] sm:$0xff] }
 0x20e   :  { %8861 = vmatprep.mubr.f32.mxu1 %v2996_v42  ;;  %10037 = vmatpush3.bf16.msra.mxu1 %v10034_v46  ;;  %v2188_v48 = vand.u32 4294901760, %v107_v11 }
 0x20f   :  { %10039 = vmatprep.subr.bf16.mxu1 %v10038_v49 }
 0x211   :  { %8862 = vmatmul.mubr.f32.gmra.mrb[12].mxu1 %v3006_v22  ;;  %v109_v22 = vld [vmem:[%s12887_s4 + $0x1f8] sm:$0xff] }
 0x212   :  { %8864 = vmatprep.mubr.f32.mxu1 %v3016_v23  ;;  %10041 = vmatpush3.bf16.msra.mxu1 %v10038_v49  ;;  %v11896_v23 = vpack.c.bf16 %v2191_v10, %v2188_v48 }
 0x213   :  { %10043 = vmatprep.subr.bf16.mxu1 %v11507_v63 }
 0x215   :  { %8865 = vmatmul.mubr.f32.gmra.mrb[14].mxu1 %v3026_v26  ;;  %v2194_v26 = vand.u32 4294901760, %v109_v22 }
 0x216   :  { %8867 = vmatprep.mubr.f32.mxu1 %v3036_v58 }
 0x219   :  { %8868 = vmatmul.mubr.f32.gmra.mrb[16].mxu1 %v12951_v37 }
 0x21a   :  { %8870 = vmatprep.mubr.f32.mxu1 %v12952_v19 }
 0x21d   :  { %8871 = vmatmul.mubr.f32.gmra.mrb[18].mxu1 %v12953_v3 }
 0x21e   :  { %8873 = vmatprep.mubr.f32.mxu1 %v12954_v35 }
 0x221   :  { %8874 = vmatmul.mubr.f32.gmra.mrb[20].mxu1 %v12955_v1 }
 0x222   :  { %8876 = vmatprep.mubr.f32.mxu1 %v3096_v8 }
 0x225   :  { %8877 = vmatmul.mubr.f32.gmra.mrb[22].mxu1 %v3106_v36 }
 0x226   :  { %8879 = vmatprep.mubr.f32.mxu1 %v12956_v6 }
 0x229   :  { %8880 = vmatmul.mubr.f32.gmra.mrb[24].mxu1 %v12957_v15 }
 0x22a   :  { %8890 = vmatprep.mubr.f32.mxu1 %v11444_v33 }
 0x22d   :  { %8891 = vmatmul.mubr.f32.vlgmr.msra.gmra.mrb[10].mxu1 %v11478_v62 }
 0x22e   :  { %8893 = vmatprep.mubr.f32.mxu1 %v11482_v7  ;;  %10045 = vmatpush3.bf16.msra.mxu1 %v11507_v63 }
 0x22f   :  { %10047 = vmatprep.subr.bf16.mxu1 %v11536_v55 }
 0x231   :  { %8894 = vmatmul.mubr.f32.gmra.mrb[12].mxu1 %v11502_v34 }
 0x232   :  { %8896 = vmatprep.mubr.f32.mxu1 %v11515_v29  ;;  %10049 = vmatpush3.bf16.msra.mxu1 %v11536_v55  ;;  %v2182_v55 = vand.u32 4294901760, %v105_v9 }
 0x234   :  { %v11958_v49 = vsub.f32 %v105_v9, %v2182_v55 }
 0x235   :  { %8897 = vmatmul.mubr.f32.gmra.mrb[14].mxu1 %v11532_v12 }
 0x236   :  { %8899 = vmatprep.mubr.f32.mxu1 %v11534_v31  ;;  %v12920_v35 = vand.u32 4294901760, %v11958_v49 }
 0x239   :  { %8900 = vmatmul.mubr.f32.gmra.mrb[16].mxu1 %v11565_v14 }
 0x23a   :  { %8902 = vmatprep.mubr.f32.mxu1 %v11575_v2 }
 0x23d   :  { %8903 = vmatmul.mubr.f32.gmra.mrb[18].mxu1 %v11602_v57 }
 0x23e   :  { %8905 = vmatprep.mubr.f32.mxu1 %v11608_v28 }
 0x241   :  { %8906 = vmatmul.mubr.f32.gmra.mrb[20].mxu1 %v11629_v44 }
 0x242   :  { %8908 = vmatprep.mubr.f32.mxu1 %v11634_v16 }
 0x245   :  { %8909 = vmatmul.mubr.f32.gmra.mrb[22].mxu1 %v11651_v18 }
 0x246   :  { %8911 = vmatprep.mubr.f32.mxu1 %v11657_v50 }
 0x249   :  { %8912 = vmatmul.mubr.f32.gmra.mrb[24].mxu1 %v11667_v38 }
 0x24a   :  { %8922 = vmatprep.mubr.f32.mxu1 %v11444_v33  ;;  %v45_v33 = vld [vmem:[%s12891_s3 + $0x8] sm:$0xff] }
 0x24d   :  { %8923 = vmatmul.mubr.f32.vlgmr.msra.gmra.mrb[10].mxu1 %v11478_v62  ;;  %v44_v62 = vld [vmem:[%s12891_s3] sm:$0xff] }
 0x24e   :  { %8925 = vmatprep.mubr.f32.mxu1 %v11482_v7 }
 0x251   :  { %8926 = vmatmul.mubr.f32.gmra.mrb[12].mxu1 %v11502_v34 }
 0x252   :  { %8928 = vmatprep.mubr.f32.mxu1 %v11515_v29  ;;  %v104_v29 = vld [vmem:[%s12887_s4 + $0x1d0] sm:$0xff] }
 0x255   :  { %8929 = vmatmul.mubr.f32.gmra.mrb[14].mxu1 %v11532_v12  ;;  %v2179_v12 = vand.u32 4294901760, %v104_v29 }
 0x256   :  { %8931 = vmatprep.mubr.f32.mxu1 %v11534_v31  ;;  %v106_v31 = vld [vmem:[%s12887_s4 + $0x1e0] sm:$0xff] }
 0x257   :  { %v2185_v42 = vand.u32 4294901760, %v106_v31  ;;  %v11883_v45 = vpack.c.bf16 %v2179_v12, %v2176_v53  ;;  %v11951_v54 = vsub.f32 %v104_v29, %v2179_v12 }
 0x259   :  { %8932 = vmatmul.mubr.f32.gmra.mrb[16].mxu1 %v11565_v14  ;;  %v11885_v14 = vpack.c.bf16 %v2185_v42, %v2182_v55  ;;  %9819 = vmatprep.subr.bf16.mxu0 %v11883_v45  ;;  %v12921_v46 = vand.u32 4294901760, %v11951_v54  ;;  %v11960_v37 = vsub.f32 %v106_v31, %v2185_v42 }
 0x25a   :  { %8934 = vmatprep.mubr.f32.mxu1 %v11575_v2  ;;  %v110_v2 = vld [vmem:[%s12887_s4 + $0x200] sm:$0xff]  ;;  %9821 = vmatpush3.bf16.msra.mxu0 %v11883_v45 }
 0x25b   :  { %9823 = vmatprep.subr.bf16.mxu0 %v11885_v14  ;;  %v2197_v58 = vand.u32 4294901760, %v110_v2  ;;  %v2303_v3 = vsub.f32 %v11951_v54, %v12921_v46  ;;  %v12919_v1 = vand.u32 4294901760, %v11960_v37 }
 0x25d   :  { %8935 = vmatmul.mubr.f32.gmra.mrb[18].mxu1 %v11602_v57  ;;  %v11906_v57 = vpack.c.bf16 %v2197_v58, %v2194_v26  ;;  %v2304_v15 = vand.u32 4294901760, %v2303_v3  ;;  %v11994_v42 = vsub.f32 %v110_v2, %v2197_v58 }
 0x25e   :  { %8937 = vmatprep.mubr.f32.mxu1 %v11608_v28  ;;  %9825 = vmatpush3.bf16.msra.mxu0 %v11885_v14  ;;  %v2200_v28 = vand.u32 4294901760, %v111_v39 }
 0x25f   :  { %9827 = vmatprep.subr.bf16.mxu0 %v11896_v23  ;;  %v12915_v24 = vand.u32 4294901760, %v11994_v42 }
 0x261   :  { %8938 = vmatmul.mubr.f32.gmra.mrb[20].mxu1 %v11629_v44  ;;  %v11916_v44 = vld [vmem:[%s12887_s4 + $0x220] sm:$0xff] }
 0x262   :  { %8940 = vmatprep.mubr.f32.mxu1 %v11634_v16  ;;  %9829 = vmatpush3.bf16.msra.mxu0 %v11896_v23  ;;  %v2206_v16 = vand.u32 4294901760, %v11911_v5  ;;  %v2209_v36 = vand.u32 4294901760, %v11916_v44 }
 0x263   :  { %9831 = vmatprep.subr.bf16.mxu0 %v11906_v57 }
 0x264   :  { %v11926_v52 = vpack.c.bf16 %v2209_v36, %v2206_v16 }
 0x265   :  { %8941 = vmatmul.mubr.f32.gmra.mrb[22].mxu1 %v11651_v18  ;;  %v11931_v18 = vsub.f32 %v11721_v13, %v2164_v51  ;;  %v11949_v13 = vsub.f32 %v103_v27, %v2176_v53 }
 0x266   :  { %8943 = vmatprep.mubr.f32.mxu1 %v11657_v50  ;;  %9833 = vmatpush3.bf16.msra.mxu0 %v11906_v57 }
 0x267   :  { %v12927_v50 = vand.u32 4294901760, %v11931_v18  ;;  %v12922_v59 = vand.u32 4294901760, %v11949_v13 }
 0x269   :  { %8944 = vmatmul.mubr.f32.gmra.mrb[24].mxu1 %v11667_v38  ;;  %v2203_v38 = vand.u32 4294901760, %v112_v0  ;;  %v2268_v8 = vsub.f32 %v11931_v18, %v12927_v50  ;;  %v2296_v19 = vsub.f32 %v11949_v13, %v12922_v59 }
 0x26b   :  { %v11920_v60 = vpack.c.bf16 %v2203_v38, %v2200_v28  ;;  %v2269_v61 = vand.u32 4294901760, %v2268_v8  ;;  %v2297_v6 = vand.u32 4294901760, %v2296_v19  ;;  %v12003_v19 = vsub.f32 %v111_v39, %v2200_v28 }
 0x26c   :  { %v12005_v3 = vsub.f32 %v112_v0, %v2203_v38  ;;  %v12019_v0 = vsub.f32 %v11911_v5, %v2206_v16  ;;  %v12022_v28 = vsub.f32 %v11916_v44, %v2209_v36  ;;  %v9874_v44 = vpack.c.bf16 %v11936_v17, %v11931_v18 }
 0x26d   :  { %9835 = vmatprep.subr.bf16.mxu0 %v11920_v60  ;;  %v11953_v51 = vpack.c.bf16 %v2276_v20, %v2269_v61  ;;  %v11980_v27 = vpack.c.bf16 %v2304_v15, %v2297_v6 }
 0x26e   :  { %9837 = vmatpush3.bf16.msra.mxu0 %v11920_v60  ;;  %v12913_v58 = vand.u32 4294901760, %v12005_v3 }
 0x26f   :  { %9839 = vmatprep.subr.bf16.mxu0 %v11926_v52 }
 0x270   :  { %v2359_v39 = vsub.f32 %v12005_v3, %v12913_v58 }
 0x272   :  { %9841 = vmatpush3.bf16.msra.mxu0 %v11926_v52 }
 0x273   :  { %9843 = vmatprep.subr.bf16.mxu0 %v11953_v51 }
 0x278   :  { %v8543_v7 = vpop.f32.mrb[8].mxu1 }
 0x279   :  { %v11854_v4 = vadd.f32 %v8543_v7, %v45_v33  ;;  %v2143_v34 = vpop.f32.mrb[9].mxu1  ;;  %v2310_v33 = vsub.f32 %v11958_v49, %v12920_v35  ;;  %v11976_v7 = vsub.f32 %v107_v11, %v2188_v48 }
 0x27a   :  { %v11856_v63 = vadd.f32 %v2143_v34, %v44_v62  ;;  %v2317_v62 = vsub.f32 %v11960_v37, %v12919_v1  ;;  %v11978_v34 = vsub.f32 %v108_v43, %v2191_v10  ;;  %v11992_v43 = vsub.f32 %v109_v22, %v2194_v26 }
 0x27b   :  { %2155 = vmax.xlane.f32.xlu1 %v11854_v4  ;;  %v2311_v29 = vand.u32 4294901760, %v2310_v33  ;;  %v12918_v53 = vand.u32 4294901760, %v11976_v7  ;;  %v2345_v22 = vsub.f32 %v11994_v42, %v12915_v24  ;;  %v12914_v26 = vand.u32 4294901760, %v12003_v19 }
 0x27c   :  { %2153 = vmax.xlane.f32.xlu0 %v11856_v63  ;;  %v2318_v9 = vand.u32 4294901760, %v2317_v62  ;;  %v12917_v12 = vand.u32 4294901760, %v11978_v34  ;;  %v12916_v8 = vand.u32 4294901760, %v11992_v43  ;;  %v2360_v62 = vand.u32 4294901760, %v2359_v39 }
 0x27d   :  { %v2324_v55 = vsub.f32 %v11976_v7, %v12918_v53  ;;  %v2346_v6 = vand.u32 4294901760, %v2345_v22  ;;  %v2352_v15 = vsub.f32 %v12003_v19, %v12914_v26  ;;  %v12044_v22 = vpack.c.bf16 %v11978_v34, %v11976_v7 }
 0x27e   :  { %v11984_v31 = vpack.c.bf16 %v2318_v9, %v2311_v29  ;;  %v2331_v11 = vsub.f32 %v11978_v34, %v12917_v12  ;;  %v2338_v20 = vsub.f32 %v11992_v43, %v12916_v8  ;;  %v12912_v29 = vand.u32 4294901760, %v12019_v0 }
 0x27f   :  { %v2325_v48 = vand.u32 4294901760, %v2324_v55  ;;  %v2353_v33 = vand.u32 4294901760, %v2352_v15  ;;  %v12911_v9 = vand.u32 4294901760, %v12022_v28  ;;  %v12056_v15 = vpack.c.bf16 %v12022_v28, %v12019_v0 }
 0x280   :  { %v2332_v10 = vand.u32 4294901760, %v2331_v11  ;;  %v2339_v2 = vand.u32 4294901760, %v2338_v20  ;;  %v2366_v11 = vsub.f32 %v12019_v0, %v12912_v29  ;;  %v12040_v20 = vpack.c.bf16 %v11960_v37, %v11958_v49 }
 0x281   :  { %v9866_v55 = vpack.c.bf16 %v2360_v62, %v2353_v33  ;;  %v2373_v5 = vsub.f32 %v12022_v28, %v12911_v9  ;;  %v12068_v9 = vsub.f32 %v11738_v47, %v2173_v30 }
 0x282   :  { %v11998_v61 = vpack.c.bf16 %v2332_v10, %v2325_v48  ;;  %v9862_v38 = vpack.c.bf16 %v2346_v6, %v2339_v2  ;;  %v2367_v16 = vand.u32 4294901760, %v2366_v11  ;;  %v12036_v10 = vpack.c.bf16 %v11951_v54, %v11949_v13 }
 0x283   :  { %v2374_v48 = vand.u32 4294901760, %v2373_v5  ;;  %v12048_v2 = vpack.c.bf16 %v11994_v42, %v11992_v43  ;;  %v12052_v6 = vpack.c.bf16 %v12005_v3, %v12003_v19 }
 0x285   :  { %v9870_v36 = vpack.c.bf16 %v2374_v48, %v2367_v16  ;;  %v12063_v48 = vsub.f32 %v11731_v41, %v2170_v32 }
 0x287   :  { %v12925_v29 = vand.u32 4294901760, %v12063_v48 }
 0x289   :  { %v2282_v47 = vsub.f32 %v12063_v48, %v12925_v29  ;;  %v84_v29 = vld [vmem:[%s12887_s4 + $0x130] sm:$0xff] }
 0x28b   :  { %v2283_v58 = vand.u32 4294901760, %v2282_v47  ;;  %v77_v47 = vld [vmem:[%s12887_s4 + $0xf8] sm:$0xff] }
 0x308   :  { %v2156_v39 = vpop.xlane.xlu1 %2155 }
 0x309   :  { %v2158_v33 = vsub.f32 %v11854_v4, %v2156_v39  ;;  %v2154_v62 = vpop.xlane.xlu0 %2153  ;;  %v12924_v4 = vand.u32 4294901760, %v12068_v9 }
 0x30a   :  { %v2157_v11 = vsub.f32 %v11856_v63, %v2154_v62 }
 0x30b   :  { %v2161_v5 = vmul.f32 1.442695, %v2158_v33  ;;  %v2289_v32 = vsub.f32 %v12068_v9, %v12924_v4 }
 0x30c   :  { %v2159_v16 = vmul.f32 1.442695, %v2157_v11 }
 0x30d   :  { %10802 = vpow2.f32 %v2161_v5  ;;  %v2290_v26 = vand.u32 4294901760, %v2289_v32 }
 0x30e   :  { %10804 = vpow2.f32 %v2159_v16 }
 0x30f   :  { %v9846_v53 = vpack.c.bf16 %v2290_v26, %v2283_v58 }
 0x317   :  { %v12072_v39 = vpop.eup %10802 }
 0x318   :  { %12958 = vst [vmem:[#allocation3_spill] sm:$0xff] %v12072_v39  ;;  %v12074_v63 = vpop.eup %10804  ;;  %v12077_v33 = vand.u32 4294901760, %v12072_v39 }
 0x319   :  { %12959 = vst [vmem:[#allocation4_spill] sm:$0xff] %v12074_v63  ;;  %v12080_v62 = vand.u32 4294901760, %v12074_v63 }
 0x31a   :  { %v12084_v41 = vsub.f32 %v12072_v39, %v12077_v33 }
 0x31b   :  { %v12094_v30 = vsub.f32 %v12074_v63, %v12080_v62 }
 0x31c   :  { %v12923_v11 = vand.u32 4294901760, %v12084_v41 }
 0x31d   :  { %v12928_v5 = vand.u32 4294901760, %v12094_v30 }
 0x31e   :  { %v2257_v16 = vsub.f32 %v12084_v41, %v12923_v11 }
 0x31f   :  { %v2247_v24 = vsub.f32 %v12094_v30, %v12928_v5 }
 0x320   :  { %v2258_v12 = vand.u32 4294901760, %v2257_v16 }
 0x321   :  { %v2248_v8 = vand.u32 4294901760, %v2247_v24 }
 0x323   :  { %8576 = vmatprep.mubr.f32.mxu0 %v2248_v8  ;;  %v8924_v8 = vpop.f32.mrb[10].mxu1 }
 0x324   :  { %8577 = vmatmul.mubr.f32.vlgmr.msra.gmra.mrb[2].mxu0 %v2258_v12  ;;  %v9878_v12 = vpack.c.bf16 %v12068_v9, %v12063_v48  ;;  %v3941_v26 = vpop.f32.mrb[11].mxu1 }
 0x325   :  { %9845 = vmatpush3.bf16.msra.mxu0 %v11953_v51  ;;  %8611 = vmatprep.mubr.f32.mxu0 %v12080_v62  ;;  %v2855_v51 = vsub.s32 4, %v11323_v25 }
 0x326   :  { %9847 = vmatprep.subr.bf16.mxu0 %v9846_v53 }
 0x329   :  { %9849 = vmatpush3.bf16.msra.mxu0 %v9846_v53  ;;  %v10816_v53 = vld [vmem:[%s12887_s4] sm:$0xff] }
 0x32a   :  { %9851 = vmatprep.subr.bf16.mxu0 %v11980_v27 }
 0x32d   :  { %9853 = vmatpush3.bf16.msra.mxu0 %v11980_v27  ;;  %v12116_v27 = vrot.slane %v10816_v53, %v2855_v51  ;;  %v80_v53 = vld [vmem:[%s12887_s4 + $0x110] sm:$0xff] }
 0x32e   :  { %9855 = vmatprep.subr.bf16.mxu0 %v11984_v31 }
 0x32f   :  { %v10560_v24 = vadd.f32 %v8924_v8, %v12116_v27  ;;  %v10561_v58 = vadd.f32 %v3941_v26, %v12116_v27 }
 0x331   :  { %9857 = vmatpush3.bf16.msra.mxu0 %v11984_v31  ;;  %v76_v31 = vld [vmem:[%s12887_s4 + $0xf0] sm:$0xff] }
 0x332   :  { %9859 = vmatprep.subr.bf16.mxu0 %v11998_v61 }
 0x335   :  { %9861 = vmatpush3.bf16.msra.mxu0 %v11998_v61  ;;  %v75_v61 = vld [vmem:[%s12887_s4 + $0xe8] sm:$0xff] }
 0x336   :  { %9863 = vmatprep.subr.bf16.mxu0 %v9862_v38  ;;  %v12139_v16 = vmul.f32 %v10561_v58, %v75_v61 }
 0x338   :  { %v12929_v61 = vand.u32 4294901760, %v12139_v16 }
 0x339   :  { %9865 = vmatpush3.bf16.msra.mxu0 %v9862_v38  ;;  %v78_v38 = vld [vmem:[%s12887_s4 + $0x100] sm:$0xff] }
 0x33a   :  { %9867 = vmatprep.subr.bf16.mxu0 %v9866_v55 }
 0x33d   :  { %9869 = vmatpush3.bf16.msra.mxu0 %v9866_v55  ;;  %v8927_v55 = vpop.f32.mrb[12].mxu1 }
 0x33e   :  { %9871 = vmatprep.subr.bf16.mxu0 %v9870_v36  ;;  %v3953_v32 = vpop.f32.mrb[13].mxu1 }
 0x33f   :  { %v10563_v51 = vadd.f32 %v3953_v32, %v12116_v27  ;;  %v8930_v8 = vpop.f32.mrb[14].mxu1 }
 0x340   :  { %v10564_v26 = vadd.f32 %v8930_v8, %v12116_v27  ;;  %v3965_v1 = vpop.f32.mrb[15].mxu1 }
 0x341   :  { %9873 = vmatpush3.bf16.msra.mxu0 %v9870_v36  ;;  %v12133_v36 = vmul.f32 %v10560_v24, %v76_v31  ;;  %v4037_v58 = vmul.f32 %v10563_v51, %v77_v47  ;;  %v10565_v32 = vadd.f32 %v3965_v1, %v12116_v27  ;;  %v8933_v35 = vpop.f32.mrb[16].mxu1  ;;  %v81_v1 = vld [vmem:[%s12887_s4 + $0x118] sm:$0xff] }
 0x342   :  { %9875 = vmatprep.subr.bf16.mxu0 %v9874_v44  ;;  %v10566_v8 = vadd.f32 %v8933_v35, %v12116_v27  ;;  %v3977_v46 = vpop.f32.mrb[17].mxu1 }
 0x343   :  { %v12930_v31 = vand.u32 4294901760, %v12133_v36  ;;  %v4058_v11 = vand.u32 4294901760, %v4037_v58  ;;  %v8936_v51 = vpop.f32.mrb[18].mxu1 }
 0x344   :  { %8612 = vmatmul.mubr.f32.vlgmr.msra.gmra.mrb[2].mxu0 %v12077_v33  ;;  %v3989_v21 = vpop.f32.mrb[19].mxu1 }
 0x345   :  { %9877 = vmatpush3.bf16.msra.mxu0 %v9874_v44  ;;  %8646 = vmatprep.mubr.f32.mxu0 %v12094_v30  ;;  %v10562_v44 = vadd.f32 %v8927_v55, %v12116_v27  ;;  %v79_v55 = vld [vmem:[%s12887_s4 + $0x108] sm:$0xff]  ;;  %v12161_v59 = vpack.c.bf16 %v12930_v31, %v12929_v61  ;;  %v10569_v61 = vadd.f32 %v3989_v21, %v12116_v27 }
 0x346   :  { %9879 = vmatprep.subr.bf16.mxu0 %v9878_v12  ;;  %v4039_v47 = vmul.f32 %v10565_v32, %v79_v55  ;;  %v12176_v32 = vsub.f32 %v4037_v58, %v4058_v11 }
 0x347   :  { %v4038_v24 = vmul.f32 %v10562_v44, %v78_v38  ;;  %v4040_v44 = vmul.f32 %v10564_v26, %v80_v53  ;;  %12960 = vst [vmem:[#allocation5_spill] sm:$0xff] %v12161_v59  ;;  %v10567_v26 = vadd.f32 %v3977_v46, %v12116_v27 }
 0x348   :  { %v4064_v50 = vand.u32 4294901760, %v4039_v47 }
 0x349   :  { %9881 = vmatpush3.bf16.msra.mxu0 %v9878_v12  ;;  %v82_v12 = vld [vmem:[%s12887_s4 + $0x120] sm:$0xff]  ;;  %v4061_v38 = vand.u32 4294901760, %v4038_v24  ;;  %v4067_v53 = vand.u32 4294901760, %v4040_v44  ;;  %v4041_v5 = vmul.f32 %v10567_v26, %v81_v1 }
 0x34a   :  { %9883 = vmatprep.subr.bf16.mxu0 %v12036_v10  ;;  %v4042_v35 = vmul.f32 %v10566_v8, %v82_v12  ;;  %v8939_v12 = vpop.f32.mrb[20].mxu1  ;;  %v12190_v31 = vsub.f32 %v4039_v47, %v4064_v50 }
 0x34b   :  { %v12167_v4 = vsub.f32 %v4038_v24, %v4061_v38  ;;  %v12174_v55 = vpack.c.bf16 %v4061_v38, %v4058_v11  ;;  %v83_v24 = vld [vmem:[%s12887_s4 + $0x128] sm:$0xff]  ;;  %v12182_v46 = vsub.f32 %v4040_v44, %v4067_v53  ;;  %v86_v38 = vld [vmem:[%s12887_s4 + $0x140] sm:$0xff]  ;;  %v4001_v11 = vpop.f32.mrb[21].mxu1  ;;  %v12188_v58 = vpack.c.bf16 %v4067_v53, %v4064_v50  ;;  %v85_v44 = vld [vmem:[%s12887_s4 + $0x138] sm:$0xff] }
 0x34c   :  { %v4073_v8 = vand.u32 4294901760, %v4042_v35  ;;  %v10570_v25 = vadd.f32 %v8939_v12, %v12116_v27  ;;  %v4070_v21 = vand.u32 4294901760, %v4041_v5  ;;  %v4043_v26 = vmul.f32 %v10569_v61, %v83_v24  ;;  %v88_v50 = vld [vmem:[%s12887_s4 + $0x150] sm:$0xff]  ;;  %v8942_v47 = vpop.f32.mrb[22].mxu1  ;;  %v87_v24 = vld [vmem:[%s12887_s4 + $0x148] sm:$0xff] }
 0x34d   :  { %9885 = vmatpush3.bf16.msra.mxu0 %v12036_v10  ;;  %12961 = vst [vmem:[#allocation6_spill] sm:$0xff] %v12174_v55  ;;  %v10568_v10 = vadd.f32 %v8936_v51, %v12116_v27  ;;  %12962 = vst [vmem:[#allocation7_spill] sm:$0xff] %v12188_v58  ;;  %v10571_v63 = vadd.f32 %v4001_v11, %v12116_v27  ;;  %v4013_v12 = vpop.f32.mrb[23].mxu1 }
 0x34e   :  { %9887 = vmatprep.subr.bf16.mxu0 %v12040_v20  ;;  %v12197_v1 = vsub.f32 %v4042_v35, %v4073_v8  ;;  %v4046_v53 = vmul.f32 %v10570_v25, %v86_v38  ;;  %v12205_v39 = vpack.c.bf16 %v4073_v8, %v4070_v21  ;;  %v4076_v35 = vand.u32 4294901760, %v4043_v26  ;;  %v8945_v38 = vpop.f32.mrb[24].mxu1 }
 0x34f   :  { %v4044_v51 = vmul.f32 %v10568_v10, %v84_v29  ;;  %v10572_v10 = vadd.f32 %v8942_v47, %v12116_v27  ;;  %v4045_v61 = vmul.f32 %v10571_v63, %v85_v44  ;;  %v10573_v59 = vadd.f32 %v4013_v12, %v12116_v27  ;;  %v90_v63 = vld [vmem:[%s12887_s4 + $0x160] sm:$0xff] }
 0x350   :  { %v4085_v58 = vand.u32 4294901760, %v4046_v53  ;;  %v12218_v8 = vsub.f32 %v4043_v26, %v4076_v35  ;;  %v4025_v26 = vpop.f32.mrb[25].mxu1 }
 0x351   :  { %9889 = vmatpush3.bf16.msra.mxu0 %v12040_v20  ;;  %v4079_v29 = vand.u32 4294901760, %v4044_v51  ;;  %v12207_v20 = vsub.f32 %v4041_v5, %v4070_v21  ;;  %v4048_v55 = vmul.f32 %v10572_v10, %v88_v50  ;;  %v4082_v5 = vand.u32 4294901760, %v4045_v61 }
 0x352   :  { %9891 = vmatprep.subr.bf16.mxu0 %v12044_v22  ;;  %v4047_v21 = vmul.f32 %v10573_v59, %v87_v24  ;;  %v10574_v50 = vadd.f32 %v8945_v38, %v12116_v27  ;;  %v10575_v10 = vadd.f32 %v4025_v26, %v12116_v27  ;;  %v12965_v27 = vand.u32 4294901760, %v12133_v36 }
 0x353   :  { %v12212_v11 = vsub.f32 %v4044_v51, %v4079_v29  ;;  %v12216_v25 = vpack.c.bf16 %v4079_v29, %v4076_v35  ;;  %v12224_v51 = vsub.f32 %v4046_v53, %v4085_v58  ;;  %v4091_v44 = vand.u32 4294901760, %v4048_v55 }
 0x354   :  { %v12230_v47 = vpack.c.bf16 %v4085_v58, %v4082_v5  ;;  %v12232_v29 = vsub.f32 %v4045_v61, %v4082_v5  ;;  %v4088_v35 = vand.u32 4294901760, %v4047_v21  ;;  %v4050_v53 = vmul.f32 %v10574_v50, %v90_v63 }
 0x355   :  { %9893 = vmatpush3.bf16.msra.mxu0 %v12044_v22  ;;  %12963 = vst [vmem:[#allocation8_spill] sm:$0xff] %v12216_v25  ;;  %v89_v22 = vld [vmem:[%s12887_s4 + $0x158] sm:$0xff]  ;;  %v12235_v12 = vsub.f32 %v4048_v55, %v4091_v44  ;;  %v4161_v55 = vsub.f32 %v12133_v36, %v12965_v27  ;;  %v12966_v61 = vand.u32 4294901760, %v12139_v16  ;;  %v12967_v36 = vand.u32 4294901760, %v12094_v30 }
 0x356   :  { %9895 = vmatprep.subr.bf16.mxu0 %v12048_v2  ;;  %12964 = vst [vmem:[#allocation9_spill] sm:$0xff] %v12230_v47  ;;  %v4049_v59 = vmul.f32 %v10575_v10, %v89_v22  ;;  %v12239_v24 = vpack.c.bf16 %v4091_v44, %v4088_v35  ;;  %v12241_v38 = vsub.f32 %v4047_v21, %v4088_v35  ;;  %v4097_v25 = vand.u32 4294901760, %v4050_v53 }
 0x357   :  { %v4162_v21 = vand.u32 4294901760, %v4161_v55  ;;  %v4169_v30 = vand.u32 4294901760, %v12176_v32  ;;  %v4176_v26 = vand.u32 4294901760, %v12167_v4  ;;  %v12969_v27 = vand.u32 4294901760, %v11936_v17 }
 0x358   :  { %v4094_v58 = vand.u32 4294901760, %v4049_v59  ;;  %v12243_v47 = vsub.f32 %v4050_v53, %v4097_v25  ;;  %v12970_v17 = vand.u32 4294901760, %v12063_v48 }
 0x359   :  { %9897 = vmatpush3.bf16.msra.mxu0 %v12048_v2  ;;  %v4154_v2 = vsub.f32 %v12139_v16, %v12966_v61  ;;  %v4163_v50 = vsub.f32 %v4161_v55, %v4162_v21  ;;  %v4170_v35 = vsub.f32 %v12176_v32, %v4169_v30  ;;  %v4177_v53 = vsub.f32 %v12167_v4, %v4176_v26 }
 0x35a   :  { %9899 = vmatprep.subr.bf16.mxu0 %v12052_v6  ;;  %v12252_v5 = vpack.c.bf16 %v4097_v25, %v4094_v58  ;;  %v12254_v63 = vsub.f32 %v4049_v59, %v4094_v58  ;;  %v12286_v59 = vpack.c.bf16 %v12167_v4, %v12176_v32  ;;  %v12968_v58 = vand.u32 4294901760, %v11931_v18 }
 0x35b   :  { %v4155_v44 = vand.u32 4294901760, %v4154_v2  ;;  %v4164_v25 = vand.u32 4294901760, %v4163_v50  ;;  %v4171_v61 = vand.u32 4294901760, %v4170_v35  ;;  %v12304_v18 = vpack.c.bf16 %v12182_v46, %v12190_v31 }
 0x35c   :  { %v4204_v35 = vand.u32 4294901760, %v12197_v1 }
 0x35d   :  { %9901 = vmatpush3.bf16.msra.mxu0 %v12052_v6  ;;  %v4156_v6 = vsub.f32 %v4154_v2, %v4155_v44  ;;  %v12280_v10 = vpack.c.bf16 %v4162_v21, %v4155_v44  ;;  %v4183_v44 = vand.u32 4294901760, %v12190_v31  ;;  %v4190_v21 = vand.u32 4294901760, %v12182_v46 }
 0x35e   :  { %9903 = vmatprep.subr.bf16.mxu0 %v12056_v15  ;;  %v4205_v48 = vsub.f32 %v12197_v1, %v4204_v35 }
 0x35f   :  { %v4157_v16 = vand.u32 4294901760, %v4156_v6  ;;  %v12296_v6 = vpack.c.bf16 %v4176_v26, %v4169_v30  ;;  %v4184_v4 = vsub.f32 %v12190_v31, %v4183_v44  ;;  %v4191_v32 = vsub.f32 %v12182_v46, %v4190_v21 }
 0x360   :  { %v4197_v26 = vand.u32 4294901760, %v12207_v20 }
 0x361   :  { %9905 = vmatpush3.bf16.msra.mxu0 %v12056_v15  ;;  %v12264_v22 = vpack.c.bf16 %v4164_v25, %v4157_v16  ;;  %v12274_v15 = vpack.c.bf16 %v4161_v55, %v4154_v2  ;;  %v9938_v55 = vpack.c.bf16 %v12969_v27, %v12968_v58  ;;  %v4178_v2 = vand.u32 4294901760, %v4177_v53 }
 0x362   :  { %9907 = vmatprep.subr.bf16.mxu0 %v11746_v56  ;;  %v4185_v25 = vand.u32 4294901760, %v4184_v4  ;;  %v4192_v30 = vand.u32 4294901760, %v4191_v32  ;;  %v12313_v53 = vpack.c.bf16 %v4190_v21, %v4183_v44  ;;  %v12972_v58 = vand.u32 4294901760, %v12084_v41 }
 0x363   :  { %v12298_v50 = vpack.c.bf16 %v4178_v2, %v4171_v61  ;;  %v4198_v46 = vsub.f32 %v12207_v20, %v4197_v26  ;;  %v12973_v27 = vand.u32 4294901760, %v11949_v13  ;;  %v12974_v61 = vand.u32 4294901760, %v11951_v54 }
 0x364   :  { %8647 = vmatmul.mubr.f32.vlgmr.msra.gmra.mrb[2].mxu0 %v12084_v41  ;;  %v12317_v31 = vpack.c.bf16 %v4192_v30, %v4185_v25  ;;  %v4206_v44 = vand.u32 4294901760, %v4205_v48  ;;  %v4211_v21 = vand.u32 4294901760, %v12218_v8  ;;  %v4218_v4 = vand.u32 4294901760, %v12212_v11 }
 0x365   :  { %9909 = vmatpush3.bf16.msra.mxu0 %v11746_v56  ;;  %8681 = vmatprep.mubr.f32.mxu0 %v12967_v36  ;;  %v12971_v36 = vand.u32 4294901760, %v12068_v9  ;;  %v12323_v9 = vpack.c.bf16 %v12197_v1, %v12207_v20  ;;  %v9946_v2 = vpack.c.bf16 %v12974_v61, %v12973_v27  ;;  %v4199_v41 = vand.u32 4294901760, %v4198_v46 }
 0x366   :  { %9911 = vmatprep.subr.bf16.mxu0 %v11752_v40  ;;  %v12332_v32 = vpack.c.bf16 %v4204_v35, %v4197_v26  ;;  %v4212_v1 = vsub.f32 %v12218_v8, %v4211_v21  ;;  %v4219_v20 = vsub.f32 %v12212_v11, %v4218_v4  ;;  %v12340_v13 = vpack.c.bf16 %v12212_v11, %v12218_v8 }
 0x367   :  { %v9942_v16 = vpack.c.bf16 %v12971_v36, %v12970_v17  ;;  %v12334_v17 = vpack.c.bf16 %v4206_v44, %v4199_v41  ;;  %v12975_v54 = vand.u32 4294901760, %v11958_v49  ;;  %v4225_v26 = vand.u32 4294901760, %v12232_v29 }
 0x368   :  { %v4213_v25 = vand.u32 4294901760, %v4212_v1  ;;  %v4220_v30 = vand.u32 4294901760, %v4219_v20  ;;  %v4232_v35 = vand.u32 4294901760, %v12224_v51  ;;  %v12356_v49 = vpack.c.bf16 %v12224_v51, %v12232_v29 }
 0x369   :  { %9913 = vmatpush3.bf16.msra.mxu0 %v11752_v40  ;;  %v4226_v11 = vsub.f32 %v12232_v29, %v4225_v26  ;;  %v4239_v41 = vand.u32 4294901760, %v12241_v38  ;;  %v4246_v44 = vand.u32 4294901760, %v12235_v12 }
 0x36a   :  { %9915 = vmatprep.subr.bf16.mxu0 %v11883_v45  ;;  %v12350_v46 = vpack.c.bf16 %v4220_v30, %v4213_v25  ;;  %v4233_v8 = vsub.f32 %v12224_v51, %v4232_v35  ;;  %v4260_v25 = vand.u32 4294901760, %v12243_v47 }
 0x36b   :  { %v4227_v27 = vand.u32 4294901760, %v4226_v11  ;;  %v4240_v51 = vsub.f32 %v12241_v38, %v4239_v41  ;;  %v4247_v29 = vsub.f32 %v12235_v12, %v4246_v44  ;;  %v12380_v30 = vpack.c.bf16 %v4246_v44, %v4239_v41 }
 0x36c   :  { %v4234_v61 = vand.u32 4294901760, %v4233_v8 }
 0x36d   :  { %9917 = vmatpush3.bf16.msra.mxu0 %v11883_v45  ;;  %v4241_v20 = vand.u32 4294901760, %v4240_v51 }
 0x36e   :  { %9919 = vmatprep.subr.bf16.mxu0 %v11885_v14 }
 0x371   :  { %9921 = vmatpush3.bf16.msra.mxu0 %v11885_v14 }
 0x372   :  { %9923 = vmatprep.subr.bf16.mxu0 %v11896_v23 }
 0x375   :  { %9925 = vmatpush3.bf16.msra.mxu0 %v11896_v23 }
 0x376   :  { %9927 = vmatprep.subr.bf16.mxu0 %v11906_v57 }
 0x379   :  { %9929 = vmatpush3.bf16.msra.mxu0 %v11906_v57 }
 0x37a   :  { %9931 = vmatprep.subr.bf16.mxu0 %v11920_v60 }
 0x37d   :  { %9933 = vmatpush3.bf16.msra.mxu0 %v11920_v60 }
 0x37e   :  { %9935 = vmatprep.subr.bf16.mxu0 %v11926_v52 }
 0x381   :  { %9937 = vmatpush3.bf16.msra.mxu0 %v11926_v52 }
 0x382   :  { %9939 = vmatprep.subr.bf16.mxu0 %v9938_v55 }
 0x384   :  { %8682 = vmatmul.mubr.f32.vlgmr.msra.gmra.mrb[2].mxu0 %v12972_v58  ;;  %v12348_v58 = vpack.c.bf16 %v4218_v4, %v4211_v21  ;;  %v12364_v21 = vpack.c.bf16 %v4232_v35, %v4225_v26  ;;  %v12366_v4 = vpack.c.bf16 %v4234_v61, %v4227_v27  ;;  %v12983_v27 = vand.u32 4294901760, %v12019_v0 }
 0x385   :  { %9941 = vmatpush3.bf16.msra.mxu0 %v9938_v55  ;;  %8716 = vmatprep.mubr.f32.mxu0 %v12080_v62  ;;  %v12976_v55 = vand.u32 4294901760, %v11960_v37  ;;  %v12977_v37 = vand.u32 4294901760, %v11976_v7  ;;  %v12372_v7 = vpack.c.bf16 %v12235_v12, %v12241_v38  ;;  %v4261_v38 = vsub.f32 %v12243_v47, %v4260_v25 }
 0x386   :  { %9943 = vmatprep.subr.bf16.mxu0 %v9942_v16 }
 0x387   :  { %v9950_v36 = vpack.c.bf16 %v12976_v55, %v12975_v54  ;;  %v4248_v54 = vand.u32 4294901760, %v4247_v29  ;;  %v4253_v55 = vand.u32 4294901760, %v12254_v63  ;;  %v4262_v8 = vand.u32 4294901760, %v4261_v38 }
 0x389   :  { %9945 = vmatpush3.bf16.msra.mxu0 %v9942_v16  ;;  %v12978_v16 = vand.u32 4294901760, %v11978_v34  ;;  %v12979_v34 = vand.u32 4294901760, %v11992_v43  ;;  %v12382_v26 = vpack.c.bf16 %v4248_v54, %v4241_v20  ;;  %v4254_v12 = vsub.f32 %v12254_v63, %v4253_v55 }
 0x38a   :  { %9947 = vmatprep.subr.bf16.mxu0 %v9946_v2  ;;  %v12388_v43 = vpack.c.bf16 %v12243_v47, %v12254_v63  ;;  %v12984_v47 = vand.u32 4294901760, %v12022_v28  ;;  %v12991_v28 = vld [vmem:[#allocation4_spill] sm:$0xff] }
 0x38b   :  { %v9954_v48 = vpack.c.bf16 %v12978_v16, %v12977_v37  ;;  %v4255_v11 = vand.u32 4294901760, %v4254_v12  ;;  %v12394_v37 = vpack.c.bf16 %v4260_v25, %v4253_v55 }
 0x38c   :  { %v9966_v63 = vpack.c.bf16 %v12984_v47, %v12983_v27 }
 0x38d   :  { %9949 = vmatpush3.bf16.msra.mxu0 %v9946_v2  ;;  %v12980_v2 = vand.u32 4294901760, %v11994_v42  ;;  %v12981_v42 = vand.u32 4294901760, %v12003_v19  ;;  %v12396_v16 = vpack.c.bf16 %v4262_v8, %v4255_v11 }
 0x38e   :  { %9951 = vmatprep.subr.bf16.mxu0 %v9950_v36 }
 0x38f   :  { %v9958_v1 = vpack.c.bf16 %v12980_v2, %v12979_v34 }
 0x391   :  { %9953 = vmatpush3.bf16.msra.mxu0 %v9950_v36  ;;  %v12982_v36 = vand.u32 4294901760, %v12005_v3  ;;  %v12990_v3 = vld [vmem:[#allocation3_spill] sm:$0xff] }
 0x392   :  { %9955 = vmatprep.subr.bf16.mxu0 %v9954_v48 }
 0x393   :  { %v9962_v35 = vpack.c.bf16 %v12982_v36, %v12981_v42 }
 0x395   :  { %9957 = vmatpush3.bf16.msra.mxu0 %v9954_v48 }
 0x396   :  { %9959 = vmatprep.subr.bf16.mxu0 %v9958_v1 }
 0x399   :  { %9961 = vmatpush3.bf16.msra.mxu0 %v9958_v1 }
 0x39a   :  { %9963 = vmatprep.subr.bf16.mxu0 %v9962_v35 }
 0x39d   :  { %9965 = vmatpush3.bf16.msra.mxu0 %v9962_v35 }
 0x39e   :  { %9967 = vmatprep.subr.bf16.mxu0 %v9966_v63 }
 0x3a1   :  { %9969 = vmatpush3.bf16.msra.mxu0 %v9966_v63 }
 0x3a2   :  { %9971 = vmatprep.subr.bf16.mxu0 %v11746_v56 }
 0x3a4   :  { %8717 = vmatmul.mubr.f32.vlgmr.msra.gmra.mrb[2].mxu0 %v12077_v33 }
 0x3a5   :  { %9973 = vmatpush3.bf16.msra.mxu0 %v11746_v56  ;;  %8751 = vmatprep.mubr.f32.mxu0 %v12080_v62  ;;  %v12985_v56 = vld [vmem:[#allocation5_spill] sm:$0xff] }
 0x3a6   :  { %9975 = vmatprep.subr.bf16.mxu0 %v11752_v40 }
 0x3a9   :  { %9977 = vmatpush3.bf16.msra.mxu0 %v11752_v40  ;;  %v12986_v40 = vld [vmem:[#allocation6_spill] sm:$0xff] }
 0x3aa   :  { %9979 = vmatprep.subr.bf16.mxu0 %v11883_v45 }
 0x3ad   :  { %9981 = vmatpush3.bf16.msra.mxu0 %v11883_v45  ;;  %v12987_v45 = vld [vmem:[#allocation7_spill] sm:$0xff] }
 0x3ae   :  { %9983 = vmatprep.subr.bf16.mxu0 %v11885_v14 }
 0x3b1   :  { %9985 = vmatpush3.bf16.msra.mxu0 %v11885_v14  ;;  %v12988_v14 = vld [vmem:[#allocation8_spill] sm:$0xff] }
 0x3b2   :  { %9987 = vmatprep.subr.bf16.mxu0 %v11896_v23 }
 0x3b5   :  { %9989 = vmatpush3.bf16.msra.mxu0 %v11896_v23  ;;  %v12989_v23 = vld [vmem:[#allocation9_spill] sm:$0xff] }
 0x3b6   :  { %9991 = vmatprep.subr.bf16.mxu0 %v11906_v57 }
 0x3b9   :  { %9993 = vmatpush3.bf16.msra.mxu0 %v11906_v57 }
 0x3ba   :  { %9995 = vmatprep.subr.bf16.mxu0 %v11920_v60 }
 0x3bd   :  { %9997 = vmatpush3.bf16.msra.mxu0 %v11920_v60 }
 0x3be   :  { %9999 = vmatprep.subr.bf16.mxu0 %v11926_v52 }
 0x3c1   :  { %10001 = vmatpush3.bf16.msra.mxu0 %v11926_v52 }
 0x3c2   :  { %10051 = vmatprep.subr.bf16.mxu0 %v12985_v56 }
 0x3c4   :  { %8752 = vmatmul.mubr.f32.vlgmr.msra.gmra.mrb[2].mxu0 %v12077_v33 }
 0x3c5   :  { %10053 = vmatpush3.bf16.msra.mxu0 %v12985_v56 }
 0x3c6   :  { %10055 = vmatprep.subr.bf16.mxu0 %v12986_v40 }
 0x3c9   :  { %10057 = vmatpush3.bf16.msra.mxu0 %v12986_v40 }
 0x3ca   :  { %10059 = vmatprep.subr.bf16.mxu0 %v12987_v45 }
 0x3cd   :  { %10061 = vmatpush3.bf16.msra.mxu0 %v12987_v45 }
 0x3ce   :  { %10063 = vmatprep.subr.bf16.mxu0 %v12205_v39 }
 0x3d1   :  { %10065 = vmatpush3.bf16.msra.mxu0 %v12205_v39 }
 0x3d2   :  { %10067 = vmatprep.subr.bf16.mxu0 %v12988_v14 }
 0x3d5   :  { %10069 = vmatpush3.bf16.msra.mxu0 %v12988_v14 }
 0x3d6   :  { %10071 = vmatprep.subr.bf16.mxu0 %v12989_v23 }
 0x3d9   :  { %10073 = vmatpush3.bf16.msra.mxu0 %v12989_v23 }
 0x3da   :  { %10075 = vmatprep.subr.bf16.mxu0 %v12239_v24 }
 0x3dd   :  { %10077 = vmatpush3.bf16.msra.mxu0 %v12239_v24 }
 0x3de   :  { %10079 = vmatprep.subr.bf16.mxu0 %v12252_v5 }
 0x3e1   :  { %10081 = vmatpush3.bf16.msra.mxu0 %v12252_v5 }
 0x3e2   :  { %10083 = vmatprep.subr.bf16.mxu0 %v12264_v22 }
 0x497   :  { %v8753_v57 = vpop.f32.mrb[2].mxu0 }
 0x498   :  { %10806 = vrcp.f32 %v8753_v57  ;;  %v2837_v60 = vpop.f32.mrb[3].mxu0 }
 0x499   :  { %10808 = vrcp.f32 %v2837_v60 }
 0x4a2   :  { %v10807_v52 = vpop.eup %10806 }
 0x4a3   :  { %v10809_v19 = vpop.eup %10808  ;;  %v2850_v0 = vmul.f32 %v10807_v52, %v12990_v3 }
 0x4a4   :  { %v2848_v33 = vmul.f32 %v10809_v19, %v12991_v28 }
 0x4a5   :  { %2852 = vst [vmem:[%s12892_s6 + $0x8] sm:$0xff] %v2850_v0  ;;  %v12443_v62 = vand.u32 4294901760, %v2850_v0 }
 0x4a6   :  { %2851 = vst [vmem:[%s12892_s6] sm:$0xff] %v2848_v33  ;;  %v12448_v48 = vand.u32 4294901760, %v2848_v33 }
 0x4a7   :  { %v12451_v61 = vsub.f32 %v2850_v0, %v12443_v62 }
 0x4a8   :  { %v4133_v41 = vsub.f32 %v2848_v33, %v12448_v48 }
 0x4a9   :  { %v4144_v44 = vand.u32 4294901760, %v12451_v61 }
 0x4aa   :  { %v4134_v51 = vand.u32 4294901760, %v4133_v41 }
 0x4ab   :  { %v4145_v29 = vsub.f32 %v12451_v61, %v4144_v44 }
 0x4ac   :  { %v4135_v34 = vsub.f32 %v4133_v41, %v4134_v51 }
 0x4ad   :  { %v4146_v1 = vand.u32 4294901760, %v4145_v29 }
 0x4ae   :  { %v4136_v2 = vand.u32 4294901760, %v4135_v34 }
 0x4b0   :  { %8978 = vmatprep.mubr.f32.mxu0 %v4136_v2 }
 0x4b1   :  { %8979 = vmatmul.mubr.f32.vlgmr.msra.gmra.mrb[4].mxu0 %v4146_v1 }
 0x4b2   :  { %10085 = vmatpush3.bf16.msra.mxu0 %v12264_v22  ;;  %9013 = vmatprep.mubr.f32.mxu0 %v12448_v48  ;;  %v12479_v22 = vld [vmem:[%s12887_s4 + $0x168] sm:$0xff] }
 0x4b3   :  { %10087 = vmatprep.subr.bf16.mxu0 %v12298_v50 }
 0x4b6   :  { %10089 = vmatpush3.bf16.msra.mxu0 %v12298_v50  ;;  %v12484_v50 = vld [vmem:[%s12887_s4 + $0x170] sm:$0xff] }
 0x4b7   :  { %10091 = vmatprep.subr.bf16.mxu0 %v12317_v31 }
 0x4ba   :  { %10093 = vmatpush3.bf16.msra.mxu0 %v12317_v31  ;;  %v12489_v31 = vld [vmem:[%s12887_s4 + $0x178] sm:$0xff] }
 0x4bb   :  { %10095 = vmatprep.subr.bf16.mxu0 %v12334_v17  ;;  %v4752_v20 = vand.u32 4294901760, %v12489_v31 }
 0x4bd   :  { %v4854_v33 = vsub.f32 %v12489_v31, %v4752_v20 }
 0x4be   :  { %10097 = vmatpush3.bf16.msra.mxu0 %v12334_v17  ;;  %v4746_v17 = vand.u32 4294901760, %v12479_v22 }
 0x4bf   :  { %10099 = vmatprep.subr.bf16.mxu0 %v12350_v46 }
 0x4c2   :  { %10101 = vmatpush3.bf16.msra.mxu0 %v12350_v46  ;;  %v4749_v46 = vand.u32 4294901760, %v12484_v50 }
 0x4c3   :  { %10103 = vmatprep.subr.bf16.mxu0 %v12366_v4 }
 0x4c6   :  { %10105 = vmatpush3.bf16.msra.mxu0 %v12366_v4  ;;  %v12497_v4 = vld [vmem:[%s12887_s4 + $0x180] sm:$0xff] }
 0x4c7   :  { %10107 = vmatprep.subr.bf16.mxu0 %v12382_v26  ;;  %v4755_v54 = vand.u32 4294901760, %v12497_v4 }
 0x4c9   :  { %v12512_v55 = vpack.c.bf16 %v4755_v54, %v4752_v20 }
 0x4ca   :  { %10109 = vmatpush3.bf16.msra.mxu0 %v12382_v26 }
 0x4cb   :  { %10111 = vmatprep.subr.bf16.mxu0 %v12396_v16 }
 0x4ce   :  { %10113 = vmatpush3.bf16.msra.mxu0 %v12396_v16 }
 0x4cf   :  { %10115 = vmatprep.subr.bf16.mxu0 %v12274_v15 }
 0x4d1   :  { %9014 = vmatmul.mubr.f32.vlgmr.msra.gmra.mrb[4].mxu0 %v12443_v62 }
 0x4d2   :  { %10117 = vmatpush3.bf16.msra.mxu0 %v12274_v15  ;;  %9048 = vmatprep.mubr.f32.mxu0 %v4133_v41  ;;  %v12506_v15 = vpack.c.bf16 %v4749_v46, %v4746_v17 }
 0x4d3   :  { %10119 = vmatprep.subr.bf16.mxu0 %v12286_v59 }
 0x4d4   :  { %10243 = vmatprep.subr.bf16.mxu1 %v12506_v15 }
 0x4d5   :  { %10245 = vmatpush3.bf16.msra.mxu1 %v12506_v15 }
 0x4d6   :  { %10121 = vmatpush3.bf16.msra.mxu0 %v12286_v59  ;;  %10247 = vmatprep.subr.bf16.mxu1 %v12512_v55  ;;  %v97_v59 = vld [vmem:[%s12887_s4 + $0x198] sm:$0xff] }
 0x4d7   :  { %10123 = vmatprep.subr.bf16.mxu0 %v12304_v18 }
 0x4d9   :  { %10249 = vmatpush3.bf16.msra.mxu1 %v12512_v55 }
 0x4da   :  { %10125 = vmatpush3.bf16.msra.mxu0 %v12304_v18  ;;  %v4764_v18 = vand.u32 4294901760, %v97_v59 }
 0x4db   :  { %10127 = vmatprep.subr.bf16.mxu0 %v12323_v9 }
 0x4dc   :  { %v4882_v35 = vsub.f32 %v97_v59, %v4764_v18 }
 0x4de   :  { %10129 = vmatpush3.bf16.msra.mxu0 %v12323_v9  ;;  %v4883_v16 = vand.u32 4294901760, %v4882_v35 }
 0x4df   :  { %10131 = vmatprep.subr.bf16.mxu0 %v12340_v13 }
 0x4e2   :  { %10133 = vmatpush3.bf16.msra.mxu0 %v12340_v13  ;;  %v4847_v13 = vsub.f32 %v12484_v50, %v4749_v46 }
 0x4e3   :  { %10135 = vmatprep.subr.bf16.mxu0 %v12356_v49 }
 0x4e6   :  { %10137 = vmatpush3.bf16.msra.mxu0 %v12356_v49 }
 0x4e7   :  { %10139 = vmatprep.subr.bf16.mxu0 %v12372_v7 }
 0x4ea   :  { %10141 = vmatpush3.bf16.msra.mxu0 %v12372_v7 }
 0x4eb   :  { %10143 = vmatprep.subr.bf16.mxu0 %v12388_v43 }
 0x4ee   :  { %10145 = vmatpush3.bf16.msra.mxu0 %v12388_v43 }
 0x4ef   :  { %10147 = vmatprep.subr.bf16.mxu0 %v12985_v56 }
 0x4f1   :  { %9049 = vmatmul.mubr.f32.vlgmr.msra.gmra.mrb[4].mxu0 %v12451_v61  ;;  %v4855_v61 = vand.u32 4294901760, %v4854_v33 }
 0x4f2   :  { %10149 = vmatpush3.bf16.msra.mxu0 %v12985_v56  ;;  %9083 = vmatprep.mubr.f32.mxu0 %v4134_v51 }
 0x4f3   :  { %10151 = vmatprep.subr.bf16.mxu0 %v12986_v40 }
 0x4f6   :  { %10153 = vmatpush3.bf16.msra.mxu0 %v12986_v40 }
 0x4f7   :  { %10155 = vmatprep.subr.bf16.mxu0 %v12987_v45 }
 0x4fa   :  { %10157 = vmatpush3.bf16.msra.mxu0 %v12987_v45 }
 0x4fb   :  { %10159 = vmatprep.subr.bf16.mxu0 %v12205_v39 }
 0x4fe   :  { %10161 = vmatpush3.bf16.msra.mxu0 %v12205_v39 }
 0x4ff   :  { %10163 = vmatprep.subr.bf16.mxu0 %v12988_v14 }
 0x502   :  { %10165 = vmatpush3.bf16.msra.mxu0 %v12988_v14 }
 0x503   :  { %10167 = vmatprep.subr.bf16.mxu0 %v12989_v23 }
 0x506   :  { %10169 = vmatpush3.bf16.msra.mxu0 %v12989_v23 }
 0x507   :  { %10171 = vmatprep.subr.bf16.mxu0 %v12239_v24 }
 0x50a   :  { %10173 = vmatpush3.bf16.msra.mxu0 %v12239_v24 }
 0x50b   :  { %10175 = vmatprep.subr.bf16.mxu0 %v12252_v5 }
 0x50e   :  { %10177 = vmatpush3.bf16.msra.mxu0 %v12252_v5 }
 0x50f   :  { %10179 = vmatprep.subr.bf16.mxu0 %v12280_v10 }
 0x511   :  { %9084 = vmatmul.mubr.f32.vlgmr.msra.gmra.mrb[4].mxu0 %v4144_v44 }
 0x512   :  { %10181 = vmatpush3.bf16.msra.mxu0 %v12280_v10  ;;  %9118 = vmatprep.mubr.f32.mxu0 %v12448_v48  ;;  %v96_v10 = vld [vmem:[%s12887_s4 + $0x190] sm:$0xff] }
 0x513   :  { %10183 = vmatprep.subr.bf16.mxu0 %v12296_v6 }
 0x516   :  { %10185 = vmatpush3.bf16.msra.mxu0 %v12296_v6 }
 0x517   :  { %10187 = vmatprep.subr.bf16.mxu0 %v12313_v53 }
 0x51a   :  { %10189 = vmatpush3.bf16.msra.mxu0 %v12313_v53 }
 0x51b   :  { %10191 = vmatprep.subr.bf16.mxu0 %v12332_v32 }
 0x51e   :  { %10193 = vmatpush3.bf16.msra.mxu0 %v12332_v32  ;;  %v4840_v32 = vsub.f32 %v12479_v22, %v4746_v17  ;;  %v4856_v22 = vsub.f32 %v4854_v33, %v4855_v61 }
 0x51f   :  { %10195 = vmatprep.subr.bf16.mxu0 %v12348_v58 }
 0x520   :  { %v4841_v49 = vand.u32 4294901760, %v4840_v32  ;;  %v10274_v57 = vpack.c.bf16 %v4847_v13, %v4840_v32 }
 0x522   :  { %10197 = vmatpush3.bf16.msra.mxu0 %v12348_v58  ;;  %v4842_v7 = vsub.f32 %v4840_v32, %v4841_v49 }
 0x523   :  { %10199 = vmatprep.subr.bf16.mxu0 %v12364_v21 }
 0x526   :  { %10201 = vmatpush3.bf16.msra.mxu0 %v12364_v21  ;;  %v4848_v21 = vand.u32 4294901760, %v4847_v13 }
 0x527   :  { %10203 = vmatprep.subr.bf16.mxu0 %v12380_v30 }
 0x528   :  { %v4849_v25 = vsub.f32 %v4847_v13, %v4848_v21  ;;  %v10306_v3 = vpack.c.bf16 %v4848_v21, %v4841_v49  ;;  %v118_v13 = vld [vmem:[%s12887_s4 + $0x240] sm:$0xff] }
 0x529   :  { %v5343_v21 = vand.u32 4294901760, %v118_v13 }
 0x52a   :  { %10205 = vmatpush3.bf16.msra.mxu0 %v12380_v30  ;;  %v4843_v30 = vand.u32 4294901760, %v4842_v7  ;;  %v4850_v26 = vand.u32 4294901760, %v4849_v25  ;;  %v120_v7 = vld [vmem:[%s12887_s4 + $0x250] sm:$0xff] }
 0x52b   :  { %10207 = vmatprep.subr.bf16.mxu0 %v12394_v37 }
 0x52c   :  { %v10258_v43 = vpack.c.bf16 %v4850_v26, %v4843_v30  ;;  %v121_v30 = vld [vmem:[%s12887_s4 + $0x258] sm:$0xff]  ;;  %v122_v26 = vld [vmem:[%s12887_s4 + $0x260] sm:$0xff] }
 0x52e   :  { %10209 = vmatpush3.bf16.msra.mxu0 %v12394_v37 }
 0x52f   :  { %10211 = vmatprep.subr.bf16.mxu0 %v12985_v56 }
 0x531   :  { %9119 = vmatmul.mubr.f32.vlgmr.msra.gmra.mrb[4].mxu0 %v12443_v62 }
 0x532   :  { %10213 = vmatpush3.bf16.msra.mxu0 %v12985_v56  ;;  %9153 = vmatprep.mubr.f32.mxu0 %v12448_v48  ;;  %v4884_v56 = vsub.f32 %v4882_v35, %v4883_v16 }
 0x533   :  { %10215 = vmatprep.subr.bf16.mxu0 %v12986_v40 }
 0x536   :  { %10217 = vmatpush3.bf16.msra.mxu0 %v12986_v40 }
 0x537   :  { %10219 = vmatprep.subr.bf16.mxu0 %v12987_v45 }
 0x53a   :  { %10221 = vmatpush3.bf16.msra.mxu0 %v12987_v45 }
 0x53b   :  { %10223 = vmatprep.subr.bf16.mxu0 %v12205_v39 }
 0x53e   :  { %10225 = vmatpush3.bf16.msra.mxu0 %v12205_v39  ;;  %v95_v39 = vld [vmem:[%s12887_s4 + $0x188] sm:$0xff] }
 0x53f   :  { %10227 = vmatprep.subr.bf16.mxu0 %v12988_v14  ;;  %v4758_v6 = vand.u32 4294901760, %v95_v39 }
 0x541   :  { %v4868_v12 = vsub.f32 %v95_v39, %v4758_v6 }
 0x542   :  { %10229 = vmatpush3.bf16.msra.mxu0 %v12988_v14  ;;  %v4885_v14 = vand.u32 4294901760, %v4884_v56 }
 0x543   :  { %10231 = vmatprep.subr.bf16.mxu0 %v12989_v23  ;;  %v4869_v42 = vand.u32 4294901760, %v4868_v12 }
 0x545   :  { %v4870_v8 = vsub.f32 %v4868_v12, %v4869_v42 }
 0x546   :  { %10233 = vmatpush3.bf16.msra.mxu0 %v12989_v23 }
 0x547   :  { %10235 = vmatprep.subr.bf16.mxu0 %v12239_v24  ;;  %v4871_v47 = vand.u32 4294901760, %v4870_v8 }
 0x54a   :  { %10237 = vmatpush3.bf16.msra.mxu0 %v12239_v24  ;;  %v4761_v24 = vand.u32 4294901760, %v96_v10 }
 0x54b   :  { %10239 = vmatprep.subr.bf16.mxu0 %v12252_v5 }
 0x54c   :  { %v12598_v9 = vpack.c.bf16 %v4761_v24, %v4758_v6  ;;  %v4875_v38 = vsub.f32 %v96_v10, %v4761_v24 }
 0x54e   :  { %10241 = vmatpush3.bf16.msra.mxu0 %v12252_v5  ;;  %v98_v5 = vld [vmem:[%s12887_s4 + $0x1a0] sm:$0xff]  ;;  %10251 = vmatprep.subr.bf16.mxu1 %v12598_v9  ;;  %v4876_v36 = vand.u32 4294901760, %v4875_v38  ;;  %v10282_v52 = vpack.c.bf16 %v4875_v38, %v4868_v12  ;;  %v5349_v12 = vand.u32 4294901760, %v120_v7 }
 0x54f   :  { %v4767_v53 = vand.u32 4294901760, %v98_v5  ;;  %10253 = vmatpush3.bf16.msra.mxu1 %v12598_v9 }
 0x550   :  { %v4877_v37 = vsub.f32 %v4875_v38, %v4876_v36  ;;  %v12612_v0 = vpack.c.bf16 %v4876_v36, %v4869_v42  ;;  %v5355_v42 = vand.u32 4294901760, %v122_v26 }
 0x551   :  { %9154 = vmatmul.mubr.f32.vlgmr.msra.gmra.mrb[4].mxu0 %v12443_v62  ;;  %v12606_v58 = vpack.c.bf16 %v4767_v53, %v4764_v18  ;;  %v4889_v11 = vsub.f32 %v98_v5, %v4767_v53  ;;  %v4861_v62 = vsub.f32 %v12497_v4, %v4755_v54  ;;  %v4857_v4 = vand.u32 4294901760, %v4856_v22  ;;  %v115_v18 = vld [vmem:[%s12887_s4 + $0x228] sm:$0xff] }
 0x552   :  { %v4878_v63 = vand.u32 4294901760, %v4877_v37  ;;  %v5334_v53 = vand.u32 4294901760, %v115_v18 }
 0x553   :  { %10255 = vmatprep.subr.bf16.mxu1 %v12606_v58  ;;  %v4890_v27 = vand.u32 4294901760, %v4889_v11  ;;  %v10286_v19 = vpack.c.bf16 %v4889_v11, %v4882_v35  ;;  %v4862_v41 = vand.u32 4294901760, %v4861_v62  ;;  %v10278_v24 = vpack.c.bf16 %v4861_v62, %v4854_v33 }
 0x554   :  { %10257 = vmatpush3.bf16.msra.mxu1 %v12606_v58  ;;  %v10266_v45 = vpack.c.bf16 %v4878_v63, %v4871_v47  ;;  %v5449_v47 = vsub.f32 %v118_v13, %v5343_v21 }
 0x555   :  { %10259 = vmatprep.subr.bf16.mxu1 %v10258_v43  ;;  %v4891_v40 = vsub.f32 %v4889_v11, %v4890_v27  ;;  %v12614_v28 = vpack.c.bf16 %v4890_v27, %v4883_v16  ;;  %v4863_v50 = vsub.f32 %v4861_v62, %v4862_v41  ;;  %v10310_v5 = vpack.c.bf16 %v4862_v41, %v4855_v61 }
 0x556   :  { %v5428_v11 = vsub.f32 %v115_v18, %v5334_v53  ;;  %v12992_v18 = vld [vmem:[#allocation2_spill] sm:$0xff] }
 0x557   :  { %v4892_v23 = vand.u32 4294901760, %v4891_v40  ;;  %v4864_v54 = vand.u32 4294901760, %v4863_v50 }
 0x558   :  { %v5429_v37 = vand.u32 4294901760, %v5428_v11 }
 0x559   :  { %v10270_v60 = vpack.c.bf16 %v4892_v23, %v4885_v14  ;;  %v10262_v6 = vpack.c.bf16 %v4864_v54, %v4857_v4 }
 0x55a   :  { %v5430_v63 = vsub.f32 %v5428_v11, %v5429_v37 }
 0x55c   :  { %v5431_v14 = vand.u32 4294901760, %v5430_v63 }
 0x624   :  { %v9155_v48 = vpop.f32.mrb[4].mxu0 }
 0x625   :  { %v4743_v44 = vsel %vm129_vm1, %v9155_v48, 0  ;;  %v4725_v51 = vpop.f32.mrb[5].mxu0 }
 0x626   :  { %v12623_v29 = vand.u32 4294901760, %v4743_v44  ;;  %v4740_v34 = vsel %vm129_vm1, %v4725_v51, 0  ;;  %v5477_v51 = vsub.f32 %v122_v26, %v5355_v42 }
 0x627   :  { %v4818_v2 = vand.u32 4294901760, %v4740_v34 }
 0x628   :  { %v4829_v1 = vsub.f32 %v4743_v44, %v12623_v29 }
 0x629   :  { %v4819_v31 = vsub.f32 %v4740_v34, %v4818_v2 }
 0x62a   :  { %v4830_v17 = vand.u32 4294901760, %v4829_v1 }
 0x62b   :  { %v4820_v46 = vand.u32 4294901760, %v4819_v31 }
 0x62c   :  { %v4831_v20 = vsub.f32 %v4829_v1, %v4830_v17 }
 0x62d   :  { %v4821_v39 = vsub.f32 %v4819_v31, %v4820_v46 }
 0x62e   :  { %v4832_v59 = vand.u32 4294901760, %v4831_v20 }
 0x62f   :  { %v4822_v10 = vand.u32 4294901760, %v4821_v39 }
 0x631   :  { %9172 = vmatprep.mubr.f32.mxu1 %v4822_v10 }
 0x632   :  { %9173 = vmatmul.mubr.f32.vlgmr.msra.gmra.mrb[26].mxu1 %v4832_v59 }
 0x633   :  { %10261 = vmatpush3.bf16.msra.mxu1 %v10258_v43  ;;  %9191 = vmatprep.mubr.f32.mxu1 %v4818_v2  ;;  %v5352_v43 = vand.u32 4294901760, %v121_v30 }
 0x634   :  { %10263 = vmatprep.subr.bf16.mxu1 %v10262_v6 }
 0x635   :  { %v12689_v35 = vpack.c.bf16 %v5355_v42, %v5352_v43  ;;  %v5470_v44 = vsub.f32 %v121_v30, %v5352_v43 }
 0x637   :  { %10265 = vmatpush3.bf16.msra.mxu1 %v10262_v6  ;;  %v12714_v10 = vpack.c.bf16 %v5477_v51, %v5470_v44 }
 0x638   :  { %10267 = vmatprep.subr.bf16.mxu1 %v10266_v45 }
 0x63b   :  { %10269 = vmatpush3.bf16.msra.mxu1 %v10266_v45  ;;  %v5450_v45 = vand.u32 4294901760, %v5449_v47 }
 0x63c   :  { %10271 = vmatprep.subr.bf16.mxu1 %v10270_v60 }
 0x63f   :  { %10273 = vmatpush3.bf16.msra.mxu1 %v10270_v60  ;;  %v5451_v60 = vsub.f32 %v5449_v47, %v5450_v45 }
 0x640   :  { %10275 = vmatprep.subr.bf16.mxu1 %v10274_v57 }
 0x642   :  { %9192 = vmatmul.mubr.f32.vlgmr.msra.gmra.mrb[26].mxu1 %v12623_v29 }
 0x643   :  { %10277 = vmatpush3.bf16.msra.mxu1 %v10274_v57  ;;  %9210 = vmatprep.mubr.f32.mxu1 %v4819_v31 }
 0x644   :  { %10279 = vmatprep.subr.bf16.mxu1 %v10278_v24 }
 0x647   :  { %10281 = vmatpush3.bf16.msra.mxu1 %v10278_v24 }
 0x648   :  { %10283 = vmatprep.subr.bf16.mxu1 %v10282_v52 }
 0x64b   :  { %10285 = vmatpush3.bf16.msra.mxu1 %v10282_v52 }
 0x64c   :  { %10287 = vmatprep.subr.bf16.mxu1 %v10286_v19 }
 0x64f   :  { %10289 = vmatpush3.bf16.msra.mxu1 %v10286_v19  ;;  %v5463_v19 = vsub.f32 %v120_v7, %v5349_v12 }
 0x650   :  { %10291 = vmatprep.subr.bf16.mxu1 %v12506_v15 }
 0x651   :  { %v5464_v62 = vand.u32 4294901760, %v5463_v19 }
 0x652   :  { %9211 = vmatmul.mubr.f32.vlgmr.msra.gmra.mrb[26].mxu1 %v4829_v1  ;;  %v5478_v1 = vand.u32 4294901760, %v5477_v51 }
 0x653   :  { %10293 = vmatpush3.bf16.msra.mxu1 %v12506_v15  ;;  %9229 = vmatprep.mubr.f32.mxu1 %v4820_v46  ;;  %v5465_v41 = vsub.f32 %v5463_v19, %v5464_v62 }
 0x654   :  { %10295 = vmatprep.subr.bf16.mxu1 %v12512_v55  ;;  %v5479_v31 = vsub.f32 %v5477_v51, %v5478_v1 }
 0x655   :  { %v5466_v34 = vand.u32 4294901760, %v5465_v41 }
 0x656   :  { %v5480_v46 = vand.u32 4294901760, %v5479_v31 }
 0x657   :  { %10297 = vmatpush3.bf16.msra.mxu1 %v12512_v55 }
 0x658   :  { %10299 = vmatprep.subr.bf16.mxu1 %v12598_v9 }
 0x65b   :  { %10301 = vmatpush3.bf16.msra.mxu1 %v12598_v9 }
 0x65c   :  { %10303 = vmatprep.subr.bf16.mxu1 %v12606_v58 }
 0x65f   :  { %10305 = vmatpush3.bf16.msra.mxu1 %v12606_v58 }
 0x660   :  { %10307 = vmatprep.subr.bf16.mxu1 %v10306_v3 }
 0x662   :  { %9230 = vmatmul.mubr.f32.vlgmr.msra.gmra.mrb[26].mxu1 %v4830_v17 }
 0x663   :  { %10309 = vmatpush3.bf16.msra.mxu1 %v10306_v3  ;;  %9248 = vmatprep.mubr.f32.mxu1 %v4818_v2 }
 0x664   :  { %10311 = vmatprep.subr.bf16.mxu1 %v10310_v5 }
 0x667   :  { %10313 = vmatpush3.bf16.msra.mxu1 %v10310_v5 }
 0x668   :  { %10315 = vmatprep.subr.bf16.mxu1 %v12612_v0 }
 0x66b   :  { %10317 = vmatpush3.bf16.msra.mxu1 %v12612_v0 }
 0x66c   :  { %10319 = vmatprep.subr.bf16.mxu1 %v12614_v28 }
 0x66f   :  { %10321 = vmatpush3.bf16.msra.mxu1 %v12614_v28  ;;  %v5452_v28 = vand.u32 4294901760, %v5451_v60 }
 0x670   :  { %10323 = vmatprep.subr.bf16.mxu1 %v12506_v15 }
 0x672   :  { %9249 = vmatmul.mubr.f32.vlgmr.msra.gmra.mrb[26].mxu1 %v12623_v29 }
 0x673   :  { %10325 = vmatpush3.bf16.msra.mxu1 %v12506_v15  ;;  %9267 = vmatprep.mubr.f32.mxu1 %v4818_v2  ;;  %v116_v15 = vld [vmem:[%s12887_s4 + $0x230] sm:$0xff]  ;;  %v5471_v2 = vand.u32 4294901760, %v5470_v44 }
 0x674   :  { %10327 = vmatprep.subr.bf16.mxu1 %v12512_v55 }
 0x675   :  { %v5472_v50 = vsub.f32 %v5470_v44, %v5471_v2  ;;  %v12722_v5 = vpack.c.bf16 %v5478_v1, %v5471_v2 }
 0x677   :  { %10329 = vmatpush3.bf16.msra.mxu1 %v12512_v55  ;;  %v5337_v55 = vand.u32 4294901760, %v116_v15  ;;  %v5473_v17 = vand.u32 4294901760, %v5472_v50  ;;  %v6509_v50 = vsub.s32 2, %v12992_v18 }
 0x678   :  { %10331 = vmatprep.subr.bf16.mxu1 %v12598_v9 }
 0x679   :  { %v12656_v32 = vpack.c.bf16 %v5337_v55, %v5334_v53  ;;  %v5435_v8 = vsub.f32 %v116_v15, %v5337_v55  ;;  %v12710_v54 = vpack.c.bf16 %v5480_v46, %v5473_v17  ;;  %v4737_v15 = vsub.s32 1, %v12992_v18  ;;  %v12728_v53 = vld [vmem:[%s12887_s4] sm:$0xff] }
 0x67a   :  { %v6515_v17 = vsub.s32 3, %v12992_v18  ;;  %v6510_v46 = vrot.slane %v12728_v53, %v6509_v50 }
 0x67b   :  { %10333 = vmatpush3.bf16.msra.mxu1 %v12598_v9  ;;  %v117_v9 = vld [vmem:[%s12887_s4 + $0x238] sm:$0xff]  ;;  %10435 = vmatprep.subr.bf16.mxu0 %v12656_v32  ;;  %v5436_v16 = vand.u32 4294901760, %v5435_v8  ;;  %v12706_v20 = vpack.c.bf16 %v5435_v8, %v5428_v11  ;;  %v4738_v55 = vrot.slane %v12728_v53, %v4737_v15 }
 0x67c   :  { %10335 = vmatprep.subr.bf16.mxu1 %v12606_v58  ;;  %v5340_v49 = vand.u32 4294901760, %v117_v9  ;;  %10437 = vmatpush3.bf16.msra.mxu0 %v12656_v32 }
 0x67d   :  { %v5437_v56 = vsub.f32 %v5435_v8, %v5436_v16  ;;  %v12716_v59 = vpack.c.bf16 %v5436_v16, %v5429_v37 }
 0x67e   :  { %v12680_v38 = vpack.c.bf16 %v5343_v21, %v5340_v49  ;;  %v5442_v27 = vsub.f32 %v117_v9, %v5340_v49  ;;  %v10818_v21 = vld [vmem:[%s12889_s0 + $0x8] sm:$0xff] }
 0x67f   :  { %10337 = vmatpush3.bf16.msra.mxu1 %v12606_v58  ;;  %v119_v58 = vld [vmem:[%s12887_s4 + $0x248] sm:$0xff]  ;;  %v5438_v23 = vand.u32 4294901760, %v5437_v56 }
 0x680   :  { %10339 = vmatprep.subr.bf16.mxu1 %v12656_v32  ;;  %v5346_v25 = vand.u32 4294901760, %v119_v58  ;;  %10439 = vmatprep.subr.bf16.mxu0 %v12680_v38  ;;  %v5443_v40 = vand.u32 4294901760, %v5442_v27  ;;  %v12708_v4 = vpack.c.bf16 %v5449_v47, %v5442_v27 }
 0x681   :  { %10441 = vmatpush3.bf16.msra.mxu0 %v12680_v38  ;;  %v12697_v3 = vpack.c.bf16 %v5438_v23, %v5431_v14 }
 0x682   :  { %9268 = vmatmul.mubr.f32.vlgmr.msra.gmra.mrb[26].mxu1 %v12623_v29  ;;  %v12682_v36 = vpack.c.bf16 %v5349_v12, %v5346_v25  ;;  %v5444_v57 = vsub.f32 %v5442_v27, %v5443_v40  ;;  %v5456_v52 = vsub.f32 %v119_v58, %v5346_v25  ;;  %v12718_v6 = vpack.c.bf16 %v5450_v45, %v5443_v40  ;;  %v10819_v25 = vld [vmem:[%s12889_s0] sm:$0xff] }
 0x683   :  { %10341 = vmatpush3.bf16.msra.mxu1 %v12656_v32 }
 0x684   :  { %10343 = vmatprep.subr.bf16.mxu1 %v12680_v38  ;;  %10443 = vmatprep.subr.bf16.mxu0 %v12682_v36  ;;  %v5445_v0 = vand.u32 4294901760, %v5444_v57  ;;  %v5457_v33 = vand.u32 4294901760, %v5456_v52  ;;  %v12712_v39 = vpack.c.bf16 %v5463_v19, %v5456_v52 }
 0x685   :  { %10445 = vmatpush3.bf16.msra.mxu0 %v12682_v36 }
 0x686   :  { %10447 = vmatprep.subr.bf16.mxu0 %v12689_v35  ;;  %v12702_v48 = vpack.c.bf16 %v5452_v28, %v5445_v0  ;;  %v5458_v61 = vsub.f32 %v5456_v52, %v5457_v33  ;;  %v12720_v24 = vpack.c.bf16 %v5464_v62, %v5457_v33 }
 0x687   :  { %10345 = vmatpush3.bf16.msra.mxu1 %v12680_v38 }
 0x688   :  { %10347 = vmatprep.subr.bf16.mxu1 %v12682_v36  ;;  %v5459_v29 = vand.u32 4294901760, %v5458_v61 }
 0x689   :  { %10449 = vmatpush3.bf16.msra.mxu0 %v12689_v35 }
 0x68a   :  { %10451 = vmatprep.subr.bf16.mxu0 %v12697_v3  ;;  %v12704_v22 = vpack.c.bf16 %v5466_v34, %v5459_v29 }
 0x68b   :  { %10349 = vmatpush3.bf16.msra.mxu1 %v12682_v36 }
 0x68c   :  { %10351 = vmatprep.subr.bf16.mxu1 %v12689_v35 }
 0x68f   :  { %10353 = vmatpush3.bf16.msra.mxu1 %v12689_v35 }
 0x690   :  { %10355 = vmatprep.subr.bf16.mxu1 %v12697_v3 }
 0x755   :  { %v9269_v9 = vpop.f32.mrb[26].mxu1 }
 0x756   :  { %v10576_v13 = vadd.f32 %v9269_v9, %v4738_v55  ;;  %v5315_v58 = vpop.f32.mrb[27].mxu1 }
 0x757   :  { %v10577_v49 = vadd.f32 %v5315_v58, %v4738_v55 }
 0x758   :  { %v12734_v7 = vadd.f32 %v10818_v21, %v10576_v13 }
 0x759   :  { %v12739_v30 = vadd.f32 %v10819_v25, %v10577_v49 }
 0x75a   :  { %v5331_v26 = vsel %vm129_vm1, %v12734_v7, 0 }
 0x75b   :  { %v5416_v12 = vand.u32 4294901760, %v5331_v26  ;;  %v5328_v43 = vsel %vm129_vm1, %v12739_v30, 0 }
 0x75c   :  { %v5406_v42 = vand.u32 4294901760, %v5328_v43 }
 0x75d   :  { %v5417_v11 = vsub.f32 %v5331_v26, %v5416_v12 }
 0x75e   :  { %v5407_v8 = vsub.f32 %v5328_v43, %v5406_v42 }
 0x75f   :  { %v5418_v37 = vand.u32 4294901760, %v5417_v11 }
 0x760   :  { %v5408_v16 = vand.u32 4294901760, %v5407_v8 }
 0x761   :  { %v5419_v27 = vsub.f32 %v5417_v11, %v5418_v37 }
 0x762   :  { %v5409_v47 = vsub.f32 %v5407_v8, %v5408_v16 }
 0x763   :  { %v5420_v56 = vand.u32 4294901760, %v5419_v27 }
 0x764   :  { %v5410_v63 = vand.u32 4294901760, %v5409_v47 }
 0x766   :  { %9286 = vmatprep.mubr.f32.mxu1 %v5410_v63 }
 0x767   :  { %9287 = vmatmul.mubr.f32.vlgmr.msra.gmra.mrb[28].mxu1 %v5420_v56 }
 0x768   :  { %10357 = vmatpush3.bf16.msra.mxu1 %v12697_v3  ;;  %9305 = vmatprep.mubr.f32.mxu1 %v5406_v42 }
 0x769   :  { %10359 = vmatprep.subr.bf16.mxu1 %v12702_v48 }
 0x76c   :  { %10361 = vmatpush3.bf16.msra.mxu1 %v12702_v48 }
 0x76d   :  { %10363 = vmatprep.subr.bf16.mxu1 %v12704_v22 }
 0x770   :  { %10365 = vmatpush3.bf16.msra.mxu1 %v12704_v22 }
 0x771   :  { %10367 = vmatprep.subr.bf16.mxu1 %v12710_v54 }
 0x774   :  { %10369 = vmatpush3.bf16.msra.mxu1 %v12710_v54 }
 0x775   :  { %10371 = vmatprep.subr.bf16.mxu1 %v12706_v20 }
 0x777   :  { %9306 = vmatmul.mubr.f32.vlgmr.msra.gmra.mrb[28].mxu1 %v5416_v12 }
 0x778   :  { %10373 = vmatpush3.bf16.msra.mxu1 %v12706_v20  ;;  %9324 = vmatprep.mubr.f32.mxu1 %v5407_v8 }
 0x779   :  { %10375 = vmatprep.subr.bf16.mxu1 %v12708_v4 }
 0x77c   :  { %10377 = vmatpush3.bf16.msra.mxu1 %v12708_v4 }
 0x77d   :  { %10379 = vmatprep.subr.bf16.mxu1 %v12712_v39 }
 0x780   :  { %10381 = vmatpush3.bf16.msra.mxu1 %v12712_v39 }
 0x781   :  { %10383 = vmatprep.subr.bf16.mxu1 %v12714_v10 }
 0x784   :  { %10385 = vmatpush3.bf16.msra.mxu1 %v12714_v10 }
 0x785   :  { %10387 = vmatprep.subr.bf16.mxu1 %v12656_v32 }
 0x787   :  { %9325 = vmatmul.mubr.f32.vlgmr.msra.gmra.mrb[28].mxu1 %v5417_v11 }
 0x788   :  { %10389 = vmatpush3.bf16.msra.mxu1 %v12656_v32  ;;  %9343 = vmatprep.mubr.f32.mxu1 %v5408_v16  ;;  %v10825_v16 = vmov 8  }
 0x789   :  { %10391 = vmatprep.subr.bf16.mxu1 %v12680_v38  ;;  %10800 = vset.pattern.permute.xlu1 %v10825_v16 }
 0x78c   :  { %10393 = vmatpush3.bf16.msra.mxu1 %v12680_v38 }
 0x78d   :  { %10395 = vmatprep.subr.bf16.mxu1 %v12682_v36 }
 0x790   :  { %10397 = vmatpush3.bf16.msra.mxu1 %v12682_v36 }
 0x791   :  { %10399 = vmatprep.subr.bf16.mxu1 %v12689_v35 }
 0x794   :  { %10401 = vmatpush3.bf16.msra.mxu1 %v12689_v35 }
 0x795   :  { %10403 = vmatprep.subr.bf16.mxu1 %v12716_v59 }
 0x797   :  { %9344 = vmatmul.mubr.f32.vlgmr.msra.gmra.mrb[28].mxu1 %v5418_v37  ;;  %v124_v37 = vld [vmem:[%s12887_s4 + $0x270] sm:$0xff] }
 0x798   :  { %10405 = vmatpush3.bf16.msra.mxu1 %v12716_v59  ;;  %9362 = vmatprep.mubr.f32.mxu1 %v5406_v42 }
 0x799   :  { %10407 = vmatprep.subr.bf16.mxu1 %v12718_v6  ;;  %6997 = vperm.xlu1 %10800, %v124_v37  }
 0x79c   :  { %10409 = vmatpush3.bf16.msra.mxu1 %v12718_v6 }
 0x79d   :  { %10411 = vmatprep.subr.bf16.mxu1 %v12720_v24 }
 0x7a0   :  { %10413 = vmatpush3.bf16.msra.mxu1 %v12720_v24 }
 0x7a1   :  { %10415 = vmatprep.subr.bf16.mxu1 %v12722_v5 }
 0x7a4   :  { %10417 = vmatpush3.bf16.msra.mxu1 %v12722_v5 }
 0x7a5   :  { %10419 = vmatprep.subr.bf16.mxu1 %v12656_v32 }
 0x7a7   :  { %9363 = vmatmul.mubr.f32.vlgmr.msra.gmra.mrb[28].mxu1 %v5416_v12 }
 0x7a8   :  { %10421 = vmatpush3.bf16.msra.mxu1 %v12656_v32  ;;  %9381 = vmatprep.mubr.f32.mxu1 %v5406_v42 }
 0x7a9   :  { %10423 = vmatprep.subr.bf16.mxu1 %v12680_v38 }
 0x7ac   :  { %10425 = vmatpush3.bf16.msra.mxu1 %v12680_v38 }
 0x7ad   :  { %10427 = vmatprep.subr.bf16.mxu1 %v12682_v36 }
 0x7b0   :  { %10429 = vmatpush3.bf16.msra.mxu1 %v12682_v36 }
 0x7b1   :  { %10431 = vmatprep.subr.bf16.mxu1 %v12689_v35 }
 0x7b4   :  { %10433 = vmatpush3.bf16.msra.mxu1 %v12689_v35 }
 0x7b7   :  { %9382 = vmatmul.mubr.f32.vlgmr.msra.gmra.mrb[28].mxu1 %v5416_v12 }
 0x88a   :  { %v9383_v40 = vpop.f32.mrb[28].mxu1 }
 0x88b   :  { %v12785_v45 = vsub.f32 %v12734_v7, %v9383_v40  ;;  %v5903_v14 = vpop.f32.mrb[29].mxu1 }
 0x88c   :  { %v12788_v23 = vsub.f32 %v12739_v30, %v5903_v14 }
 0x88d   :  { %v5916_v57 = vmul.f32 %v12785_v45, %v12785_v45 }
 0x88e   :  { %v5915_v60 = vmul.f32 %v12788_v23, %v12788_v23 }
 0x88f   :  { %v5921_v52 = vsel %vm129_vm1, %v5916_v57, 0  ;;  %v7001_v57 = vsel %vm7000_vm4, %v124_v37, 0 }
 0x890   :  { %v6006_v19 = vand.u32 4294901760, %v5921_v52  ;;  %v5918_v0 = vsel %vm129_vm1, %v5915_v60, 0 }
 0x891   :  { %v5996_v28 = vand.u32 4294901760, %v5918_v0 }
 0x892   :  { %v6007_v33 = vsub.f32 %v5921_v52, %v6006_v19  ;;  %v7069_v52 = vand.u32 4294901760, %v7001_v57 }
 0x893   :  { %v5997_v62 = vsub.f32 %v5918_v0, %v5996_v28 }
 0x894   :  { %v6008_v61 = vand.u32 4294901760, %v6007_v33 }
 0x895   :  { %v5998_v41 = vand.u32 4294901760, %v5997_v62 }
 0x896   :  { %v6009_v44 = vsub.f32 %v6007_v33, %v6008_v61 }
 0x897   :  { %v5999_v51 = vsub.f32 %v5997_v62, %v5998_v41 }
 0x898   :  { %v6010_v34 = vand.u32 4294901760, %v6009_v44 }
 0x899   :  { %v6000_v29 = vand.u32 4294901760, %v5999_v51 }
 0x89b   :  { %9400 = vmatprep.mubr.f32.mxu0 %v6000_v29 }
 0x89c   :  { %9401 = vmatmul.mubr.f32.vlgmr.msra.gmra.mrb[6].mxu0 %v6010_v34 }
 0x89d   :  { %10453 = vmatpush3.bf16.msra.mxu0 %v12697_v3  ;;  %9419 = vmatprep.mubr.f32.mxu0 %v5996_v28  ;;  %v10821_v3 = vmov 0.0|0.0  }
 0x89e   :  { %10455 = vmatprep.subr.bf16.mxu0 %v12702_v48  ;;  %10530 = vmatprep.subr.bf16.mxu1 %v10821_v3 }
 0x8a1   :  { %10457 = vmatpush3.bf16.msra.mxu0 %v12702_v48  ;;  %v10823_v48 = vmov 0.0  }
 0x8a2   :  { %10459 = vmatprep.subr.bf16.mxu0 %v12704_v22  ;;  %9502 = vmatprep.mubr.msk.f32.mxu1 %vm10822_vm2, %v10823_v48 }
 0x8a5   :  { %10461 = vmatpush3.bf16.msra.mxu0 %v12704_v22 }
 0x8a6   :  { %10463 = vmatprep.subr.bf16.mxu0 %v12710_v54 }
 0x8a9   :  { %10465 = vmatpush3.bf16.msra.mxu0 %v12710_v54 }
 0x8aa   :  { %10467 = vmatprep.subr.bf16.mxu0 %v12706_v20 }
 0x8ac   :  { %9420 = vmatmul.mubr.f32.vlgmr.msra.gmra.mrb[6].mxu0 %v6006_v19 }
 0x8ad   :  { %10469 = vmatpush3.bf16.msra.mxu0 %v12706_v20  ;;  %9438 = vmatprep.mubr.f32.mxu0 %v5997_v62 }
 0x8ae   :  { %10471 = vmatprep.subr.bf16.mxu0 %v12708_v4 }
 0x8b1   :  { %10473 = vmatpush3.bf16.msra.mxu0 %v12708_v4 }
 0x8b2   :  { %10475 = vmatprep.subr.bf16.mxu0 %v12712_v39 }
 0x8b5   :  { %10477 = vmatpush3.bf16.msra.mxu0 %v12712_v39 }
 0x8b6   :  { %10479 = vmatprep.subr.bf16.mxu0 %v12714_v10 }
 0x8b9   :  { %10481 = vmatpush3.bf16.msra.mxu0 %v12714_v10  ;;  %v6516_v10 = vrot.slane %v12728_v53, %v6515_v17 }
 0x8ba   :  { %10483 = vmatprep.subr.bf16.mxu0 %v12656_v32 }
 0x8bc   :  { %9439 = vmatmul.mubr.f32.vlgmr.msra.gmra.mrb[6].mxu0 %v6007_v33 }
 0x8bd   :  { %10485 = vmatpush3.bf16.msra.mxu0 %v12656_v32  ;;  %9457 = vmatprep.mubr.f32.mxu0 %v5998_v41 }
 0x8be   :  { %10487 = vmatprep.subr.bf16.mxu0 %v12680_v38 }
 0x8c1   :  { %10489 = vmatpush3.bf16.msra.mxu0 %v12680_v38 }
 0x8c2   :  { %10491 = vmatprep.subr.bf16.mxu0 %v12682_v36 }
 0x8c5   :  { %10493 = vmatpush3.bf16.msra.mxu0 %v12682_v36 }
 0x8c6   :  { %10495 = vmatprep.subr.bf16.mxu0 %v12689_v35 }
 0x8c9   :  { %10497 = vmatpush3.bf16.msra.mxu0 %v12689_v35 }
 0x8ca   :  { %10499 = vmatprep.subr.bf16.mxu0 %v12716_v59 }
 0x8cc   :  { %9458 = vmatmul.mubr.f32.vlgmr.msra.gmra.mrb[6].mxu0 %v6008_v61 }
 0x8cd   :  { %10501 = vmatpush3.bf16.msra.mxu0 %v12716_v59  ;;  %9476 = vmatprep.mubr.f32.mxu0 %v5996_v28 }
 0x8ce   :  { %10503 = vmatprep.subr.bf16.mxu0 %v12718_v6 }
 0x8d1   :  { %10505 = vmatpush3.bf16.msra.mxu0 %v12718_v6 }
 0x8d2   :  { %10507 = vmatprep.subr.bf16.mxu0 %v12720_v24 }
 0x8d5   :  { %10509 = vmatpush3.bf16.msra.mxu0 %v12720_v24 }
 0x8d6   :  { %10511 = vmatprep.subr.bf16.mxu0 %v12722_v5 }
 0x8d9   :  { %10513 = vmatpush3.bf16.msra.mxu0 %v12722_v5 }
 0x8da   :  { %10515 = vmatprep.subr.bf16.mxu0 %v12656_v32 }
 0x8dc   :  { %9477 = vmatmul.mubr.f32.vlgmr.msra.gmra.mrb[6].mxu0 %v6006_v19 }
 0x8dd   :  { %10517 = vmatpush3.bf16.msra.mxu0 %v12656_v32  ;;  %9495 = vmatprep.mubr.f32.mxu0 %v5996_v28  ;;  %v123_v32 = vld [vmem:[%s12887_s4 + $0x268] sm:$0xff] }
 0x8de   :  { %10519 = vmatprep.subr.bf16.mxu0 %v12680_v38  ;;  %v6525_v22 = vsel %vm6524_vm3, %v123_v32, 0 }
 0x8df   :  { %v6594_v31 = vand.u32 4294901760, %v6525_v22 }
 0x8e1   :  { %10521 = vmatpush3.bf16.msra.mxu0 %v12680_v38  ;;  %v10824_v38 = vmov 16   ;;  %v6595_v20 = vsub.f32 %v6525_v22, %v6594_v31 }
 0x8e2   :  { %10523 = vmatprep.subr.bf16.mxu0 %v12682_v36  ;;  %10799 = vset.pattern.permute.xlu0 %v10824_v38 }
 0x8e3   :  { %6521 = vperm.xlu0 %10799, %v123_v32   ;;  %v6596_v24 = vand.u32 4294901760, %v6595_v20 }
 0x8e5   :  { %10525 = vmatpush3.bf16.msra.mxu0 %v12682_v36  ;;  %v6597_v13 = vsub.f32 %v6595_v20, %v6596_v24 }
 0x8e6   :  { %10527 = vmatprep.subr.bf16.mxu0 %v12689_v35 }
 0x8e7   :  { %v6598_v7 = vand.u32 4294901760, %v6597_v13  ;;  %10801 = vset.pattern.permute.xlu0 %v10825_v16 }
 0x8e9   :  { %10529 = vmatpush3.bf16.msra.mxu0 %v12689_v35 }
 0x8ea   :  { %9550 = vmatprep.subr.mxu0 %v10823_v48 }
 0x8ec   :  { %9496 = vmatmul.mubr.f32.vlgmr.msra.gmra.mrb[6].mxu0 %v6006_v19  ;;  %v7070_v19 = vsub.f32 %v7001_v57, %v7069_v52 }
 0x8ed   :  { %9552 = vmatprep.mubr.msk.f32.mxu0 %vm10822_vm2, %v10823_v48 }
 0x8ee   :  { %v7071_v0 = vand.u32 4294901760, %v7070_v19 }
 0x8f0   :  { %v7072_v62 = vsub.f32 %v7070_v19, %v7071_v0 }
 0x8f2   :  { %v7073_v44 = vand.u32 4294901760, %v7072_v62 }
 0x962   :  { %v6522_v27 = vpop.permute.xlu0 %6521 }
 0x9bf   :  { %v9497_v36 = vpop.f32.mrb[6].mxu0 }
 0x9c0   :  { %v10578_v35 = vadd.f32 1e-06, %v9497_v36  ;;  %v6493_v2 = vpop.f32.mrb[7].mxu0 }
 0x9c1   :  { %v10579_v1 = vadd.f32 1e-06, %v6493_v2 }
 0x9c2   :  { %10810 = vrsqrt.f32 %v10578_v35  ;;  %v6998_v35 = vpop.permute.xlu1 %6997 }
 0x9c3   :  { %10812 = vrsqrt.f32 %v10579_v1 }
 0x9cc   :  { %v10811_v4 = vpop.eup %10810 }
 0x9cd   :  { %v10813_v54 = vpop.eup %10812  ;;  %v6506_v39 = vmul.f32 %v10811_v4, %v12785_v45 }
 0x9ce   :  { %v6505_v59 = vmul.f32 %v10813_v54, %v12788_v23 }
 0x9cf   :  { %v6512_v6 = vmul.f32 %v6510_v46, %v6506_v39 }
 0x9d0   :  { %v6511_v5 = vmul.f32 %v6510_v46, %v6505_v59 }
 0x9d1   :  { %v6518_v15 = vadd.f32 %v6516_v10, %v6512_v6 }
 0x9d2   :  { %v6517_v55 = vadd.f32 %v6516_v10, %v6511_v5 }
 0x9d3   :  { %v6531_v9 = vand.u32 4294901760, %v6518_v15 }
 0x9d4   :  { %v6528_v58 = vand.u32 4294901760, %v6517_v55 }
 0x9d5   :  { %v6613_v18 = vsub.f32 %v6518_v15, %v6531_v9 }
 0x9d6   :  { %v10531_v49 = vpack.c.bf16 %v6531_v9, %v6528_v58  ;;  %v6606_v21 = vsub.f32 %v6517_v55, %v6528_v58 }
 0x9d7   :  { %v6614_v25 = vand.u32 4294901760, %v6613_v18 }
 0x9d8   :  { %10532 = vmatpush3.bf16.msra.mxu1 %v10531_v49  ;;  %v6607_v30 = vand.u32 4294901760, %v6606_v21  ;;  %v10537_v26 = vpack.c.bf16 %v6613_v18, %v6606_v21 }
 0x9d9   :  { %10533 = vmatprep.subr.bf16.mxu1 %v10821_v3  ;;  %v6615_v53 = vsub.f32 %v6613_v18, %v6614_v25 }
 0x9da   :  { %v6608_v12 = vsub.f32 %v6606_v21, %v6607_v30  ;;  %v10543_v43 = vpack.c.bf16 %v6614_v25, %v6607_v30 }
 0x9db   :  { %9503 = vmatmul.mubr.f32.vlgmr.msra.gmra.mrb[30].mxu1 %v6598_v7  ;;  %v6616_v42 = vand.u32 4294901760, %v6615_v53 }
 0x9dc   :  { %v6609_v11 = vand.u32 4294901760, %v6608_v12  ;;  %9509 = vmatprep.mubr.msk.f32.mxu1 %vm10822_vm2, %v10823_v48 }
 0x9de   :  { %v10534_v8 = vpack.c.bf16 %v6616_v42, %v6609_v11 }
 0x9e0   :  { %10535 = vmatpush3.bf16.msra.mxu1 %v10534_v8 }
 0x9e1   :  { %10536 = vmatprep.subr.bf16.mxu1 %v10821_v3 }
 0x9e3   :  { %9510 = vmatmul.mubr.f32.vlgmr.msra.gmra.mrb[30].mxu1 %v6594_v31 }
 0x9e4   :  { %10538 = vmatpush3.bf16.msra.mxu1 %v10537_v26  ;;  %9516 = vmatprep.mubr.msk.f32.mxu1 %vm10822_vm2, %v10823_v48 }
 0x9e5   :  { %10539 = vmatprep.subr.bf16.mxu1 %v10821_v3 }
 0x9eb   :  { %9517 = vmatmul.mubr.f32.vlgmr.msra.gmra.mrb[30].mxu1 %v6595_v20 }
 0x9ec   :  { %10541 = vmatpush3.bf16.msra.mxu1 %v10531_v49  ;;  %9523 = vmatprep.mubr.msk.f32.mxu1 %vm10822_vm2, %v10823_v48 }
 0x9ed   :  { %10542 = vmatprep.subr.bf16.mxu1 %v10821_v3 }
 0x9f3   :  { %9524 = vmatmul.mubr.f32.vlgmr.msra.gmra.mrb[30].mxu1 %v6596_v24 }
 0x9f4   :  { %10544 = vmatpush3.bf16.msra.mxu1 %v10543_v43  ;;  %9530 = vmatprep.mubr.msk.f32.mxu1 %vm10822_vm2, %v10823_v48 }
 0x9f5   :  { %10545 = vmatprep.subr.bf16.mxu1 %v10821_v3 }
 0x9fb   :  { %9531 = vmatmul.mubr.f32.vlgmr.msra.gmra.mrb[30].mxu1 %v6594_v31 }
 0x9fc   :  { %10547 = vmatpush3.bf16.msra.mxu1 %v10531_v49  ;;  %9537 = vmatprep.mubr.msk.f32.mxu1 %vm10822_vm2, %v10823_v48 }
 0x9fd   :  { %9540 = vmatprep.subr.mxu1 %v10823_v48 }
 0xa03   :  { %9538 = vmatmul.mubr.f32.vlgmr.msra.gmra.mrb[30].mxu1 %v6594_v31 }
 0xa04   :  { %9542 = vmatprep.mubr.msk.f32.mxu1 %vm10822_vm2, %v10823_v48 }
 0xad6   :  { %v6982_v47 = vpop.f32.mrb[30].mxu1 }
 0xad7   :  { %v10580_v63 = vadd.f32 %v6982_v47, %v6522_v27  ;;  %v9539_v56 = vpop.f32.mrb[31].mxu1 }
 0xad9   :  { %v6986_v40 = vmul.f32 %v10580_v63, %v10580_v63 }
 0xadb   :  { %v6987_v45 = vmul.f32 %v10580_v63, %v6986_v40 }
 0xadd   :  { %v6988_v14 = vmul.f32 0.044715, %v6987_v45 }
 0xadf   :  { %v6989_v23 = vadd.f32 %v10580_v63, %v6988_v14 }
 0xae1   :  { %v6990_v60 = vmul.f32 0.7978846, %v6989_v23 }
 0xae3   :  { %10814 = vtanh.f32 %v6990_v60 }
 0xaed   :  { %v10815_v28 = vpop.eup %10814 }
 0xaee   :  { %v6992_v33 = vadd.f32 1.0, %v10815_v28 }
 0xaf0   :  { %v6993_v61 = vmul.f32 0.5, %v6992_v33 }
 0xaf2   :  { %v6994_v41 = vmul.f32 %v10580_v63, %v6993_v61 }
 0xaf4   :  { %v7004_v51 = vand.u32 4294901760, %v6994_v41 }
 0xaf6   :  { %9541 = vmatpush3.msra.mxu1 %v7004_v51  ;;  %v7081_v29 = vsub.f32 %v6994_v41, %v7004_v51 }
 0xaf7   :  { %9545 = vmatprep.subr.mxu1 %v10823_v48  ;;  %9543 = vmatmul.mubr.f32.vlgmr.msra.gmra.mrb[32].mxu1 %v7073_v44 }
 0xaf8   :  { %9551 = vmatpush3.msra.mxu0 %v7081_v29  ;;  %v7082_v34 = vand.u32 4294901760, %v7081_v29  ;;  %9547 = vmatprep.mubr.msk.f32.mxu1 %vm10822_vm2, %v10823_v48 }
 0xaf9   :  { %9553 = vmatmul.mubr.f32.vlgmr.msra.gmra.mrb[8].mxu0 %v7070_v19  ;;  %9555 = vmatprep.subr.mxu0 %v10823_v48 }
 0xafa   :  { %9556 = vmatpush3.msra.mxu0 %v7004_v51  ;;  %v7083_v3 = vsub.f32 %v7081_v29, %v7082_v34  ;;  %9557 = vmatprep.mubr.msk.f32.mxu0 %vm10822_vm2, %v10823_v48 }
 0xafb   :  { %9560 = vmatprep.subr.mxu0 %v10823_v48 }
 0xafc   :  { %v7084_v32 = vand.u32 4294901760, %v7083_v3 }
 0xafe   :  { %9546 = vmatpush3.msra.mxu1 %v7084_v32 }
 0xaff   :  { %9548 = vmatmul.mubr.f32.vlgmr.msra.gmra.mrb[32].mxu1 %v7069_v52 }
 0xb01   :  { %9558 = vmatmul.mubr.f32.vlgmr.msra.gmra.mrb[8].mxu0 %v7071_v0 }
 0xb02   :  { %9561 = vmatpush3.msra.mxu0 %v7082_v34  ;;  %9562 = vmatprep.mubr.msk.f32.mxu0 %vm10822_vm2, %v10823_v48 }
 0xb03   :  { %9565 = vmatprep.subr.mxu0 %v10823_v48 }
 0xb09   :  { %9563 = vmatmul.mubr.f32.vlgmr.msra.gmra.mrb[8].mxu0 %v7069_v52 }
 0xb0a   :  { %9566 = vmatpush3.msra.mxu0 %v7004_v51  ;;  %9567 = vmatprep.mubr.msk.f32.mxu0 %vm10822_vm2, %v10823_v48 }
 0xb11   :  { %9568 = vmatmul.mubr.f32.vlgmr.msra.gmra.mrb[8].mxu0 %v7069_v52 }
 0xbd2   :  { %v7151_v38 = vpop.f32.mrb[32].mxu1 }
 0xbd3   :  { %v9549_v36 = vpop.f32.mrb[33].mxu1  ;;  %v10581_v2 = vadd.f32 %v7151_v38, %v6998_v35 }
 0xbe4   :  { %v7445_v1 = vpop.f32.mrb[8].mxu0 }
 0xbe5   :  { %v10582_v22 = vadd.f32 %v10581_v2, %v7445_v1  ;;  %v9569_v50 = vpop.f32.mrb[9].mxu0 }
 0xbe7   :  { %7449 = vst.msk [vmem:[%s12893_s5] sm:$0xff] %vm129_vm1, %v10582_v22 }

</bundles_post_ra>
